<compile_context>
chip_gen: v7x
topology: tpu7x:2x2x1
jax: 0.10.0
libtpu: 0.0.40
codegen_flags: <defaults>
</compile_context>

<pallas_src>
import functools

import jax
import jax.numpy as jnp
from jax.experimental import pallas as pl
from jax.experimental.pallas import tpu as pltpu


DTYPE = jnp.bfloat16      # storage / MXU-operand dtype for the conv path
ACC = jnp.float32         # accumulation / epilogue / mask dtype

IMG_HW = 64
IMG_C = 3
ENC_CHANNELS = [8, 8, 16, 32, 64]   # tiny stand-in for the ResNet feature pyramid
N_MEMORY = 4

# review item: 64 MiB was the whole physical VMEM of a v7x core; actual need
# here is a few MiB, leave headroom for the compiler.
_CPARAMS = pltpu.CompilerParams(vmem_limit_bytes=16 * 1024 * 1024)


# ----------------------------------------------------------------------------
# pallas_call plumbing (whole-array VMEM blocks; every tensor here is < 1 MB)
# ----------------------------------------------------------------------------

def _vmem():
    return pl.BlockSpec(memory_space=pltpu.MemorySpace.VMEM)


def _pcall(kernel, out_shape, n_in):
    multi = isinstance(out_shape, (tuple, list))
    return pl.pallas_call(
        kernel,
        out_shape=tuple(out_shape) if multi else out_shape,
        in_specs=[_vmem() for _ in range(n_in)],
        out_specs=tuple(_vmem() for _ in out_shape) if multi else _vmem(),
        compiler_params=_CPARAMS,
    )


# ----------------------------------------------------------------------------
# Weight preprocessing (runs once at init, pure XLA on tiny arrays).
# Folded layout: activation [H, B, W*C], lane index = w*C + c.
# Every conv along W (incl. stride-2 / nearest-up2 / zero pad) becomes a small
# banded matrix  [Win*Cin, Wout*Cout]; the H direction keeps 2-3 row taps.
# ----------------------------------------------------------------------------

# which original 3x3 row-taps collapse onto coarse row offset (pi + ri - 1)
_SEL = {(0, 0): (0,), (0, 1): (1, 2), (1, 0): (0, 1), (1, 1): (2,)}


def _sel_kron(win, wout_idx, valid, w2d):
    rows = jnp.arange(win)[:, None]
    s = ((rows == wout_idx[None, :]) & valid[None, :]).astype(jnp.float32)
    return jnp.kron(s, w2d.astype(jnp.float32))


def band_stride2(w, win):
    """stride-2 conv3x3, pad 1 -> [3(row tap), Win*Cin, (Win//2)*Cout]."""
    wout = win // 2
    jo = jnp.arange(wout)
    mats = []
    for kh in range(3):
        m = jnp.zeros((win * w.shape[2], wout * w.shape[3]), jnp.float32)
        for kw in range(3):
            wi = 2 * jo + kw - 1
            valid = (wi >= 0) & (wi < win)
            m = m + _sel_kron(win, wi, valid, w[kh, kw])
        mats.append(m)
    return jnp.stack(mats).astype(DTYPE)


def band_stride1(w, width):
    """stride-1 conv3x3, pad 1 -> [3, W*Cin, W*Cout]."""
    jo = jnp.arange(width)
    mats = []
    for kh in range(3):
        m = jnp.zeros((width * w.shape[2], width * w.shape[3]), jnp.float32)
        for kw in range(3):
            wi = jo + kw - 1
            valid = (wi >= 0) & (wi < width)
            m = m + _sel_kron(width, wi, valid, w[kh, kw])
        mats.append(m)
    return jnp.stack(mats).astype(DTYPE)


def band_upconv(w, wc):
    """conv3x3(nearest_up2(x)) -> [2(out row parity), 2(coarse row tap),
    Wc*Cin, 2*Wc*Cout]; W-upsample + W-conv + W-pad baked into the band."""
    wf = 2 * wc
    jo = jnp.arange(wf)
    rows = []
    for pi in range(2):
        col = []
        for ri in range(2):
            m = jnp.zeros((wc * w.shape[2], wf * w.shape[3]), jnp.float32)
            for kh in _SEL[(pi, ri)]:
                for kw in range(3):
                    fine = jo + kw - 1
                    valid = (fine >= 0) & (fine < wf)
                    wi = jnp.where(valid, fine // 2, -1)
                    m = m + _sel_kron(wc, wi, valid, w[kh, kw])
            col.append(m)
        rows.append(jnp.stack(col))
    return jnp.stack(rows).astype(DTYPE)


def diag_1x1(w2d, width):
    """1x1 conv -> block-diagonal [W*Cin, W*Cout]."""
    return jnp.kron(jnp.eye(width, dtype=jnp.float32),
                    w2d.astype(jnp.float32)).astype(DTYPE)


def avg_mat(width, c):
    """per-position channel mean, replicated over its channel block."""
    return jnp.kron(jnp.eye(width, dtype=jnp.float32),
                    jnp.full((c, c), 1.0 / c, jnp.float32))


def parent_mat(wc, cc, wf, cf):
    """expand a coarse per-position (block-replicated) map to the fine level."""
    u = (jnp.arange(wc)[:, None] == (jnp.arange(wf)[None, :] // 2))
    return jnp.kron(u.astype(jnp.float32),
                    jnp.full((cc, cf), 1.0 / cc, jnp.float32))


def fold_bias(b, width):
    return jnp.tile(b, width).reshape(1, 1, width * b.shape[0]).astype(ACC)


# ----------------------------------------------------------------------------
# In-kernel helpers (only leading-dim slices/reshapes/concats + 2D GEMMs)
# ----------------------------------------------------------------------------

def _mm(x, w):
    """[R, B, K] @ [K, N] -> [R, B, N] with f32 accumulation."""
    r, b, k = x.shape
    y = jnp.dot(x.reshape(r * b, k), w, preferred_element_type=ACC)
    return y.reshape(r, b, y.shape[-1])


def _pad_rows(x):
    z = jnp.zeros((1,) + x.shape[1:], x.dtype)
    return jnp.concatenate([z, x, z], axis=0)


def _interleave_rows(even, odd):
    s = jnp.concatenate([even[:, None], odd[:, None]], axis=1)
    return s.reshape((2 * even.shape[0],) + even.shape[1:])


def _conv3x3_s2(x, w_ref, b_ref):
    """stride-2 conv3x3 + bias + ReLU. x: [H, B, Win*Cin] (H even)."""
    h = x.shape[0]
    ho = h // 2
    # rows -1..H, folded by row parity; all slicing below is on leading dims.
    xf = _pad_rows(x).reshape(ho + 1, 2, x.shape[1], x.shape[2])
    acc = _mm(xf[0:ho, 0], w_ref[0])            # input row 2i-1
    acc = acc + _mm(xf[0:ho, 1], w_ref[1])      # input row 2i
    acc = acc + _mm(xf[1:ho + 1, 0], w_ref[2])  # input row 2i+1
    return jnp.maximum(acc + b_ref[...], 0.0)


def _conv3x3(x, w_ref, b_ref, relu=True):
    """stride-1 conv3x3 + bias (+ ReLU). x: [H, B, W*Cin]."""
    h = x.shape[0]
    xp = _pad_rows(x)
    acc = _mm(xp[0:h], w_ref[0])
    acc = acc + _mm(xp[1:h + 1], w_ref[1])
    acc = acc + _mm(xp[2:h + 2], w_ref[2])
    acc = acc + b_ref[...]
    return jnp.maximum(acc, 0.0) if relu else acc


def _upconv(xs, ws, b_ref, relu=True):
    """conv3x3(nearest_up2(concat(xs))) + bias (+ ReLU), channel concat handled
    with split banded weights. xs[i]: [Hc, B, Wc*Cin_i] -> [2*Hc, B, 2*Wc*Cout]."""
    hc = xs[0].shape[0]
    xps = [_pad_rows(x) for x in xs]
    bias = b_ref[...]
    rows = []
    for pi in range(2):
        acc = None
        for ri in range(2):
            for xp, w in zip(xps, ws):
                t = _mm(xp[pi + ri:pi + ri + hc], w[pi, ri])
                acc = t if acc is None else acc + t
        acc = acc + bias
        if relu:
            acc = jnp.maximum(acc, 0.0)
        rows.append(acc)
    return _interleave_rows(rows[0], rows[1])


# ----------------------------------------------------------------------------
# Kernel 1: encoder = 5 fused stride-2 conv3x3 + bias + ReLU levels
# ----------------------------------------------------------------------------

def _encoder_kernel(x_ref, w0, b0, w1, b1, w2, b2, w3, b3, w4, b4,
                    o0, o1, o2, o3, o4):
    # TODO(synk): reference uses a timm ResNet18 features_only encoder (with
    # BN); replaced by a deterministic stride-2 conv pyramid of same topology.
    ws = (w0, w1, w2, w3, w4)
    bs = (b0, b1, b2, b3, b4)
    outs = (o0, o1, o2, o3, o4)
    h = x_ref[...]
    for lvl in range(len(outs)):
        h = _conv3x3_s2(h, ws[lvl], bs[lvl]).astype(DTYPE)
        outs[lvl][...] = h


def encoder_apply(ep, x_folded):
    b = x_folded.shape[1]
    outs = tuple(jax.ShapeDtypeStruct((hh, b, n), DTYPE) for (hh, n) in ep['dims'])
    args = [x_folded]
    for w, bia in zip(ep['w'], ep['b']):
        args += [w, bia]
    return _pcall(_encoder_kernel, outs, len(args))(*args)


# ----------------------------------------------------------------------------
# Kernel 2: memory-bank selection + all 3 MSFF blocks + both top-down fuse
#           stages + cascaded attention masks, fully fused.
# ----------------------------------------------------------------------------

def _msff_kernel(f1_ref, f2_ref, f3_ref, m1_ref, m2_ref, m3_ref,
                 w1_1, b1_1, w2a_1, b2a_1, w2b_1, b2b_1,
                 w1_2, b1_2, w2a_2, b2a_2, w2b_2, b2b_2,
                 w1_3, b1_3, w2a_3, b2a_3, w2b_3, b2b_3,
                 up32w, up32b, up21w, up21b,
                 a1, a2, a3, p32, p21,
                 o1, o2, o3):
    # TODO(synk): CoordAtt attention and BatchNorm of the reference MSFFBlock
    # are omitted (same as the previous version).
    feats = [f1_ref[...], f2_ref[...], f3_ref[...]]
    mems = [m1_ref, m2_ref, m3_ref]
    n_mem = m1_ref.shape[1]
    inv_d = [1.0 / (f.shape[0] * f.shape[2]) for f in feats]

    # ---- memory-bank scores: direct mean((f - m_k)^2), summed over levels ----
    scores = []
    for k in range(n_mem):
        s = None
        for f, m, inv in zip(feats, mems, inv_d):
            d = f.astype(ACC) - m[:, k:k + 1, :].astype(ACC)
            t = jnp.sum(d * d, axis=2, keepdims=True)       # [H, B, 1]
            t = jnp.sum(t, axis=0) * inv                    # [B, 1]
            s = t if s is None else s + t
        scores.append(s)

    # exclusive first-argmin masks (same tie-break as jnp.argmin)
    smin = scores[0]
    for s in scores[1:]:
        smin = jnp.minimum(smin, s)
    taken = jnp.zeros_like(smin)
    sel_masks = []
    for s in scores:
        mk = jnp.where((s <= smin) & (taken < 0.5), 1.0, 0.0)
        taken = taken + mk
        sel_masks.append(mk)

    # selected memory entry per level + squared differences (never leave VMEM)
    dsqs = []
    for f, m in zip(feats, mems):
        sel = None
        for k in range(n_mem):
            c = sel_masks[k][None] * m[:, k:k + 1, :].astype(ACC)
            sel = c if sel is None else sel + c
        d = f.astype(ACC) - sel
        dsqs.append(d * d)

    # ---- MSFF block: conv1x1(concat(diff^2, feat)) + ReLU -> conv3x3 + ReLU
    #      -> conv3x3 + ReLU (concat via split block-diag weights) ----
    def block(feat, dsq, w1, b1, w2a, b2a, w2b, b2b):
        h1 = _mm(dsq.astype(DTYPE), w1[0]) + _mm(feat, w1[1])
        h1 = jnp.maximum(h1 + b1[...], 0.0).astype(DTYPE)
        h2 = _conv3x3(h1, w2a, b2a).astype(DTYPE)
        return _conv3x3(h2, w2b, b2b).astype(DTYPE)

    f1k = block(feats[0], dsqs[0], w1_1, b1_1, w2a_1, b2a_1, w2b_1, b2b_1)
    f2k = block(feats[1], dsqs[1], w1_2, b1_2, w2a_2, b2a_2, w2b_2, b2b_2)
    f3k = block(feats[2], dsqs[2], w1_3, b1_3, w2a_3, b2a_3, w2b_3, b2b_3)

    # ---- cascaded attention masks (channel means via averaging matmuls) and
    #      top-down fusion with the folded nearest-up2 convs ----
    m3e = _mm(dsqs[2], a3[...])                               # [H3, B, W3*C3]
    o3[...] = (f3k.astype(ACC) * m3e).astype(o3.dtype)

    f2f = f2k.astype(ACC) + _upconv([f3k], [up32w], up32b, relu=True)
    m2e = _mm(dsqs[1], a2[...]) * _mm(_interleave_rows(m3e, m3e), p32[...])
    o2[...] = (f2f * m2e).astype(o2.dtype)

    f1f = f1k.astype(ACC) + _upconv([f2f.astype(DTYPE)], [up21w], up21b, relu=True)
    m1e = _mm(dsqs[0], a1[...]) * _mm(_interleave_rows(m2e, m2e), p21[...])
    o1[...] = (f1f * m1e).astype(o1.dtype)


def msff_apply(mp, feats, memory):
    f1, f2, f3 = feats
    outs = (jax.ShapeDtypeStruct(f1.shape, DTYPE),
            jax.ShapeDtypeStruct(f2.shape, DTYPE),
            jax.ShapeDtypeStruct(f3.shape, DTYPE))
    args = [f1, f2, f3, memory[0], memory[1], memory[2]]
    for bd in mp['blocks']:
        args += [bd['w1'], bd['b1'], bd['w2a'], bd['b2a'], bd['w2b'], bd['b2b']]
    args += [mp['up32w'], mp['up32b'], mp['up21w'], mp['up21b'],
             mp['a1'], mp['a2'], mp['a3'], mp['p32'], mp['p21']]
    return _pcall(_msff_kernel, outs, len(args))(*args)


# ----------------------------------------------------------------------------
# Kernel 3: decoder = 5 fused upsample+conv stages (skip concats via split
#           banded weights); lane-dense f32 mask output.
# ----------------------------------------------------------------------------

def _decoder_kernel(fout_ref, fin_ref, f1o_ref, f2o_ref, f3o_ref,
                    d3w, d3b, d2w, d2b, d1w, d1b, d0w, d0b, dfw, dfb,
                    o_ref):
    # TODO(synk): MemSeg uses bilinear interpolation; nearest-neighbour is used
    # here (folded exactly into the banded conv weights) as before.
    x = _upconv([fout_ref[...]], [d3w], d3b).astype(DTYPE)
    x = _upconv([x, f3o_ref[...]], [d2w[0], d2w[1]], d2b).astype(DTYPE)
    x = _upconv([x, f2o_ref[...]], [d1w[0], d1w[1]], d1b).astype(DTYPE)
    x = _upconv([x, f1o_ref[...]], [d0w[0], d0w[1]], d0b).astype(DTYPE)
    x = _upconv([x, fin_ref[...]], [dfw[0], dfw[1]], dfb, relu=False)
    o_ref[...] = x.astype(o_ref.dtype)


def decoder_apply(dp, f_out, f_in, msff_feats):
    f1o, f2o, f3o = msff_feats
    b = f_out.shape[1]
    out = jax.ShapeDtypeStruct((IMG_HW, b, IMG_HW * 2), ACC)
    args = [f_out, f_in, f1o, f2o, f3o,
            dp['d3w'], dp['d3b'], dp['d2w'], dp['d2b'], dp['d1w'], dp['d1b'],
            dp['d0w'], dp['d0b'], dp['dfw'], dp['dfb']]
    return _pcall(_decoder_kernel, out, len(args))(*args)


# ----------------------------------------------------------------------------
# Full forward
# ----------------------------------------------------------------------------

def fold_nchw(x):
    # [B, C, H, W] -> [H, B, W*C]
    x = jnp.transpose(x, (2, 0, 3, 1))
    return x.reshape(x.shape[0], x.shape[1], -1)


def memseg_forward(pp, memory, x_nchw):
    x = fold_nchw(x_nchw).astype(DTYPE)
    feats = encoder_apply(pp['enc'], x)
    f_in, f1, f2, f3, f_out = feats
    msff_feats = msff_apply(pp['msff'], (f1, f2, f3), memory)
    mask = decoder_apply(pp['dec'], f_out, f_in, msff_feats)   # [H, B, W*2] f32
    h, b, wc = mask.shape
    mask = mask.reshape(h, b, wc // 2, 2)
    return jnp.transpose(mask, (1, 3, 0, 2))                   # [B, 2, H, W]


# ----------------------------------------------------------------------------
# Deterministic raw parameter init (same structure as the previous version)
# and the one-time preprocessing into folded / banded form.
# ----------------------------------------------------------------------------

def _conv_init(key, kh, kw, cin, cout):
    scale = float(kh * kw * cin) ** -0.5
    w = jax.random.normal(key, (kh, kw, cin, cout), jnp.float32) * scale
    b = jnp.zeros((cout,), jnp.float32)
    return w, b


def init_params(key):
    ks = iter(jax.random.split(key, 64))
    nk = lambda: next(ks)

    enc = {}
    cin = IMG_C
    for i, cout in enumerate(ENC_CHANNELS):
        enc[f'w{i}'], enc[f'b{i}'] = _conv_init(nk(), 3, 3, cin, cout)
        cin = cout

    msff_p = {}
    for name, c in zip(['blk1', 'blk2', 'blk3'], [16, 32, 64]):
        blk = {}
        blk['w1'], blk['b1'] = _conv_init(nk(), 1, 1, c, c)
        blk['w2a'], blk['b2a'] = _conv_init(nk(), 3, 3, c, c // 2)
        blk['w2b'], blk['b2b'] = _conv_init(nk(), 3, 3, c // 2, c // 2)
        msff_p[name] = blk
    msff_p['up32_w'], msff_p['up32_b'] = _conv_init(nk(), 3, 3, 32, 16)
    msff_p['up21_w'], msff_p['up21_b'] = _conv_init(nk(), 3, 3, 16, 8)

    dec = {}
    dec['w3'], dec['b3'] = _conv_init(nk(), 3, 3, 64, 32)
    dec['w2'], dec['b2'] = _conv_init(nk(), 3, 3, 64, 16)
    dec['w1'], dec['b1'] = _conv_init(nk(), 3, 3, 32, 8)
    dec['w0'], dec['b0'] = _conv_init(nk(), 3, 3, 16, 8)
    dec['wf'], dec['bf'] = _conv_init(nk(), 3, 3, 16, 2)

    return {'encoder': enc, 'msff': msff_p, 'decoder': dec}


def preprocess_params(raw):
    """Build all folded / banded weights once at init (review: hoist)."""
    enc = {'w': [], 'b': [], 'dims': []}
    width = IMG_HW
    for i, cout in enumerate(ENC_CHANNELS):
        enc['w'].append(band_stride2(raw['encoder'][f'w{i}'], width))
        width = width // 2
        enc['b'].append(fold_bias(raw['encoder'][f'b{i}'], width))
        enc['dims'].append((width, width * cout))

    mr = raw['msff']
    blocks = []
    for name, wl, cf in zip(['blk1', 'blk2', 'blk3'], [16, 8, 4], [8, 16, 32]):
        blk = mr[name]
        c = 2 * cf
        w1 = blk['w1'].reshape(c, c)
        blocks.append(dict(
            w1=jnp.stack([diag_1x1(w1[:cf], wl), diag_1x1(w1[cf:], wl)]),
            b1=fold_bias(blk['b1'], wl),
            w2a=band_stride1(blk['w2a'], wl), b2a=fold_bias(blk['b2a'], wl),
            w2b=band_stride1(blk['w2b'], wl), b2b=fold_bias(blk['b2b'], wl)))
    msff = dict(
        blocks=blocks,
        up32w=band_upconv(mr['up32_w'], 4), up32b=fold_bias(mr['up32_b'], 8),
        up21w=band_upconv(mr['up21_w'], 8), up21b=fold_bias(mr['up21_b'], 16),
        a1=avg_mat(16, 8), a2=avg_mat(8, 16), a3=avg_mat(4, 32),
        p32=parent_mat(4, 32, 8, 16), p21=parent_mat(8, 16, 16, 8))

    dr = raw['decoder']

    def split_up(w, c_split, wc):
        return jnp.stack([band_upconv(w[:, :, :c_split], wc),
                          band_upconv(w[:, :, c_split:], wc)])

    dec = dict(
        d3w=band_upconv(dr['w3'], 2), d3b=fold_bias(dr['b3'], 4),
        d2w=split_up(dr['w2'], 32, 4), d2b=fold_bias(dr['b2'], 8),
        d1w=split_up(dr['w1'], 16, 8), d1b=fold_bias(dr['b1'], 16),
        d0w=split_up(dr['w0'], 8, 16), d0b=fold_bias(dr['b0'], 32),
        dfw=split_up(dr['wf'], 8, 32), dfb=fold_bias(dr['bf'], 64))

    return dict(enc=enc, msff=msff, dec=dec)


# ----------------------------------------------------------------------------
# Driver
# ----------------------------------------------------------------------------

if __name__ == "__main__":
    key = jax.random.PRNGKey(0)
    k_params, k_mem, k_x = jax.random.split(key, 3)

    raw_params = init_params(k_params)
    pp = preprocess_params(raw_params)

    # Memory bank: encoder features of N_MEMORY deterministic "normal" samples
    # (levels 1..3, already in the folded [H, K, W*C] layout the kernel wants).
    normal_imgs = jax.random.normal(
        k_mem, (N_MEMORY, IMG_C, IMG_HW, IMG_HW), jnp.float32)
    mem_feats = jax.jit(
        lambda imgs: encoder_apply(pp['enc'], fold_nchw(imgs).astype(DTYPE))
    )(normal_imgs)
    memory = [mem_feats[1], mem_feats[2], mem_feats[3]]

    # PyTorch-style NCHW input image batch.
    x = jax.random.normal(k_x, (2, IMG_C, IMG_HW, IMG_HW), jnp.float32)

    fwd = jax.jit(functools.partial(memseg_forward, pp, memory))
    out = jax.block_until_ready(fwd(x))

    assert out.shape == (2, 2, IMG_HW, IMG_HW), out.shape
    assert out.dtype == jnp.float32
    print("KERNEL_OK")
</pallas_src>

<mosaic_0001>
module attributes {stable_mosaic.version = 11 : i64} {
  func.func @_encoder_kernel(%arg0: memref<64x4x192xbf16, #tpu.memory_space<vmem>>, %arg1: memref<3x192x256xbf16, #tpu.memory_space<vmem>>, %arg2: memref<1x1x256xf32, #tpu.memory_space<vmem>>, %arg3: memref<3x256x128xbf16, #tpu.memory_space<vmem>>, %arg4: memref<1x1x128xf32, #tpu.memory_space<vmem>>, %arg5: memref<3x128x128xbf16, #tpu.memory_space<vmem>>, %arg6: memref<1x1x128xf32, #tpu.memory_space<vmem>>, %arg7: memref<3x128x128xbf16, #tpu.memory_space<vmem>>, %arg8: memref<1x1x128xf32, #tpu.memory_space<vmem>>, %arg9: memref<3x128x128xbf16, #tpu.memory_space<vmem>>, %arg10: memref<1x1x128xf32, #tpu.memory_space<vmem>>, %arg11: memref<32x4x256xbf16, #tpu.memory_space<vmem>>, %arg12: memref<16x4x128xbf16, #tpu.memory_space<vmem>>, %arg13: memref<8x4x128xbf16, #tpu.memory_space<vmem>>, %arg14: memref<4x4x128xbf16, #tpu.memory_space<vmem>>, %arg15: memref<2x4x128xbf16, #tpu.memory_space<vmem>>) attributes {dimension_semantics = [], scalar_prefetch = 0 : i64, scratch_operands = 0 : i64, tpu.core_type = #tpu.core_type<tc>} {
    %c0 = arith.constant 0 : index
    %c0_0 = arith.constant 0 : index
    %c0_1 = arith.constant 0 : index
    %0 = vector.load %arg0[%c0, %c0_0, %c0_1] : memref<64x4x192xbf16, #tpu.memory_space<vmem>>, vector<64x4x192xbf16>
    %cst = arith.constant 0.000000e+00 : bf16
    %1 = vector.broadcast %cst : bf16 to vector<1x4x192xbf16>
    %2 = tpu.concatenate %1, %0, %1 in 0 : vector<1x4x192xbf16>, vector<64x4x192xbf16>, vector<1x4x192xbf16> -> vector<66x4x192xbf16>
    %3 = vector.shape_cast %2 : vector<66x4x192xbf16> to vector<33x2x4x192xbf16>
    %4 = vector.extract_strided_slice %3 {offsets = [0, 0, 0, 0], sizes = [32, 1, 4, 192], strides = [1, 1, 1, 1]} : vector<33x2x4x192xbf16> to vector<32x1x4x192xbf16>
    %5 = vector.shape_cast %4 : vector<32x1x4x192xbf16> to vector<32x4x192xbf16>
    %c0_2 = arith.constant 0 : index
    %c0_3 = arith.constant 0 : index
    %c0_4 = arith.constant 0 : index
    %6 = vector.load %arg1[%c0_2, %c0_3, %c0_4] : memref<3x192x256xbf16, #tpu.memory_space<vmem>>, vector<1x192x256xbf16>
    %7 = vector.shape_cast %6 : vector<1x192x256xbf16> to vector<192x256xbf16>
    %8 = vector.shape_cast %5 : vector<32x4x192xbf16> to vector<128x192xbf16>
    %cst_5 = arith.constant dense<0.000000e+00> : vector<128x256xf32>
    %9 = tpu.matmul %8, %7, %cst_5 {dimension_numbers = #tpu.dot_dimension_numbers<[1], [0], [0], [1], [0, 0, 1, 1], [], []>} : vector<128x192xbf16>, vector<192x256xbf16>, vector<128x256xf32> -> vector<128x256xf32>
    %10 = vector.shape_cast %9 : vector<128x256xf32> to vector<32x4x256xf32>
    %11 = vector.extract_strided_slice %3 {offsets = [0, 1, 0, 0], sizes = [32, 1, 4, 192], strides = [1, 1, 1, 1]} : vector<33x2x4x192xbf16> to vector<32x1x4x192xbf16>
    %12 = vector.shape_cast %11 : vector<32x1x4x192xbf16> to vector<32x4x192xbf16>
    %c1 = arith.constant 1 : index
    %c0_6 = arith.constant 0 : index
    %c0_7 = arith.constant 0 : index
    %13 = vector.load %arg1[%c1, %c0_6, %c0_7] : memref<3x192x256xbf16, #tpu.memory_space<vmem>>, vector<1x192x256xbf16>
    %14 = vector.shape_cast %13 : vector<1x192x256xbf16> to vector<192x256xbf16>
    %15 = vector.shape_cast %12 : vector<32x4x192xbf16> to vector<128x192xbf16>
    %cst_8 = arith.constant dense<0.000000e+00> : vector<128x256xf32>
    %16 = tpu.matmul %15, %14, %cst_8 {dimension_numbers = #tpu.dot_dimension_numbers<[1], [0], [0], [1], [0, 0, 1, 1], [], []>} : vector<128x192xbf16>, vector<192x256xbf16>, vector<128x256xf32> -> vector<128x256xf32>
    %17 = vector.shape_cast %16 : vector<128x256xf32> to vector<32x4x256xf32>
    %18 = arith.addf %10, %17 : vector<32x4x256xf32>
    %19 = vector.extract_strided_slice %3 {offsets = [1, 0, 0, 0], sizes = [32, 1, 4, 192], strides = [1, 1, 1, 1]} : vector<33x2x4x192xbf16> to vector<32x1x4x192xbf16>
    %20 = vector.shape_cast %19 : vector<32x1x4x192xbf16> to vector<32x4x192xbf16>
    %c2 = arith.constant 2 : index
    %c0_9 = arith.constant 0 : index
    %c0_10 = arith.constant 0 : index
    %21 = vector.load %arg1[%c2, %c0_9, %c0_10] : memref<3x192x256xbf16, #tpu.memory_space<vmem>>, vector<1x192x256xbf16>
    %22 = vector.shape_cast %21 : vector<1x192x256xbf16> to vector<192x256xbf16>
    %23 = vector.shape_cast %20 : vector<32x4x192xbf16> to vector<128x192xbf16>
    %cst_11 = arith.constant dense<0.000000e+00> : vector<128x256xf32>
    %24 = tpu.matmul %23, %22, %cst_11 {dimension_numbers = #tpu.dot_dimension_numbers<[1], [0], [0], [1], [0, 0, 1, 1], [], []>} : vector<128x192xbf16>, vector<192x256xbf16>, vector<128x256xf32> -> vector<128x256xf32>
    %25 = vector.shape_cast %24 : vector<128x256xf32> to vector<32x4x256xf32>
    %26 = arith.addf %18, %25 : vector<32x4x256xf32>
    %c0_12 = arith.constant 0 : index
    %c0_13 = arith.constant 0 : index
    %c0_14 = arith.constant 0 : index
    %27 = vector.load %arg2[%c0_12, %c0_13, %c0_14] : memref<1x1x256xf32, #tpu.memory_space<vmem>>, vector<1x1x256xf32>
    %28 = vector.broadcast %27 : vector<1x1x256xf32> to vector<32x4x256xf32>
    %29 = arith.addf %26, %28 : vector<32x4x256xf32>
    %cst_15 = arith.constant 0.000000e+00 : f32
    %30 = vector.broadcast %cst_15 : f32 to vector<32x4x256xf32>
    %31 = arith.maximumf %29, %30 : vector<32x4x256xf32>
    %32 = arith.truncf %31 : vector<32x4x256xf32> to vector<32x4x256xbf16>
    %c0_16 = arith.constant 0 : index
    %c0_17 = arith.constant 0 : index
    %c0_18 = arith.constant 0 : index
    %33 = vector.load %arg11[%c0_16, %c0_17, %c0_18] : memref<32x4x256xbf16, #tpu.memory_space<vmem>>, vector<32x4x256xbf16>
    tpu.vector_store %arg11[%c0_16, %c0_17, %c0_18], %32 {strides = array<i32>} : memref<32x4x256xbf16, #tpu.memory_space<vmem>>, vector<32x4x256xbf16>,
    %cst_19 = arith.constant 0.000000e+00 : bf16
    %34 = vector.broadcast %cst_19 : bf16 to vector<1x4x256xbf16>
    %35 = tpu.concatenate %34, %32, %34 in 0 : vector<1x4x256xbf16>, vector<32x4x256xbf16>, vector<1x4x256xbf16> -> vector<34x4x256xbf16>
    %36 = vector.shape_cast %35 : vector<34x4x256xbf16> to vector<17x2x4x256xbf16>
    %37 = vector.extract_strided_slice %36 {offsets = [0, 0, 0, 0], sizes = [16, 1, 4, 256], strides = [1, 1, 1, 1]} : vector<17x2x4x256xbf16> to vector<16x1x4x256xbf16>
    %38 = vector.shape_cast %37 : vector<16x1x4x256xbf16> to vector<16x4x256xbf16>
    %c0_20 = arith.constant 0 : index
    %c0_21 = arith.constant 0 : index
    %c0_22 = arith.constant 0 : index
    %39 = vector.load %arg3[%c0_20, %c0_21, %c0_22] : memref<3x256x128xbf16, #tpu.memory_space<vmem>>, vector<1x256x128xbf16>
    %40 = vector.shape_cast %39 : vector<1x256x128xbf16> to vector<256x128xbf16>
    %41 = vector.shape_cast %38 : vector<16x4x256xbf16> to vector<64x256xbf16>
    %cst_23 = arith.constant dense<0.000000e+00> : vector<64x128xf32>
    %42 = tpu.matmul %41, %40, %cst_23 {dimension_numbers = #tpu.dot_dimension_numbers<[1], [0], [0], [1], [0, 0, 1, 1], [], []>} : vector<64x256xbf16>, vector<256x128xbf16>, vector<64x128xf32> -> vector<64x128xf32>
    %43 = vector.shape_cast %42 : vector<64x128xf32> to vector<16x4x128xf32>
    %44 = vector.extract_strided_slice %36 {offsets = [0, 1, 0, 0], sizes = [16, 1, 4, 256], strides = [1, 1, 1, 1]} : vector<17x2x4x256xbf16> to vector<16x1x4x256xbf16>
    %45 = vector.shape_cast %44 : vector<16x1x4x256xbf16> to vector<16x4x256xbf16>
    %c1_24 = arith.constant 1 : index
    %c0_25 = arith.constant 0 : index
    %c0_26 = arith.constant 0 : index
    %46 = vector.load %arg3[%c1_24, %c0_25, %c0_26] : memref<3x256x128xbf16, #tpu.memory_space<vmem>>, vector<1x256x128xbf16>
    %47 = vector.shape_cast %46 : vector<1x256x128xbf16> to vector<256x128xbf16>
    %48 = vector.shape_cast %45 : vector<16x4x256xbf16> to vector<64x256xbf16>
    %cst_27 = arith.constant dense<0.000000e+00> : vector<64x128xf32>
    %49 = tpu.matmul %48, %47, %cst_27 {dimension_numbers = #tpu.dot_dimension_numbers<[1], [0], [0], [1], [0, 0, 1, 1], [], []>} : vector<64x256xbf16>, vector<256x128xbf16>, vector<64x128xf32> -> vector<64x128xf32>
    %50 = vector.shape_cast %49 : vector<64x128xf32> to vector<16x4x128xf32>
    %51 = arith.addf %43, %50 : vector<16x4x128xf32>
    %52 = vector.extract_strided_slice %36 {offsets = [1, 0, 0, 0], sizes = [16, 1, 4, 256], strides = [1, 1, 1, 1]} : vector<17x2x4x256xbf16> to vector<16x1x4x256xbf16>
    %53 = vector.shape_cast %52 : vector<16x1x4x256xbf16> to vector<16x4x256xbf16>
    %c2_28 = arith.constant 2 : index
    %c0_29 = arith.constant 0 : index
    %c0_30 = arith.constant 0 : index
    %54 = vector.load %arg3[%c2_28, %c0_29, %c0_30] : memref<3x256x128xbf16, #tpu.memory_space<vmem>>, vector<1x256x128xbf16>
    %55 = vector.shape_cast %54 : vector<1x256x128xbf16> to vector<256x128xbf16>
    %56 = vector.shape_cast %53 : vector<16x4x256xbf16> to vector<64x256xbf16>
    %cst_31 = arith.constant dense<0.000000e+00> : vector<64x128xf32>
    %57 = tpu.matmul %56, %55, %cst_31 {dimension_numbers = #tpu.dot_dimension_numbers<[1], [0], [0], [1], [0, 0, 1, 1], [], []>} : vector<64x256xbf16>, vector<256x128xbf16>, vector<64x128xf32> -> vector<64x128xf32>
    %58 = vector.shape_cast %57 : vector<64x128xf32> to vector<16x4x128xf32>
    %59 = arith.addf %51, %58 : vector<16x4x128xf32>
    %c0_32 = arith.constant 0 : index
    %c0_33 = arith.constant 0 : index
    %c0_34 = arith.constant 0 : index
    %60 = vector.load %arg4[%c0_32, %c0_33, %c0_34] : memref<1x1x128xf32, #tpu.memory_space<vmem>>, vector<1x1x128xf32>
    %61 = vector.broadcast %60 : vector<1x1x128xf32> to vector<16x4x128xf32>
    %62 = arith.addf %59, %61 : vector<16x4x128xf32>
    %cst_35 = arith.constant 0.000000e+00 : f32
    %63 = vector.broadcast %cst_35 : f32 to vector<16x4x128xf32>
    %64 = arith.maximumf %62, %63 : vector<16x4x128xf32>
    %65 = arith.truncf %64 : vector<16x4x128xf32> to vector<16x4x128xbf16>
    %c0_36 = arith.constant 0 : index
    %c0_37 = arith.constant 0 : index
    %c0_38 = arith.constant 0 : index
    %66 = vector.load %arg12[%c0_36, %c0_37, %c0_38] : memref<16x4x128xbf16, #tpu.memory_space<vmem>>, vector<16x4x128xbf16>
    tpu.vector_store %arg12[%c0_36, %c0_37, %c0_38], %65 {strides = array<i32>} : memref<16x4x128xbf16, #tpu.memory_space<vmem>>, vector<16x4x128xbf16>,
    %cst_39 = arith.constant 0.000000e+00 : bf16
    %67 = vector.broadcast %cst_39 : bf16 to vector<1x4x128xbf16>
    %68 = tpu.concatenate %67, %65, %67 in 0 : vector<1x4x128xbf16>, vector<16x4x128xbf16>, vector<1x4x128xbf16> -> vector<18x4x128xbf16>
    %69 = vector.shape_cast %68 : vector<18x4x128xbf16> to vector<9x2x4x128xbf16>
    %70 = vector.extract_strided_slice %69 {offsets = [0, 0, 0, 0], sizes = [8, 1, 4, 128], strides = [1, 1, 1, 1]} : vector<9x2x4x128xbf16> to vector<8x1x4x128xbf16>
    %71 = vector.shape_cast %70 : vector<8x1x4x128xbf16> to vector<8x4x128xbf16>
    %c0_40 = arith.constant 0 : index
    %c0_41 = arith.constant 0 : index
    %c0_42 = arith.constant 0 : index
    %72 = vector.load %arg5[%c0_40, %c0_41, %c0_42] : memref<3x128x128xbf16, #tpu.memory_space<vmem>>, vector<1x128x128xbf16>
    %73 = vector.shape_cast %72 : vector<1x128x128xbf16> to vector<128x128xbf16>
    %74 = vector.shape_cast %71 : vector<8x4x128xbf16> to vector<32x128xbf16>
    %cst_43 = arith.constant dense<0.000000e+00> : vector<32x128xf32>
    %75 = tpu.matmul %74, %73, %cst_43 {dimension_numbers = #tpu.dot_dimension_numbers<[1], [0], [0], [1], [0, 0, 1, 1], [], []>} : vector<32x128xbf16>, vector<128x128xbf16>, vector<32x128xf32> -> vector<32x128xf32>
    %76 = vector.shape_cast %75 : vector<32x128xf32> to vector<8x4x128xf32>
    %77 = vector.extract_strided_slice %69 {offsets = [0, 1, 0, 0], sizes = [8, 1, 4, 128], strides = [1, 1, 1, 1]} : vector<9x2x4x128xbf16> to vector<8x1x4x128xbf16>
    %78 = vector.shape_cast %77 : vector<8x1x4x128xbf16> to vector<8x4x128xbf16>
    %c1_44 = arith.constant 1 : index
    %c0_45 = arith.constant 0 : index
    %c0_46 = arith.constant 0 : index
    %79 = vector.load %arg5[%c1_44, %c0_45, %c0_46] : memref<3x128x128xbf16, #tpu.memory_space<vmem>>, vector<1x128x128xbf16>
    %80 = vector.shape_cast %79 : vector<1x128x128xbf16> to vector<128x128xbf16>
    %81 = vector.shape_cast %78 : vector<8x4x128xbf16> to vector<32x128xbf16>
    %cst_47 = arith.constant dense<0.000000e+00> : vector<32x128xf32>
    %82 = tpu.matmul %81, %80, %cst_47 {dimension_numbers = #tpu.dot_dimension_numbers<[1], [0], [0], [1], [0, 0, 1, 1], [], []>} : vector<32x128xbf16>, vector<128x128xbf16>, vector<32x128xf32> -> vector<32x128xf32>
    %83 = vector.shape_cast %82 : vector<32x128xf32> to vector<8x4x128xf32>
    %84 = arith.addf %76, %83 : vector<8x4x128xf32>
    %85 = vector.extract_strided_slice %69 {offsets = [1, 0, 0, 0], sizes = [8, 1, 4, 128], strides = [1, 1, 1, 1]} : vector<9x2x4x128xbf16> to vector<8x1x4x128xbf16>
    %86 = vector.shape_cast %85 : vector<8x1x4x128xbf16> to vector<8x4x128xbf16>
    %c2_48 = arith.constant 2 : index
    %c0_49 = arith.constant 0 : index
    %c0_50 = arith.constant 0 : index
    %87 = vector.load %arg5[%c2_48, %c0_49, %c0_50] : memref<3x128x128xbf16, #tpu.memory_space<vmem>>, vector<1x128x128xbf16>
    %88 = vector.shape_cast %87 : vector<1x128x128xbf16> to vector<128x128xbf16>
    %89 = vector.shape_cast %86 : vector<8x4x128xbf16> to vector<32x128xbf16>
    %cst_51 = arith.constant dense<0.000000e+00> : vector<32x128xf32>
    %90 = tpu.matmul %89, %88, %cst_51 {dimension_numbers = #tpu.dot_dimension_numbers<[1], [0], [0], [1], [0, 0, 1, 1], [], []>} : vector<32x128xbf16>, vector<128x128xbf16>, vector<32x128xf32> -> vector<32x128xf32>
    %91 = vector.shape_cast %90 : vector<32x128xf32> to vector<8x4x128xf32>
    %92 = arith.addf %84, %91 : vector<8x4x128xf32>
    %c0_52 = arith.constant 0 : index
    %c0_53 = arith.constant 0 : index
    %c0_54 = arith.constant 0 : index
    %93 = vector.load %arg6[%c0_52, %c0_53, %c0_54] : memref<1x1x128xf32, #tpu.memory_space<vmem>>, vector<1x1x128xf32>
    %94 = vector.broadcast %93 : vector<1x1x128xf32> to vector<8x4x128xf32>
    %95 = arith.addf %92, %94 : vector<8x4x128xf32>
    %cst_55 = arith.constant 0.000000e+00 : f32
    %96 = vector.broadcast %cst_55 : f32 to vector<8x4x128xf32>
    %97 = arith.maximumf %95, %96 : vector<8x4x128xf32>
    %98 = arith.truncf %97 : vector<8x4x128xf32> to vector<8x4x128xbf16>
    %c0_56 = arith.constant 0 : index
    %c0_57 = arith.constant 0 : index
    %c0_58 = arith.constant 0 : index
    %99 = vector.load %arg13[%c0_56, %c0_57, %c0_58] : memref<8x4x128xbf16, #tpu.memory_space<vmem>>, vector<8x4x128xbf16>
    tpu.vector_store %arg13[%c0_56, %c0_57, %c0_58], %98 {strides = array<i32>} : memref<8x4x128xbf16, #tpu.memory_space<vmem>>, vector<8x4x128xbf16>,
    %cst_59 = arith.constant 0.000000e+00 : bf16
    %100 = vector.broadcast %cst_59 : bf16 to vector<1x4x128xbf16>
    %101 = tpu.concatenate %100, %98, %100 in 0 : vector<1x4x128xbf16>, vector<8x4x128xbf16>, vector<1x4x128xbf16> -> vector<10x4x128xbf16>
    %102 = vector.shape_cast %101 : vector<10x4x128xbf16> to vector<5x2x4x128xbf16>
    %103 = vector.extract_strided_slice %102 {offsets = [0, 0, 0, 0], sizes = [4, 1, 4, 128], strides = [1, 1, 1, 1]} : vector<5x2x4x128xbf16> to vector<4x1x4x128xbf16>
    %104 = vector.shape_cast %103 : vector<4x1x4x128xbf16> to vector<4x4x128xbf16>
    %c0_60 = arith.constant 0 : index
    %c0_61 = arith.constant 0 : index
    %c0_62 = arith.constant 0 : index
    %105 = vector.load %arg7[%c0_60, %c0_61, %c0_62] : memref<3x128x128xbf16, #tpu.memory_space<vmem>>, vector<1x128x128xbf16>
    %106 = vector.shape_cast %105 : vector<1x128x128xbf16> to vector<128x128xbf16>
    %107 = vector.shape_cast %104 : vector<4x4x128xbf16> to vector<16x128xbf16>
    %cst_63 = arith.constant dense<0.000000e+00> : vector<16x128xf32>
    %108 = tpu.matmul %107, %106, %cst_63 {dimension_numbers = #tpu.dot_dimension_numbers<[1], [0], [0], [1], [0, 0, 1, 1], [], []>} : vector<16x128xbf16>, vector<128x128xbf16>, vector<16x128xf32> -> vector<16x128xf32>
    %109 = vector.shape_cast %108 : vector<16x128xf32> to vector<4x4x128xf32>
    %110 = vector.extract_strided_slice %102 {offsets = [0, 1, 0, 0], sizes = [4, 1, 4, 128], strides = [1, 1, 1, 1]} : vector<5x2x4x128xbf16> to vector<4x1x4x128xbf16>
    %111 = vector.shape_cast %110 : vector<4x1x4x128xbf16> to vector<4x4x128xbf16>
    %c1_64 = arith.constant 1 : index
    %c0_65 = arith.constant 0 : index
    %c0_66 = arith.constant 0 : index
    %112 = vector.load %arg7[%c1_64, %c0_65, %c0_66] : memref<3x128x128xbf16, #tpu.memory_space<vmem>>, vector<1x128x128xbf16>
    %113 = vector.shape_cast %112 : vector<1x128x128xbf16> to vector<128x128xbf16>
    %114 = vector.shape_cast %111 : vector<4x4x128xbf16> to vector<16x128xbf16>
    %cst_67 = arith.constant dense<0.000000e+00> : vector<16x128xf32>
    %115 = tpu.matmul %114, %113, %cst_67 {dimension_numbers = #tpu.dot_dimension_numbers<[1], [0], [0], [1], [0, 0, 1, 1], [], []>} : vector<16x128xbf16>, vector<128x128xbf16>, vector<16x128xf32> -> vector<16x128xf32>
    %116 = vector.shape_cast %115 : vector<16x128xf32> to vector<4x4x128xf32>
    %117 = arith.addf %109, %116 : vector<4x4x128xf32>
    %118 = vector.extract_strided_slice %102 {offsets = [1, 0, 0, 0], sizes = [4, 1, 4, 128], strides = [1, 1, 1, 1]} : vector<5x2x4x128xbf16> to vector<4x1x4x128xbf16>
    %119 = vector.shape_cast %118 : vector<4x1x4x128xbf16> to vector<4x4x128xbf16>
    %c2_68 = arith.constant 2 : index
    %c0_69 = arith.constant 0 : index
    %c0_70 = arith.constant 0 : index
    %120 = vector.load %arg7[%c2_68, %c0_69, %c0_70] : memref<3x128x128xbf16, #tpu.memory_space<vmem>>, vector<1x128x128xbf16>
    %121 = vector.shape_cast %120 : vector<1x128x128xbf16> to vector<128x128xbf16>
    %122 = vector.shape_cast %119 : vector<4x4x128xbf16> to vector<16x128xbf16>
    %cst_71 = arith.constant dense<0.000000e+00> : vector<16x128xf32>
    %123 = tpu.matmul %122, %121, %cst_71 {dimension_numbers = #tpu.dot_dimension_numbers<[1], [0], [0], [1], [0, 0, 1, 1], [], []>} : vector<16x128xbf16>, vector<128x128xbf16>, vector<16x128xf32> -> vector<16x128xf32>
    %124 = vector.shape_cast %123 : vector<16x128xf32> to vector<4x4x128xf32>
    %125 = arith.addf %117, %124 : vector<4x4x128xf32>
    %c0_72 = arith.constant 0 : index
    %c0_73 = arith.constant 0 : index
    %c0_74 = arith.constant 0 : index
    %126 = vector.load %arg8[%c0_72, %c0_73, %c0_74] : memref<1x1x128xf32, #tpu.memory_space<vmem>>, vector<1x1x128xf32>
    %127 = vector.broadcast %126 : vector<1x1x128xf32> to vector<4x4x128xf32>
    %128 = arith.addf %125, %127 : vector<4x4x128xf32>
    %cst_75 = arith.constant 0.000000e+00 : f32
    %129 = vector.broadcast %cst_75 : f32 to vector<4x4x128xf32>
    %130 = arith.maximumf %128, %129 : vector<4x4x128xf32>
    %131 = arith.truncf %130 : vector<4x4x128xf32> to vector<4x4x128xbf16>
    %c0_76 = arith.constant 0 : index
    %c0_77 = arith.constant 0 : index
    %c0_78 = arith.constant 0 : index
    %132 = vector.load %arg14[%c0_76, %c0_77, %c0_78] : memref<4x4x128xbf16, #tpu.memory_space<vmem>>, vector<4x4x128xbf16>
    tpu.vector_store %arg14[%c0_76, %c0_77, %c0_78], %131 {strides = array<i32>} : memref<4x4x128xbf16, #tpu.memory_space<vmem>>, vector<4x4x128xbf16>,
    %cst_79 = arith.constant 0.000000e+00 : bf16
    %133 = vector.broadcast %cst_79 : bf16 to vector<1x4x128xbf16>
    %134 = tpu.concatenate %133, %131, %133 in 0 : vector<1x4x128xbf16>, vector<4x4x128xbf16>, vector<1x4x128xbf16> -> vector<6x4x128xbf16>
    %135 = vector.shape_cast %134 : vector<6x4x128xbf16> to vector<3x2x4x128xbf16>
    %136 = vector.extract_strided_slice %135 {offsets = [0, 0, 0, 0], sizes = [2, 1, 4, 128], strides = [1, 1, 1, 1]} : vector<3x2x4x128xbf16> to vector<2x1x4x128xbf16>
    %137 = vector.shape_cast %136 : vector<2x1x4x128xbf16> to vector<2x4x128xbf16>
    %c0_80 = arith.constant 0 : index
    %c0_81 = arith.constant 0 : index
    %c0_82 = arith.constant 0 : index
    %138 = vector.load %arg9[%c0_80, %c0_81, %c0_82] : memref<3x128x128xbf16, #tpu.memory_space<vmem>>, vector<1x128x128xbf16>
    %139 = vector.shape_cast %138 : vector<1x128x128xbf16> to vector<128x128xbf16>
    %140 = vector.shape_cast %137 : vector<2x4x128xbf16> to vector<8x128xbf16>
    %cst_83 = arith.constant dense<0.000000e+00> : vector<8x128xf32>
    %141 = tpu.matmul %140, %139, %cst_83 {dimension_numbers = #tpu.dot_dimension_numbers<[1], [0], [0], [1], [0, 0, 1, 1], [], []>} : vector<8x128xbf16>, vector<128x128xbf16>, vector<8x128xf32> -> vector<8x128xf32>
    %142 = vector.shape_cast %141 : vector<8x128xf32> to vector<2x4x128xf32>
    %143 = vector.extract_strided_slice %135 {offsets = [0, 1, 0, 0], sizes = [2, 1, 4, 128], strides = [1, 1, 1, 1]} : vector<3x2x4x128xbf16> to vector<2x1x4x128xbf16>
    %144 = vector.shape_cast %143 : vector<2x1x4x128xbf16> to vector<2x4x128xbf16>
    %c1_84 = arith.constant 1 : index
    %c0_85 = arith.constant 0 : index
    %c0_86 = arith.constant 0 : index
    %145 = vector.load %arg9[%c1_84, %c0_85, %c0_86] : memref<3x128x128xbf16, #tpu.memory_space<vmem>>, vector<1x128x128xbf16>
    %146 = vector.shape_cast %145 : vector<1x128x128xbf16> to vector<128x128xbf16>
    %147 = vector.shape_cast %144 : vector<2x4x128xbf16> to vector<8x128xbf16>
    %cst_87 = arith.constant dense<0.000000e+00> : vector<8x128xf32>
    %148 = tpu.matmul %147, %146, %cst_87 {dimension_numbers = #tpu.dot_dimension_numbers<[1], [0], [0], [1], [0, 0, 1, 1], [], []>} : vector<8x128xbf16>, vector<128x128xbf16>, vector<8x128xf32> -> vector<8x128xf32>
    %149 = vector.shape_cast %148 : vector<8x128xf32> to vector<2x4x128xf32>
    %150 = arith.addf %142, %149 : vector<2x4x128xf32>
    %151 = vector.extract_strided_slice %135 {offsets = [1, 0, 0, 0], sizes = [2, 1, 4, 128], strides = [1, 1, 1, 1]} : vector<3x2x4x128xbf16> to vector<2x1x4x128xbf16>
    %152 = vector.shape_cast %151 : vector<2x1x4x128xbf16> to vector<2x4x128xbf16>
    %c2_88 = arith.constant 2 : index
    %c0_89 = arith.constant 0 : index
    %c0_90 = arith.constant 0 : index
    %153 = vector.load %arg9[%c2_88, %c0_89, %c0_90] : memref<3x128x128xbf16, #tpu.memory_space<vmem>>, vector<1x128x128xbf16>
    %154 = vector.shape_cast %153 : vector<1x128x128xbf16> to vector<128x128xbf16>
    %155 = vector.shape_cast %152 : vector<2x4x128xbf16> to vector<8x128xbf16>
    %cst_91 = arith.constant dense<0.000000e+00> : vector<8x128xf32>
    %156 = tpu.matmul %155, %154, %cst_91 {dimension_numbers = #tpu.dot_dimension_numbers<[1], [0], [0], [1], [0, 0, 1, 1], [], []>} : vector<8x128xbf16>, vector<128x128xbf16>, vector<8x128xf32> -> vector<8x128xf32>
    %157 = vector.shape_cast %156 : vector<8x128xf32> to vector<2x4x128xf32>
    %158 = arith.addf %150, %157 : vector<2x4x128xf32>
    %c0_92 = arith.constant 0 : index
    %c0_93 = arith.constant 0 : index
    %c0_94 = arith.constant 0 : index
    %159 = vector.load %arg10[%c0_92, %c0_93, %c0_94] : memref<1x1x128xf32, #tpu.memory_space<vmem>>, vector<1x1x128xf32>
    %160 = vector.broadcast %159 : vector<1x1x128xf32> to vector<2x4x128xf32>
    %161 = arith.addf %158, %160 : vector<2x4x128xf32>
    %cst_95 = arith.constant 0.000000e+00 : f32
    %162 = vector.broadcast %cst_95 : f32 to vector<2x4x128xf32>
    %163 = arith.maximumf %161, %162 : vector<2x4x128xf32>
    %164 = arith.truncf %163 : vector<2x4x128xf32> to vector<2x4x128xbf16>
    %c0_96 = arith.constant 0 : index
    %c0_97 = arith.constant 0 : index
    %c0_98 = arith.constant 0 : index
    %165 = vector.load %arg15[%c0_96, %c0_97, %c0_98] : memref<2x4x128xbf16, #tpu.memory_space<vmem>>, vector<2x4x128xbf16>
    tpu.vector_store %arg15[%c0_96, %c0_97, %c0_98], %164 {strides = array<i32>} : memref<2x4x128xbf16, #tpu.memory_space<vmem>>, vector<2x4x128xbf16>,
    return
  }
}

</mosaic_0001>

<bundles_post_ra>
// kernel: _lambda_.1
= control target key start
LH: loop header
LB: loop body
LE: loop exit
PB: predicated region body
PF: predicated region fallthrough
CT: control target
= control target key end

     0   :  { %21 = vsyncpa [#allocation3], 0  ;;  %s8951_s0 = inlined_call_operand.vmem [shape: bf16[64,4,192], index: 0, kind: input, shape index: {}]   ;;  %s8952_s1 = inlined_call_operand.vmem [shape: bf16[3,192,256], index: 1, kind: input, shape index: {}]   ;;  %s8953_s2 = inlined_call_operand.vmem [shape: f32[1,1,256], index: 2, kind: input, shape index: {}]   ;;  %s8954_s3 = inlined_call_operand.vmem [shape: bf16[3,256,128], index: 3, kind: input, shape index: {}]   ;;  %s8955_s4 = inlined_call_operand.vmem [shape: f32[1,1,128], index: 4, kind: input, shape index: {}, may-alias: {4,6,8,10}]   ;;  %s8956_s5 = inlined_call_operand.vmem [shape: bf16[3,128,128], index: 5, kind: input, shape index: {}]   ;;  %s8957_s6 = inlined_call_operand.vmem [shape: f32[1,1,128], index: 6, kind: input, shape index: {}, may-alias: {4,6,8,10}]   ;;  %s8958_s7 = inlined_call_operand.vmem [shape: bf16[3,128,128], index: 7, kind: input, shape index: {}]   ;;  %s8959_s8 = inlined_call_operand.vmem [shape: f32[1,1,128], index: 8, kind: input, shape index: {}, may-alias: {4,6,8,10}]   ;;  %s8960_s9 = inlined_call_operand.vmem [shape: bf16[3,128,128], index: 9, kind: input, shape index: {}]   ;;  %s8961_s10 = inlined_call_operand.vmem [shape: f32[1,1,128], index: 10, kind: input, shape index: {}, may-alias: {4,6,8,10}]   ;;  %s8962_s11 = inlined_call_operand.hbm [shape: bf16[32,4,256], index: 11, kind: output, shape index: {0}]   ;;  %s8963_s12 = inlined_call_operand.hbm [shape: bf16[16,4,128], index: 12, kind: output, shape index: {1}]   ;;  %s8964_s13 = inlined_call_operand.hbm [shape: bf16[8,4,128], index: 13, kind: output, shape index: {2}]   ;;  %s8965_s14 = inlined_call_operand.hbm [shape: bf16[4,4,128], index: 14, kind: output, shape index: {3}]   ;;  %s8966_s15 = inlined_call_operand.hbm [shape: bf16[2,4,128], index: 15, kind: output, shape index: {4}]  }
   0x1   :  { %22 = vsyncpa [#allocation5], 0  ;;  %v6884_v0 = vld [vmem:[%s8952_s1 + $0x4] ss:$8 sps:$4 sm:$0xff]   ;;  %v6888_v2 = vld [vmem:[%s8952_s1] ss:$8 sps:$4 sm:$0xff]   ;;  %v716_v30 = vlaneseq }
   0x2   :  { %v6886_v1 = vld [vmem:[%s8952_s1 + $0xc4] ss:$8 sps:$4 sm:$0xff]   ;;  %1265 = vmatprep.subr.bf16.mxu0 %v6884_v0  ;;  %v6889_v3 = vld [vmem:[%s8952_s1 + $0xc0] ss:$8 sps:$4 sm:$0xff]   ;;  %v6890_v4 = vld [vmem:[%s8952_s1 + $0x14] ss:$8 sps:$4 sm:$0xff]  }
   0x3   :  { %2051 = vmatprep.subr.bf16.mxu1 %v6886_v1  ;;  %1266 = vmatpush1.bf16.msra.mxu0 %v6888_v2  ;;  %v6892_v5 = vld [vmem:[%s8952_s1 + $0xd4] ss:$8 sps:$4 sm:$0xff]   ;;  %v6894_v6 = vld [vmem:[%s8952_s1 + $0x10] ss:$8 sps:$4 sm:$0xff]   ;;  %v6896_v8 = vld [vmem:[%s8952_s1 + $0x24] ss:$8 sps:$4 sm:$0xff]  }
   0x4   :  { %2052 = vmatpush1.bf16.msra.mxu1 %v6889_v3  ;;  %1267 = vmatprep.subr.bf16.mxu0 %v6890_v4  ;;  %v6895_v7 = vld [vmem:[%s8952_s1 + $0xd0] ss:$8 sps:$4 sm:$0xff]   ;;  %v6898_v9 = vld [vmem:[%s8952_s1 + $0xe4] ss:$8 sps:$4 sm:$0xff]   ;;  %v6900_v10 = vld [vmem:[%s8952_s1 + $0x20] ss:$8 sps:$4 sm:$0xff]  }
   0x5   :  { %2053 = vmatprep.subr.bf16.mxu1 %v6892_v5  ;;  %v6901_v11 = vld [vmem:[%s8952_s1 + $0xe0] ss:$8 sps:$4 sm:$0xff]   ;;  %v6902_v12 = vld [vmem:[%s8952_s1 + $0x34] ss:$8 sps:$4 sm:$0xff]   ;;  %v6906_v14 = vld [vmem:[%s8952_s1 + $0x30] ss:$8 sps:$4 sm:$0xff]  }
   0x6   :  { %v6904_v13 = vld [vmem:[%s8952_s1 + $0xf4] ss:$8 sps:$4 sm:$0xff]   ;;  %v6907_v15 = vld [vmem:[%s8952_s1 + $0xf0] ss:$8 sps:$4 sm:$0xff]   ;;  %v6908_v16 = vld [vmem:[%s8952_s1 + $0x44] ss:$8 sps:$4 sm:$0xff]  }
   0x7   :  { %1268 = vmatpush1.bf16.msra.mxu0 %v6894_v6  ;;  %v6910_v17 = vld [vmem:[%s8952_s1 + $0x104] ss:$8 sps:$4 sm:$0xff]   ;;  %v6912_v18 = vld [vmem:[%s8952_s1 + $0x40] ss:$8 sps:$4 sm:$0xff]   ;;  %v6914_v20 = vld [vmem:[%s8952_s1 + $0x54] ss:$8 sps:$4 sm:$0xff]  }
   0x8   :  { %2054 = vmatpush1.bf16.msra.mxu1 %v6895_v7  ;;  %1269 = vmatprep.subr.bf16.mxu0 %v6896_v8  ;;  %v6913_v19 = vld [vmem:[%s8952_s1 + $0x100] ss:$8 sps:$4 sm:$0xff]   ;;  %v6916_v21 = vld [vmem:[%s8952_s1 + $0x114] ss:$8 sps:$4 sm:$0xff]   ;;  %v6918_v22 = vld [vmem:[%s8952_s1 + $0x50] ss:$8 sps:$4 sm:$0xff]  }
   0x9   :  { %2055 = vmatprep.subr.bf16.mxu1 %v6898_v9  ;;  %v6919_v23 = vld [vmem:[%s8952_s1 + $0x110] ss:$8 sps:$4 sm:$0xff]   ;;  %v6920_v24 = vld [vmem:[%s8952_s1 + $0x64] ss:$8 sps:$4 sm:$0xff]   ;;  %v6924_v26 = vld [vmem:[%s8952_s1 + $0x60] ss:$8 sps:$4 sm:$0xff]  }
   0xa   :  { %v6922_v25 = vld [vmem:[%s8952_s1 + $0x124] ss:$8 sps:$4 sm:$0xff]   ;;  %v6925_v27 = vld [vmem:[%s8952_s1 + $0x120] ss:$8 sps:$4 sm:$0xff]   ;;  %v7228_v28 = vmov 1983009808  }
   0xb   :  { %1270 = vmatpush1.bf16.msra.mxu0 %v6900_v10  ;;  %v714_v29 = vunpack.c.l.s4 %v7228_v28  ;;  %v6926_v31 = vld [vmem:[%s8952_s1 + $0x74] ss:$8 sps:$4 sm:$0xff]   ;;  %v6930_v33 = vld [vmem:[%s8952_s1 + $0x70] ss:$8 sps:$4 sm:$0xff]   ;;  %v7414_v35 = vshrl.u32 %v716_v30, 7  ;;  %v7229_v42 = vmov 0  }
   0xc   :  { %2056 = vmatpush1.bf16.msra.mxu1 %v6901_v11  ;;  %1271 = vmatprep.subr.bf16.mxu0 %v6902_v12  ;;  %v6928_v32 = vld [vmem:[%s8952_s1 + $0x134] ss:$8 sps:$4 sm:$0xff]   ;;  %v6931_v36 = vld [vmem:[%s8952_s1 + $0x130] ss:$8 sps:$4 sm:$0xff]   ;;  %v6932_v37 = vld [vmem:[%s8952_s1 + $0x84] ss:$8 sps:$4 sm:$0xff]   ;;  %v712_v43 = vcombine.low %v7229_v42, %v7229_v42 }
   0xd   :  { %2057 = vmatprep.subr.bf16.mxu1 %v6904_v13  ;;  %v715_v34 = vunpack.c.0.s8 %v714_v29  ;;  %v6934_v38 = vld [vmem:[%s8952_s1 + $0x144] ss:$8 sps:$4 sm:$0xff]   ;;  %v6936_v39 = vld [vmem:[%s8952_s1 + $0x80] ss:$8 sps:$4 sm:$0xff]   ;;  %v6938_v41 = vld [vmem:[%s8952_s1 + $0x94] ss:$8 sps:$4 sm:$0xff]  }
   0xe   :  { %v6937_v40 = vld [vmem:[%s8952_s1 + $0x140] ss:$8 sps:$4 sm:$0xff]   ;;  %v5914_v45 = vld.sshfl [vmem:[%s8951_s0 + $0x4] sm:$0x33 pattern:$0x76325410] }
   0xf   :  { %1272 = vmatpush1.bf16.msra.mxu0 %v6906_v14  ;;  %v7437_v44 = vsub.s32 %v715_v34, %v7414_v35  ;;  %v6940_v46 = vld [vmem:[%s8952_s1 + $0x154] ss:$8 sps:$4 sm:$0xff]   ;;  %v5916_v47 = vld.sshfl [vmem:[%s8951_s0 + $0xc] sm:$0x33 pattern:$0x76325410]  ;;  %v190_v48 = vcombine.high %v5914_v45, %v5914_v45 }
  0x10   :  { %2058 = vmatpush1.bf16.msra.mxu1 %v6907_v15  ;;  %1273 = vmatprep.subr.bf16.mxu0 %v6908_v16  ;;  %v6942_v49 = vld [vmem:[%s8952_s1 + $0x90] ss:$8 sps:$4 sm:$0xff]   ;;  %v5918_v51 = vld.sshfl [vmem:[%s8951_s0 + $0x14] sm:$0x33 pattern:$0x76325410]  ;;  %v206_v52 = vcombine.high %v5916_v47, %v5916_v47 }
  0x11   :  { %2059 = vmatprep.subr.bf16.mxu1 %v6910_v17  ;;  %v6943_v50 = vld [vmem:[%s8952_s1 + $0x150] ss:$8 sps:$4 sm:$0xff]   ;;  %v5920_v53 = vld.sshfl [vmem:[%s8951_s0 + $0x1c] sm:$0x33 pattern:$0x76325410]  ;;  %v222_v54 = vcombine.high %v5918_v51, %v5918_v51  ;;  %v7461_v55 = vrot.slane %v712_v43, %v7437_v44  ;;  %v720_v56 = vcombine.low %v5914_v45, %v190_v48 }
  0x12   :  { %v6944_v57 = vld [vmem:[%s8952_s1 + $0xa4] ss:$8 sps:$4 sm:$0xff]   ;;  %v238_v58 = vcombine.high %v5920_v53, %v5920_v53  ;;  %v728_v59 = vcombine.low %v5916_v47, %v206_v52  ;;  %vm1240_vm0 = vcmask 523264   ;;  %v6948_v2 = vld [vmem:[%s8952_s1 + $0xa0] ss:$8 sps:$4 sm:$0xff]  }
  0x13   :  { %1274 = vmatpush1.bf16.msra.mxu0 %v6912_v18  ;;  %v5913_v60 = vld.sshfl [vmem:[%s8951_s0] sm:$0x33 pattern:$0x76325410]  ;;  %v6946_v61 = vld [vmem:[%s8952_s1 + $0x164] ss:$8 sps:$4 sm:$0xff]   ;;  %v7473_v62 = vrot.slane %v720_v56, %v7437_v44  ;;  %v736_v63 = vcombine.low %v5918_v51, %v222_v54 }
  0x14   :  { %2060 = vmatpush1.bf16.msra.mxu1 %v6913_v19  ;;  %1275 = vmatprep.subr.bf16.mxu0 %v6914_v20  ;;  %v5915_v0 = vld.sshfl [vmem:[%s8951_s0 + $0x8] sm:$0x33 pattern:$0x76325410]  ;;  %v182_v1 = vcombine.high %v5913_v60, %v5913_v60  ;;  %v7485_v4 = vrot.slane %v728_v59, %v7437_v44  ;;  %v744_v5 = vcombine.low %v5920_v53, %v238_v58  ;;  %v6950_v8 = vld [vmem:[%s8952_s1 + $0xb4] ss:$8 sps:$4 sm:$0xff]  }
  0x15   :  { %2061 = vmatprep.subr.bf16.mxu1 %v6916_v21  ;;  %v6949_v3 = vld [vmem:[%s8952_s1 + $0x160] ss:$8 sps:$4 sm:$0xff]   ;;  %v5917_v6 = vld.sshfl [vmem:[%s8951_s0 + $0x10] sm:$0x33 pattern:$0x76325410]  ;;  %v198_v7 = vcombine.high %v5915_v0, %v5915_v0  ;;  %v7494_v9 = vrot.slane %v736_v63, %v7437_v44  ;;  %v968_v10 = vcombine.low %v7461_v55, %v7473_v62 }
  0x16   :  { %v5919_v11 = vld.sshfl [vmem:[%s8951_s0 + $0x18] sm:$0x33 pattern:$0x76325410]  ;;  %v214_v12 = vcombine.high %v5917_v6, %v5917_v6  ;;  %v1499_v13 = vcombine.low %v5913_v60, %v182_v1  ;;  %v6952_v14 = vld [vmem:[%s8952_s1 + $0x174] ss:$8 sps:$4 sm:$0xff]   ;;  %v7505_v15 = vrot.slane %v744_v5, %v7437_v44  ;;  %v2325_v16 = vcombine.low %v7473_v62, %v7485_v4 }
  0x17   :  { %1276 = vmatpush1.bf16.msra.mxu0 %v6918_v22  ;;  %v230_v17 = vcombine.high %v5919_v11, %v5919_v11  ;;  %v5922_v18 = vld.sshfl [vmem:[%s8951_s0 + $0x24] sm:$0x33 pattern:$0x76325410]  ;;  %v969_v19 = vcombine.low %v7485_v4, %v7494_v9  ;;  %v976_v20 = vrot.slane %v968_v10, %v7437_v44  ;;  %v6955_v29 = vld [vmem:[%s8952_s1 + $0x170] ss:$8 sps:$4 sm:$0xff]  }
  0x18   :  { %2062 = vmatpush1.bf16.msra.mxu1 %v6919_v23  ;;  %1277 = vmatprep.subr.bf16.mxu0 %v6920_v24  ;;  %v1506_v21 = vrot.slane %v1499_v13, %v7437_v44  ;;  %v5924_v22 = vld.sshfl [vmem:[%s8951_s0 + $0x2c] sm:$0x33 pattern:$0x76325410]  ;;  %v6954_v23 = vld [vmem:[%s8952_s1 + $0xb0] ss:$8 sps:$4 sm:$0xff]   ;;  %v2326_v24 = vcombine.low %v7494_v9, %v7505_v15 }
  0x19   :  { %2063 = vmatprep.subr.bf16.mxu1 %v6922_v25  ;;  %v1507_v25 = vcombine.low %v5915_v0, %v198_v7  ;;  %v5926_v28 = vld.sshfl [vmem:[%s8951_s0 + $0x34] sm:$0x33 pattern:$0x76325410]  ;;  %v983_v30 = vrot.slane %v969_v19, %v7437_v44  ;;  %v6958_v43 = vld [vmem:[%s8952_s1 + $0x184] ss:$8 sps:$4 sm:$0xff]  }
  0x1a   :  { %v5921_v34 = vld.sshfl [vmem:[%s8951_s0 + $0x20] sm:$0x33 pattern:$0x76325410]  ;;  %v6961_v63 = vld [vmem:[%s8952_s1 + $0x194] ss:$8 sps:$4 sm:$0xff]  }
  0x1b   :  { %1278 = vmatpush1.bf16.msra.mxu0 %v6924_v26  ;;  %v1515_v26 = vcombine.low %v5917_v6, %v214_v12  ;;  %v5927_v51 = vld.sshfl [vmem:[%s8951_s0 + $0x38] sm:$0x33 pattern:$0x76325410]  ;;  %v246_v53 = vcombine.high %v5921_v34, %v5921_v34  ;;  %v6956_v59 = vld [vmem:[%s8952_s1 + $0x180] ss:$8 sps:$4 sm:$0xff]  }
  0x1c   :  { %2064 = vmatpush1.bf16.msra.mxu1 %v6925_v27  ;;  %1279 = vmatprep.subr.bf16.mxu0 %v6926_v31  ;;  %v1523_v27 = vcombine.low %v5919_v11, %v230_v17  ;;  %v254_v31 = vcombine.high %v5922_v18, %v5922_v18  ;;  %v5930_v5 = vld.sshfl [vmem:[%s8951_s0 + $0x44] sm:$0x33 pattern:$0x76325410]  ;;  %v6959_v19 = vld [vmem:[%s8952_s1 + $0x190] ss:$8 sps:$4 sm:$0xff]  }
  0x1d   :  { %2065 = vmatprep.subr.bf16.mxu1 %v6928_v32  ;;  %v270_v32 = vcombine.high %v5924_v22, %v5924_v22  ;;  %v5932_v11 = vld.sshfl [vmem:[%s8951_s0 + $0x4c] sm:$0x33 pattern:$0x76325410] }
  0x1e   :  { %v752_v45 = vcombine.low %v5922_v18, %v254_v31  ;;  %v5934_v18 = vld.sshfl [vmem:[%s8951_s0 + $0x54] sm:$0x33 pattern:$0x76325410] }
  0x1f   :  { %1280 = vmatpush1.bf16.msra.mxu0 %v6930_v33  ;;  %v286_v33 = vcombine.high %v5926_v28, %v5926_v28  ;;  %v350_v31 = vcombine.high %v5934_v18, %v5934_v18 }
  0x20   :  { %2066 = vmatpush1.bf16.msra.mxu1 %v6931_v36  ;;  %1281 = vmatprep.subr.bf16.mxu0 %v6932_v37  ;;  %v1514_v36 = vrot.slane %v1507_v25, %v7437_v44  ;;  %v1522_v37 = vrot.slane %v1515_v26, %v7437_v44  ;;  %v7551_v52 = vrot.slane %v752_v45, %v7437_v44 }
  0x21   :  { %2067 = vmatprep.subr.bf16.mxu1 %v6934_v38  ;;  %v1530_v38 = vrot.slane %v1523_v27, %v7437_v44  ;;  %v318_v27 = vcombine.high %v5930_v5, %v5930_v5 }
  0x22   :  { %v1755_v47 = vcombine.low %v1506_v21, %v1514_v36  ;;  %v986_v1 = vcombine.low %v7505_v15, %v7551_v52 }
  0x23   :  { %1282 = vmatpush1.bf16.msra.mxu0 %v6936_v39  ;;  %v5923_v39 = vld.sshfl [vmem:[%s8951_s0 + $0x28] sm:$0x33 pattern:$0x76325410]  ;;  %v1756_v48 = vcombine.low %v1522_v37, %v1530_v38 }
  0x24   :  { %2068 = vmatpush1.bf16.msra.mxu1 %v6937_v40  ;;  %1283 = vmatprep.subr.bf16.mxu0 %v6938_v41  ;;  %v985_v40 = vcombine.high %v976_v20, %v983_v30  ;;  %v984_v41 = vcombine.low %v976_v20, %v983_v30  ;;  %v262_v54 = vcombine.high %v5923_v39, %v5923_v39  ;;  %v6962_v38 = vld [vmem:[%s8952_s1 + $0x1a0] ss:$8 sps:$4 sm:$0xff]  }
  0x25   :  { %2069 = vmatprep.subr.bf16.mxu1 %v6940_v46  ;;  %v5925_v46 = vld.sshfl [vmem:[%s8951_s0 + $0x30] sm:$0x33 pattern:$0x76325410]  ;;  %v1770_v58 = vrot.slane %v1756_v48, %v7437_v44  ;;  %v994_v13 = vrot.slane %v986_v1, %v7437_v44  ;;  %v334_v30 = vcombine.high %v5932_v11, %v5932_v11 }
  0x26   :  { %6001 = vmatprep.mubr.msk.bf16.mxu0 %vm1240_vm0, %v985_v40  ;;  %v278_v56 = vcombine.high %v5925_v46, %v5925_v46  ;;  %v5933_v40 = vld.sshfl [vmem:[%s8951_s0 + $0x50] sm:$0x33 pattern:$0x76325410] }
  0x27   :  { %1284 = vmatpush1.bf16.msra.mxu0 %v6942_v49  ;;  %v760_v49 = vcombine.low %v5924_v22, %v270_v32  ;;  %v6964_v22 = vld [vmem:[%s8952_s1 + $0x1a4] ss:$8 sps:$4 sm:$0xff]   ;;  %v792_v45 = vcombine.low %v5932_v11, %v334_v30  ;;  %v5942_v11 = vld.sshfl [vmem:[%s8951_s0 + $0x74] sm:$0x33 pattern:$0x76325410] }
  0x28   :  { %2070 = vmatpush1.bf16.msra.mxu1 %v6943_v50  ;;  %1285 = vmatprep.subr.bf16.mxu0 %v6944_v57  ;;  %v768_v50 = vcombine.low %v5926_v28, %v286_v33  ;;  %v1763_v57 = vrot.slane %v1755_v47, %v7437_v44  ;;  %v1547_v10 = vcombine.low %v5925_v46, %v278_v56  ;;  %v5929_v28 = vld.sshfl [vmem:[%s8951_s0 + $0x40] sm:$0x33 pattern:$0x76325410] }
  0x29   :  { %2071 = vmatprep.subr.bf16.mxu1 %v6946_v61  ;;  %v7559_v60 = vrot.slane %v760_v49, %v7437_v44  ;;  %v5928_v61 = vld.sshfl [vmem:[%s8951_s0 + $0x3c] sm:$0x33 pattern:$0x76325410]  ;;  %v800_v46 = vcombine.low %v5934_v18, %v350_v31 }
  0x2a   :  { %v7568_v0 = vrot.slane %v768_v50, %v7437_v44  ;;  %v1772_v6 = vcombine.high %v1763_v57, %v1770_v58  ;;  %v1771_v7 = vcombine.low %v1763_v57, %v1770_v58  ;;  %v1554_v21 = vrot.slane %v1547_v10, %v7437_v44  ;;  %v5931_v33 = vld.sshfl [vmem:[%s8951_s0 + $0x48] sm:$0x33 pattern:$0x76325410]  ;;  %v6965_v10 = vld [vmem:[%s8952_s1 + $0x1b0] ss:$8 sps:$4 sm:$0xff]  }
  0x2b   :  { %1286 = vmatpush1.bf16.msra.mxu0 %v6948_v2  ;;  %v294_v2 = vcombine.high %v5927_v51, %v5927_v51  ;;  %v5935_v47 = vld.sshfl [vmem:[%s8951_s0 + $0x58] sm:$0x33 pattern:$0x76325410]  ;;  %v310_v50 = vcombine.high %v5929_v28, %v5929_v28  ;;  %v7630_v56 = vrot.slane %v800_v46, %v7437_v44  ;;  %v326_v57 = vcombine.high %v5931_v33, %v5931_v33 }
  0x2c   :  { %2072 = vmatpush1.bf16.msra.mxu1 %v6949_v3  ;;  %1287 = vmatprep.subr.bf16.mxu0 %v6950_v8  ;;  %v1531_v3 = vcombine.low %v5921_v34, %v246_v53  ;;  %v1539_v8 = vcombine.low %v5923_v39, %v262_v54  ;;  %v987_v12 = vcombine.low %v7559_v60, %v7568_v0  ;;  %v5936_v53 = vld.sshfl [vmem:[%s8951_s0 + $0x5c] sm:$0x33 pattern:$0x76325410] }
  0x2d   :  { %2073 = vmatprep.subr.bf16.mxu1 %v6952_v14  ;;  %v1555_v17 = vcombine.low %v5927_v51, %v294_v2  ;;  %6057 = vmatprep.mubr.msk.bf16.mxu1 %vm1240_vm0, %v1772_v6  ;;  %v784_v39 = vcombine.low %v5930_v5, %v318_v27  ;;  %v6967_v51 = vld [vmem:[%s8952_s1 + $0x1b4] ss:$8 sps:$4 sm:$0xff]   ;;  %v7627_v54 = vrot.slane %v792_v45, %v7437_v44 }
  0x2e   :  { %v1538_v14 = vrot.slane %v1531_v3, %v7437_v44  ;;  %v1546_v20 = vrot.slane %v1539_v8, %v7437_v44  ;;  %v1001_v25 = vrot.slane %v987_v12, %v7437_v44  ;;  %v342_v58 = vcombine.high %v5933_v40, %v5933_v40  ;;  %v5940_v3 = vld.sshfl [vmem:[%s8951_s0 + $0x6c] sm:$0x33 pattern:$0x76325410] }
  0x2f   :  { %1288 = vmatpush1.bf16.msra.mxu0 %v6954_v23  ;;  %v302_v23 = vcombine.high %v5928_v61, %v5928_v61  ;;  %v1562_v26 = vrot.slane %v1555_v17, %v7437_v44  ;;  %v7618_v49 = vrot.slane %v784_v39, %v7437_v44  ;;  %v358_v2 = vcombine.high %v5935_v47, %v5935_v47 }
  0x30   :  { %2074 = vmatpush1.bf16.msra.mxu1 %v6955_v29  ;;  %2621 = vmatprep.subr.bf16.mxu0 %v6958_v43  ;;  %v1773_v29 = vcombine.low %v1538_v14, %v1546_v20  ;;  %v1003_v34 = vcombine.high %v994_v13, %v1001_v25  ;;  %v1002_v37 = vcombine.low %v994_v13, %v1001_v25  ;;  %v6970_v14 = vld [vmem:[%s8952_s1 + $0x1c4] ss:$8 sps:$4 sm:$0xff]   ;;  %v6968_v25 = vld [vmem:[%s8952_s1 + $0x1c0] ss:$8 sps:$4 sm:$0xff]  }
  0x31   :  { %v776_v32 = vcombine.low %v5928_v61, %v302_v23  ;;  %v1774_v36 = vcombine.low %v1554_v21, %v1562_v26  ;;  %v1005_v5 = vcombine.low %v7627_v54, %v7630_v56  ;;  %v1563_v6 = vcombine.low %v5929_v28, %v310_v50  ;;  %v6971_v50 = vld [vmem:[%s8952_s1 + $0x1d0] ss:$8 sps:$4 sm:$0xff]  }
  0x32   :  { %1298 = vmatmul.mubr.bf16.vlgmr.msra.gmra.mrb[0].mxu0 %v984_v41  ;;  %v1781_v41 = vrot.slane %v1773_v29, %v7437_v44  ;;  %v1579_v8 = vcombine.low %v5933_v40, %v342_v58  ;;  %v1587_v13 = vcombine.low %v5935_v47, %v358_v2  ;;  %v366_v17 = vcombine.high %v5936_v53, %v5936_v53  ;;  %v5939_v29 = vld.sshfl [vmem:[%s8951_s0 + $0x68] sm:$0x33 pattern:$0x76325410] }
  0x33   :  { %2622 = vmatpush1.bf16.msra.mxu0 %v6956_v59  ;;  %2084 = vmatmul.mubr.bf16.vlgmr.msra.gmra.mrb[0].mxu1 %v1771_v7  ;;  %v7610_v43 = vrot.slane %v776_v32, %v7437_v44  ;;  %v1788_v48 = vrot.slane %v1774_v36, %v7437_v44  ;;  %v5938_v59 = vld.sshfl [vmem:[%s8951_s0 + $0x64] sm:$0x33 pattern:$0x76325410]  ;;  %v1571_v7 = vcombine.low %v5931_v33, %v326_v57  ;;  %v6973_v36 = vld [vmem:[%s8952_s1 + $0x1d4] ss:$8 sps:$4 sm:$0xff]  }
  0x34   :  { %2623 = vmatprep.subr.bf16.mxu0 %v6961_v63  ;;  %6002 = vmatprep.mubr.msk.bf16.mxu0 %vm1240_vm0, %v1003_v34  ;;  %v1019_v18 = vrot.slane %v1005_v5, %v7437_v44  ;;  %v1586_v21 = vrot.slane %v1579_v8, %v7437_v44  ;;  %v1594_v23 = vrot.slane %v1587_v13, %v7437_v44  ;;  %v5941_v34 = vld.sshfl [vmem:[%s8951_s0 + $0x70] sm:$0x33 pattern:$0x76325410] }
  0x35   :  { %v1790_v61 = vcombine.high %v1781_v41, %v1788_v48  ;;  %v1789_v63 = vcombine.low %v1781_v41, %v1788_v48  ;;  %v1004_v1 = vcombine.low %v7610_v43, %v7618_v49  ;;  %v1578_v20 = vrot.slane %v1571_v7, %v7437_v44  ;;  %v5943_v41 = vld.sshfl [vmem:[%s8951_s0 + $0x78] sm:$0x33 pattern:$0x76325410] }
  0x36   :  { %v382_v26 = vcombine.high %v5938_v59, %v5938_v59  ;;  %v398_v27 = vcombine.high %v5940_v3, %v5940_v3  ;;  %v414_v28 = vcombine.high %v5942_v11, %v5942_v11  ;;  %v808_v33 = vcombine.low %v5936_v53, %v366_v17  ;;  %v5946_v5 = vld.sshfl [vmem:[%s8951_s0 + $0x84] sm:$0x33 pattern:$0x76325410] }
  0x37   :  { %2624 = vmatpush1.bf16.msra.mxu0 %v6959_v19  ;;  %6058 = vmatprep.mubr.msk.bf16.mxu1 %vm1240_vm0, %v1790_v61  ;;  %v1012_v12 = vrot.slane %v1004_v1, %v7437_v44  ;;  %v1570_v19 = vrot.slane %v1563_v6, %v7437_v44  ;;  %v390_v48 = vcombine.high %v5939_v29, %v5939_v29  ;;  %v6976_v61 = vld [vmem:[%s8952_s1 + $0x1e4] ss:$8 sps:$4 sm:$0xff]  }
  0x38   :  { %2625 = vmatprep.subr.bf16.mxu0 %v6964_v22  ;;  %v5937_v22 = vld.sshfl [vmem:[%s8951_s0 + $0x60] sm:$0x33 pattern:$0x76325410]  ;;  %v824_v39 = vcombine.low %v5940_v3, %v398_v27  ;;  %v832_v40 = vcombine.low %v5942_v11, %v414_v28  ;;  %v7679_v46 = vrot.slane %v808_v33, %v7437_v44  ;;  %v422_v1 = vcombine.high %v5943_v41, %v5943_v41 }
  0x39   :  { %v1021_v30 = vcombine.high %v1012_v12, %v1019_v18  ;;  %v1791_v31 = vcombine.low %v1570_v19, %v1578_v20  ;;  %v1020_v32 = vcombine.low %v1012_v12, %v1019_v18  ;;  %v374_v47 = vcombine.high %v5937_v22, %v5937_v22  ;;  %v5948_v11 = vld.sshfl [vmem:[%s8951_s0 + $0x8c] sm:$0x33 pattern:$0x76325410] }
  0x3a   :  { %1308 = vmatmul.mubr.bf16.gmra.mrb[4].mxu0 %v1002_v37  ;;  %v1792_v37 = vcombine.low %v1586_v21, %v1594_v23  ;;  %v7689_v57 = vrot.slane %v824_v39, %v7437_v44  ;;  %v7692_v58 = vrot.slane %v832_v40, %v7437_v44  ;;  %v1603_v3 = vcombine.low %v5939_v29, %v390_v48  ;;  %v5950_v18 = vld.sshfl [vmem:[%s8951_s0 + $0x94] sm:$0x33 pattern:$0x76325410] }
  0x3b   :  { %2626 = vmatpush1.bf16.msra.mxu0 %v6962_v38  ;;  %2094 = vmatmul.mubr.bf16.gmra.mrb[4].mxu1 %v1789_v63  ;;  %v816_v38 = vcombine.low %v5938_v59, %v382_v26  ;;  %v1799_v45 = vrot.slane %v1791_v31, %v7437_v44  ;;  %v5944_v59 = vld.sshfl [vmem:[%s8951_s0 + $0x7c] sm:$0x33 pattern:$0x76325410]  ;;  %v406_v63 = vcombine.high %v5941_v34, %v5941_v34 }
  0x3c   :  { %2627 = vmatprep.subr.bf16.mxu0 %v6967_v51  ;;  %6003 = vmatprep.mubr.msk.bf16.mxu0 %vm1240_vm0, %v1021_v30  ;;  %v1806_v51 = vrot.slane %v1792_v37, %v7437_v44  ;;  %v1595_v2 = vcombine.low %v5937_v22, %v374_v47  ;;  %v1610_v13 = vrot.slane %v1603_v3, %v7437_v44  ;;  %v5945_v23 = vld.sshfl [vmem:[%s8951_s0 + $0x80] sm:$0x33 pattern:$0x76325410]  ;;  %v6979_v30 = vld [vmem:[%s8952_s1 + $0x1f4] ss:$8 sps:$4 sm:$0xff]  }
  0x3d   :  { %v7686_v53 = vrot.slane %v816_v38, %v7437_v44  ;;  %v1619_v17 = vcombine.low %v5943_v41, %v422_v1  ;;  %v430_v21 = vcombine.high %v5944_v59, %v5944_v59  ;;  %v446_v22 = vcombine.high %v5946_v5, %v5946_v5  ;;  %v5947_v29 = vld.sshfl [vmem:[%s8951_s0 + $0x88] sm:$0x33 pattern:$0x76325410]  ;;  %v6977_v1 = vld [vmem:[%s8952_s1 + $0x1f0] ss:$8 sps:$4 sm:$0xff]  }
  0x3e   :  { %v1808_v6 = vcombine.high %v1799_v45, %v1806_v51  ;;  %v1807_v7 = vcombine.low %v1799_v45, %v1806_v51  ;;  %v1602_v12 = vrot.slane %v1595_v2, %v7437_v44  ;;  %v462_v33 = vcombine.high %v5948_v11, %v5948_v11  ;;  %v5951_v41 = vld.sshfl [vmem:[%s8951_s0 + $0x98] sm:$0x33 pattern:$0x76325410] }
  0x3f   :  { %2628 = vmatpush1.bf16.msra.mxu0 %v6965_v10  ;;  %v1022_v8 = vcombine.low %v7679_v46, %v7686_v53  ;;  %v1023_v10 = vcombine.low %v7689_v57, %v7692_v58  ;;  %v1626_v27 = vrot.slane %v1619_v17, %v7437_v44  ;;  %v840_v39 = vcombine.low %v5944_v59, %v430_v21  ;;  %v5952_v2 = vld.sshfl [vmem:[%s8951_s0 + $0x9c] sm:$0x33 pattern:$0x76325410] }
  0x40   :  { %2629 = vmatprep.subr.bf16.mxu0 %v6970_v14  ;;  %v1611_v14 = vcombine.low %v5941_v34, %v406_v63  ;;  %6059 = vmatprep.mubr.msk.bf16.mxu1 %vm1240_vm0, %v1808_v6  ;;  %v1809_v28 = vcombine.low %v1602_v12, %v1610_v13  ;;  %v478_v34 = vcombine.high %v5950_v18, %v5950_v18  ;;  %v5956_v17 = vld.sshfl [vmem:[%s8951_s0 + $0xac] sm:$0x33 pattern:$0x76325410] }
  0x41   :  { %v1030_v19 = vrot.slane %v1022_v8, %v7437_v44  ;;  %v1037_v20 = vrot.slane %v1023_v10, %v7437_v44  ;;  %v848_v40 = vcombine.low %v5946_v5, %v446_v22  ;;  %v856_v45 = vcombine.low %v5948_v11, %v462_v33  ;;  %v5954_v8 = vld.sshfl [vmem:[%s8951_s0 + $0xa4] sm:$0x33 pattern:$0x76325410] }
  0x42   :  { %1318 = vmatmul.mubr.bf16.gmra.mrb[8].mxu0 %v1020_v32  ;;  %v1618_v26 = vrot.slane %v1611_v14, %v7437_v44  ;;  %v1817_v38 = vrot.slane %v1809_v28, %v7437_v44  ;;  %v864_v47 = vcombine.low %v5950_v18, %v478_v34  ;;  %v438_v48 = vcombine.high %v5945_v23, %v5945_v23  ;;  %v6982_v10 = vld [vmem:[%s8952_s1 + $0x204] ss:$8 sps:$4 sm:$0xff]   ;;  %v5958_v22 = vld.sshfl [vmem:[%s8951_s0 + $0xb4] sm:$0x33 pattern:$0x76325410] }
  0x43   :  { %2630 = vmatpush1.bf16.msra.mxu0 %v6968_v25  ;;  %v6974_v25 = vld [vmem:[%s8952_s1 + $0x1e0] ss:$8 sps:$4 sm:$0xff]   ;;  %2104 = vmatmul.mubr.bf16.gmra.mrb[8].mxu1 %v1807_v7  ;;  %v1039_v31 = vcombine.high %v1030_v19, %v1037_v20  ;;  %v1038_v32 = vcombine.low %v1030_v19, %v1037_v20  ;;  %v7745_v63 = vrot.slane %v848_v40, %v7437_v44  ;;  %v5957_v40 = vld.sshfl [vmem:[%s8951_s0 + $0xb0] sm:$0x33 pattern:$0x76325410] }
  0x44   :  { %2631 = vmatprep.subr.bf16.mxu0 %v6973_v36  ;;  %v5949_v36 = vld.sshfl [vmem:[%s8951_s0 + $0x90] sm:$0x33 pattern:$0x76325410]  ;;  %v1810_v37 = vcombine.low %v1618_v26, %v1626_v27  ;;  %v7754_v3 = vrot.slane %v856_v45, %v7437_v44  ;;  %v7757_v5 = vrot.slane %v864_v47, %v7437_v44  ;;  %v486_v6 = vcombine.high %v5951_v41, %v5951_v41  ;;  %v6980_v34 = vld [vmem:[%s8952_s1 + $0x200] ss:$8 sps:$4 sm:$0xff]  }
  0x45   :  { %6004 = vmatprep.mubr.msk.bf16.mxu0 %vm1240_vm0, %v1039_v31  ;;  %v470_v59 = vcombine.high %v5949_v36, %v5949_v36  ;;  %v1627_v7 = vcombine.low %v5945_v23, %v438_v48  ;;  %v494_v26 = vcombine.high %v5952_v2, %v5952_v2  ;;  %v510_v27 = vcombine.high %v5954_v8, %v5954_v8  ;;  %v5953_v28 = vld.sshfl [vmem:[%s8951_s0 + $0xa0] sm:$0x33 pattern:$0x76325410] }
  0x46   :  { %v1824_v51 = vrot.slane %v1810_v37, %v7437_v44  ;;  %v1041_v18 = vcombine.low %v7754_v3, %v7757_v5  ;;  %v1651_v21 = vcombine.low %v5951_v41, %v486_v6  ;;  %v5955_v33 = vld.sshfl [vmem:[%s8951_s0 + $0xa8] sm:$0x33 pattern:$0x76325410]  ;;  %v542_v37 = vcombine.high %v5958_v22, %v5958_v22 }
  0x47   :  { %2632 = vmatpush1.bf16.msra.mxu0 %v6971_v50  ;;  %v454_v50 = vcombine.high %v5947_v29, %v5947_v29  ;;  %v1634_v19 = vrot.slane %v1627_v7, %v7437_v44  ;;  %v1643_v20 = vcombine.low %v5949_v36, %v470_v59  ;;  %v2344_v62 = vcombine.low %v7568_v0, %v7610_v43 }
  0x48   :  { %2633 = vmatprep.subr.bf16.mxu0 %v6976_v61  ;;  %v7742_v61 = vrot.slane %v840_v39, %v7437_v44  ;;  %v1826_v11 = vcombine.high %v1817_v38, %v1824_v51  ;;  %v1825_v12 = vcombine.low %v1817_v38, %v1824_v51  ;;  %v1658_v31 = vrot.slane %v1651_v21, %v7437_v44  ;;  %v6988_v21 = vld [vmem:[%s8952_s1 + $0x224] ss:$8 sps:$4 sm:$0xff]  }
  0x49   :  { %v1635_v14 = vcombine.low %v5947_v29, %v454_v50  ;;  %v1055_v29 = vrot.slane %v1041_v18, %v7437_v44  ;;  %v872_v38 = vcombine.low %v5952_v2, %v494_v26  ;;  %v880_v39 = vcombine.low %v5954_v8, %v510_v27  ;;  %v5959_v50 = vld.sshfl [vmem:[%s8951_s0 + $0xb8] sm:$0x33 pattern:$0x76325410] }
  0x4a   :  { %1328 = vmatmul.mubr.bf16.gmra.mrb[12].mxu0 %v1038_v32  ;;  %v1040_v13 = vcombine.low %v7742_v61, %v7745_v63  ;;  %6060 = vmatprep.mubr.msk.bf16.mxu1 %vm1240_vm0, %v1826_v11  ;;  %v526_v32 = vcombine.high %v5956_v17, %v5956_v17  ;;  %v896_v6 = vcombine.low %v5958_v22, %v542_v37  ;;  %v5964_v27 = vld.sshfl [vmem:[%s8951_s0 + $0xcc] sm:$0x33 pattern:$0x76325410] }
  0x4b   :  { %2634 = vmatpush1.bf16.msra.mxu0 %v6974_v25  ;;  %v1642_v25 = vrot.slane %v1635_v14, %v7437_v44  ;;  %2114 = vmatmul.mubr.bf16.gmra.mrb[12].mxu1 %v1825_v12  ;;  %v7799_v59 = vrot.slane %v872_v38, %v7437_v44  ;;  %v7802_v2 = vrot.slane %v880_v39, %v7437_v44  ;;  %v5960_v12 = vld.sshfl [vmem:[%s8951_s0 + $0xbc] sm:$0x33 pattern:$0x76325410] }
  0x4c   :  { %2635 = vmatprep.subr.bf16.mxu0 %v6979_v30  ;;  %v1048_v23 = vrot.slane %v1040_v13, %v7437_v44  ;;  %v1650_v30 = vrot.slane %v1643_v20, %v7437_v44  ;;  %v888_v48 = vcombine.low %v5956_v17, %v526_v32  ;;  %v518_v11 = vcombine.high %v5955_v33, %v5955_v33  ;;  %v6983_v13 = vld [vmem:[%s8952_s1 + $0x210] ss:$8 sps:$4 sm:$0xff]   ;;  %v5962_v20 = vld.sshfl [vmem:[%s8951_s0 + $0xc4] sm:$0x33 pattern:$0x76325410] }
  0x4d   :  { %v1827_v36 = vcombine.low %v1634_v19, %v1642_v25  ;;  %v7819_v14 = vrot.slane %v896_v6, %v7437_v44  ;;  %v1058_v17 = vcombine.low %v7799_v59, %v7802_v2  ;;  %v534_v18 = vcombine.high %v5957_v40, %v5957_v40  ;;  %v5961_v38 = vld.sshfl [vmem:[%s8951_s0 + $0xc0] sm:$0x33 pattern:$0x76325410] }
  0x4e   :  { %v1057_v41 = vcombine.high %v1048_v23, %v1055_v29  ;;  %v1828_v45 = vcombine.low %v1650_v30, %v1658_v31  ;;  %v1056_v47 = vcombine.low %v1048_v23, %v1055_v29  ;;  %v7810_v8 = vrot.slane %v888_v48, %v7437_v44  ;;  %v6986_v48 = vld [vmem:[%s8952_s1 + $0x220] ss:$8 sps:$4 sm:$0xff]  }
  0x4f   :  { %2636 = vmatpush1.bf16.msra.mxu0 %v6977_v1  ;;  %v1835_v51 = vrot.slane %v1827_v36, %v7437_v44  ;;  %v6985_v1 = vld [vmem:[%s8952_s1 + $0x214] ss:$8 sps:$4 sm:$0xff]   ;;  %v550_v19 = vcombine.high %v5959_v50, %v5959_v50  ;;  %v1667_v26 = vcombine.low %v5955_v33, %v518_v11  ;;  %v1066_v30 = vrot.slane %v1058_v17, %v7437_v44 }
  0x50   :  { %2637 = vmatprep.subr.bf16.mxu0 %v6982_v10  ;;  %6005 = vmatprep.mubr.msk.bf16.mxu0 %vm1240_vm0, %v1057_v41  ;;  %v1842_v7 = vrot.slane %v1828_v45, %v7437_v44  ;;  %v502_v10 = vcombine.high %v5953_v28, %v5953_v28  ;;  %v1059_v29 = vcombine.low %v7810_v8, %v7819_v14  ;;  %v5966_v36 = vld.sshfl [vmem:[%s8951_s0 + $0xd4] sm:$0x33 pattern:$0x76325410] }
  0x51   :  { %v1675_v31 = vcombine.low %v5957_v40, %v534_v18  ;;  %v1683_v32 = vcombine.low %v5959_v50, %v550_v19  ;;  %v1674_v33 = vrot.slane %v1667_v26, %v7437_v44  ;;  %v574_v37 = vcombine.high %v5962_v20, %v5962_v20  ;;  %v5970_v26 = vld.sshfl [vmem:[%s8951_s0 + $0xe4] sm:$0x33 pattern:$0x76325410] }
  0x52   :  { %1338 = vmatmul.mubr.bf16.gmra.mrb[16].mxu0 %v1056_v47  ;;  %v1844_v22 = vcombine.high %v1835_v51, %v1842_v7  ;;  %v1843_v23 = vcombine.low %v1835_v51, %v1842_v7  ;;  %v1659_v25 = vcombine.low %v5953_v28, %v502_v10  ;;  %v1073_v39 = vrot.slane %v1059_v29, %v7437_v44  ;;  %v5963_v47 = vld.sshfl [vmem:[%s8951_s0 + $0xc8] sm:$0x33 pattern:$0x76325410]  ;;  %v6991_v10 = vld [vmem:[%s8952_s1 + $0x234] ss:$8 sps:$4 sm:$0xff]  }
  0x53   :  { %2638 = vmatpush1.bf16.msra.mxu0 %v6980_v34  ;;  %v558_v34 = vcombine.high %v5960_v12, %v5960_v12  ;;  %v1682_v40 = vrot.slane %v1675_v31, %v7437_v44  ;;  %v1690_v41 = vrot.slane %v1683_v32, %v7437_v44  ;;  %v590_v45 = vcombine.high %v5964_v27, %v5964_v27  ;;  %v5965_v7 = vld.sshfl [vmem:[%s8951_s0 + $0xd0] sm:$0x33 pattern:$0x76325410] }
  0x54   :  { %2639 = vmatprep.subr.bf16.mxu0 %v6985_v1  ;;  %6061 = vmatprep.mubr.msk.bf16.mxu1 %vm1240_vm0, %v1844_v22  ;;  %v1666_v28 = vrot.slane %v1659_v25, %v7437_v44  ;;  %v606_v51 = vcombine.high %v5966_v36, %v5966_v36  ;;  %v912_v1 = vcombine.low %v5962_v20, %v574_v37  ;;  %v5967_v22 = vld.sshfl [vmem:[%s8951_s0 + $0xd8] sm:$0x33 pattern:$0x76325410] }
  0x55   :  { %2124 = vmatmul.mubr.bf16.gmra.mrb[16].mxu1 %v1843_v23  ;;  %v904_v6 = vcombine.low %v5960_v12, %v558_v34  ;;  %v1075_v11 = vcombine.high %v1066_v30, %v1073_v39  ;;  %v1846_v17 = vcombine.low %v1682_v40, %v1690_v41  ;;  %v1074_v18 = vcombine.low %v1066_v30, %v1073_v39  ;;  %v5968_v25 = vld.sshfl [vmem:[%s8951_s0 + $0xdc] sm:$0x33 pattern:$0x76325410]  ;;  %v6989_v32 = vld [vmem:[%s8952_s1 + $0x230] ss:$8 sps:$4 sm:$0xff]  }
  0x56   :  { %v1845_v50 = vcombine.low %v1666_v28, %v1674_v33  ;;  %v920_v19 = vcombine.low %v5964_v27, %v590_v45  ;;  %v928_v23 = vcombine.low %v5966_v36, %v606_v51  ;;  %v566_v29 = vcombine.high %v5961_v38, %v5961_v38  ;;  %v5972_v31 = vld.sshfl [vmem:[%s8951_s0 + $0xec] sm:$0x33 pattern:$0x76325410] }
  0x57   :  { %2640 = vmatpush1.bf16.msra.mxu0 %v6983_v13  ;;  %v7864_v20 = vrot.slane %v904_v6, %v7437_v44  ;;  %v7867_v13 = vrot.slane %v912_v1, %v7437_v44  ;;  %6006 = vmatprep.mubr.msk.bf16.mxu0 %vm1240_vm0, %v1075_v11  ;;  %v582_v30 = vcombine.high %v5963_v47, %v5963_v47  ;;  %v5974_v37 = vld.sshfl [vmem:[%s8951_s0 + $0xf4] sm:$0x33 pattern:$0x76325410] }
  0x58   :  { %2641 = vmatprep.subr.bf16.mxu0 %v6988_v21  ;;  %v1853_v12 = vrot.slane %v1845_v50, %v7437_v44  ;;  %v1860_v21 = vrot.slane %v1846_v17, %v7437_v44  ;;  %v7878_v27 = vrot.slane %v920_v19, %v7437_v44  ;;  %v7887_v36 = vrot.slane %v928_v23, %v7437_v44  ;;  %v5975_v23 = vld.sshfl [vmem:[%s8951_s0 + $0xf8] sm:$0x33 pattern:$0x76325410] }
  0x59   :  { %v1076_v28 = vcombine.low %v7864_v20, %v7867_v13  ;;  %v598_v33 = vcombine.high %v5965_v7, %v5965_v7  ;;  %v614_v34 = vcombine.high %v5967_v22, %v5967_v22  ;;  %v1691_v41 = vcombine.low %v5961_v38, %v566_v29  ;;  %v5969_v38 = vld.sshfl [vmem:[%s8951_s0 + $0xe0] sm:$0x33 pattern:$0x76325410] }
  0x5a   :  { %1348 = vmatmul.mubr.bf16.gmra.mrb[20].mxu0 %v1074_v18  ;;  %v1862_v39 = vcombine.high %v1853_v12, %v1860_v21  ;;  %v1861_v40 = vcombine.low %v1853_v12, %v1860_v21  ;;  %v1699_v45 = vcombine.low %v5963_v47, %v582_v30  ;;  %v1077_v50 = vcombine.low %v7878_v27, %v7887_v36  ;;  %v5971_v47 = vld.sshfl [vmem:[%s8951_s0 + $0xe8] sm:$0x33 pattern:$0x76325410] }
  0x5b   :  { %2642 = vmatpush1.bf16.msra.mxu0 %v6986_v48  ;;  %v1084_v51 = vrot.slane %v1076_v28, %v7437_v44  ;;  %v1707_v6 = vcombine.low %v5965_v7, %v598_v33  ;;  %v1715_v1 = vcombine.low %v5967_v22, %v614_v34  ;;  %v1698_v11 = vrot.slane %v1691_v41, %v7437_v44  ;;  %v5973_v12 = vld.sshfl [vmem:[%s8951_s0 + $0xf0] sm:$0x33 pattern:$0x76325410] }
  0x5c   :  { %2643 = vmatprep.subr.bf16.mxu0 %v6991_v10  ;;  %6062 = vmatprep.mubr.msk.bf16.mxu1 %vm1240_vm0, %v1862_v39  ;;  %v1706_v17 = vrot.slane %v1699_v45, %v7437_v44  ;;  %v622_v18 = vcombine.high %v5968_v25, %v5968_v25  ;;  %v638_v19 = vcombine.high %v5970_v26, %v5970_v26 }
  0x5d   :  { %2134 = vmatmul.mubr.bf16.gmra.mrb[20].mxu1 %v1861_v40  ;;  %v1091_v48 = vrot.slane %v1077_v50, %v7437_v44  ;;  %v1714_v7 = vrot.slane %v1707_v6, %v7437_v44  ;;  %v1722_v10 = vrot.slane %v1715_v1, %v7437_v44  ;;  %v654_v22 = vcombine.high %v5972_v31, %v5972_v31 }
  0x5e   :  { %v1863_v21 = vcombine.low %v1698_v11, %v1706_v17  ;;  %v670_v29 = vcombine.high %v5974_v37, %v5974_v37  ;;  %v936_v30 = vcombine.low %v5968_v25, %v622_v18  ;;  %v944_v28 = vcombine.low %v5970_v26, %v638_v19 }
  0x5f   :  { %2644 = vmatpush1.bf16.msra.mxu0 %v6989_v32  ;;  %v1093_v33 = vcombine.high %v1084_v51, %v1091_v48  ;;  %v1864_v34 = vcombine.low %v1714_v7, %v1722_v10  ;;  %v1092_v39 = vcombine.low %v1084_v51, %v1091_v48  ;;  %v952_v40 = vcombine.low %v5972_v31, %v654_v22 }
  0x60   :  { %v1871_v41 = vrot.slane %v1863_v21, %v7437_v44  ;;  %v7917_v45 = vrot.slane %v936_v30, %v7437_v44  ;;  %v7920_v50 = vrot.slane %v944_v28, %v7437_v44  ;;  %v960_v6 = vcombine.low %v5974_v37, %v670_v29 }
  0x61   :  { %6007 = vmatprep.mubr.msk.bf16.mxu0 %vm1240_vm0, %v1093_v33  ;;  %v1878_v1 = vrot.slane %v1864_v34, %v7437_v44  ;;  %v7925_v25 = vrot.slane %v952_v40, %v7437_v44  ;;  %v630_v26 = vcombine.high %v5969_v38, %v5969_v38  ;;  %v646_v32 = vcombine.high %v5971_v47, %v5971_v47 }
  0x62   :  { %1358 = vmatmul.mubr.bf16.gmra.mrb[24].mxu0 %v1092_v39  ;;  %v7928_v31 = vrot.slane %v960_v6, %v7437_v44  ;;  %v1094_v51 = vcombine.low %v7917_v45, %v7920_v50  ;;  %v662_v11 = vcombine.high %v5973_v12, %v5973_v12  ;;  %v678_v17 = vcombine.high %v5975_v23, %v5975_v23 }
  0x63   :  { %v1880_v18 = vcombine.high %v1871_v41, %v1878_v1  ;;  %v1879_v37 = vcombine.low %v1871_v41, %v1878_v1  ;;  %v1723_v19 = vcombine.low %v5969_v38, %v630_v26  ;;  %v1731_v48 = vcombine.low %v5971_v47, %v646_v32 }
  0x64   :  { %v1095_v7 = vcombine.low %v7925_v25, %v7928_v31  ;;  %v1102_v10 = vrot.slane %v1094_v51, %v7437_v44  ;;  %v1739_v22 = vcombine.low %v5973_v12, %v662_v11  ;;  %v1747_v21 = vcombine.low %v5975_v23, %v678_v17 }
  0x65   :  { %6063 = vmatprep.mubr.msk.bf16.mxu1 %vm1240_vm0, %v1880_v18  ;;  %v1730_v29 = vrot.slane %v1723_v19, %v7437_v44  ;;  %v1738_v30 = vrot.slane %v1731_v48, %v7437_v44  ;;  %v2333_v28 = vrot.slane %v2325_v16, %v7437_v44  ;;  %v2340_v38 = vrot.slane %v2326_v24, %v7437_v44  ;;  %v5976_v19 = vld.sshfl [vmem:[%s8951_s0 + $0xfc] sm:$0x33 pattern:$0x76325410] }
  0x66   :  { %2144 = vmatmul.mubr.bf16.gmra.mrb[24].mxu1 %v1879_v37  ;;  %v1109_v47 = vrot.slane %v1095_v7, %v7437_v44  ;;  %v1746_v12 = vrot.slane %v1739_v22, %v7437_v44  ;;  %v1754_v23 = vrot.slane %v1747_v21, %v7437_v44  ;;  %v2343_v33 = vcombine.low %v7551_v52, %v7559_v60 }
  0x67   :  { %v1881_v34 = vcombine.low %v1730_v29, %v1738_v30  ;;  %v2341_v39 = vcombine.low %v2333_v28, %v2340_v38  ;;  %v2342_v40 = vcombine.high %v2333_v28, %v2340_v38  ;;  %v2358_v41 = vrot.slane %v2344_v62, %v7437_v44 }
  0x68   :  { %v1111_v4 = vcombine.high %v1102_v10, %v1109_v47  ;;  %v1882_v16 = vcombine.low %v1746_v12, %v1754_v23  ;;  %v1110_v9 = vcombine.low %v1102_v10, %v1109_v47  ;;  %v2351_v15 = vrot.slane %v2343_v33, %v7437_v44 }
  0x69   :  { %v1889_v24 = vrot.slane %v1881_v34, %v7437_v44  ;;  %v2361_v6 = vcombine.low %v7618_v49, %v7627_v54  ;;  %v2362_v52 = vcombine.low %v7630_v56, %v7679_v46  ;;  %v2379_v0 = vcombine.low %v7686_v53, %v7689_v57 }
  0x6a   :  { %6008 = vmatprep.mubr.msk.bf16.mxu0 %vm1240_vm0, %v1111_v4  ;;  %v1896_v60 = vrot.slane %v1882_v16, %v7437_v44  ;;  %v2380_v43 = vcombine.low %v7692_v58, %v7742_v61  ;;  %v2360_v1 = vcombine.high %v2351_v15, %v2358_v41  ;;  %v2359_v26 = vcombine.low %v2351_v15, %v2358_v41 }
  0x6b   :  { %1368 = vmatmul.mubr.bf16.gmra.mrb[28].mxu0 %v1110_v9  ;;  %v2369_v32 = vrot.slane %v2361_v6, %v7437_v44  ;;  %v2376_v49 = vrot.slane %v2362_v52, %v7437_v44  ;;  %v2387_v56 = vrot.slane %v2379_v0, %v7437_v44  ;;  %v2397_v61 = vcombine.low %v7745_v63, %v7754_v3 }
  0x6c   :  { %v1898_v54 = vcombine.high %v1889_v24, %v1896_v60  ;;  %v1897_v51 = vcombine.low %v1889_v24, %v1896_v60  ;;  %6113 = vmatprep.mubr.msk.bf16.mxu0 %vm1240_vm0, %v2342_v40  ;;  %v2394_v46 = vrot.slane %v2380_v43, %v7437_v44  ;;  %v2398_v17 = vcombine.low %v7757_v5, %v7799_v59 }
  0x6d   :  { %v2378_v11 = vcombine.high %v2369_v32, %v2376_v49  ;;  %v2377_v53 = vcombine.low %v2369_v32, %v2376_v49  ;;  %v2405_v18 = vrot.slane %v2397_v61, %v7437_v44  ;;  %v2415_v7 = vcombine.low %v7802_v2, %v7810_v8 }
  0x6e   :  { %6064 = vmatprep.mubr.msk.bf16.mxu1 %vm1240_vm0, %v1898_v54  ;;  %v2396_v57 = vcombine.high %v2387_v56, %v2394_v46  ;;  %v2395_v58 = vcombine.low %v2387_v56, %v2394_v46  ;;  %v2412_v37 = vrot.slane %v2398_v17, %v7437_v44  ;;  %v2416_v63 = vcombine.low %v7819_v14, %v7864_v20 }
  0x6f   :  { %2154 = vmatmul.mubr.bf16.gmra.mrb[28].mxu1 %v1897_v51  ;;  %v2423_v3 = vrot.slane %v2415_v7, %v7437_v44  ;;  %v686_v59 = vcombine.high %v5976_v19, %v5976_v19  ;;  %v2433_v21 = vcombine.low %v7867_v13, %v7878_v27  ;;  %v2434_v29 = vcombine.low %v7887_v36, %v7917_v45 }
  0x70   :  { %v2414_v48 = vcombine.high %v2405_v18, %v2412_v37  ;;  %v2430_v5 = vrot.slane %v2416_v63, %v7437_v44  ;;  %v2413_v10 = vcombine.low %v2405_v18, %v2412_v37  ;;  %v2451_v38 = vcombine.low %v7920_v50, %v7925_v25 }
  0x71   :  { %v2317_v2 = vcombine.low %v5976_v19, %v686_v59  ;;  %v2441_v8 = vrot.slane %v2433_v21, %v7437_v44  ;;  %v2448_v14 = vrot.slane %v2434_v29, %v7437_v44 }
  0x72   :  { %v2432_v22 = vcombine.high %v2423_v3, %v2430_v5  ;;  %v2431_v30 = vcombine.low %v2423_v3, %v2430_v5  ;;  %v2459_v27 = vrot.slane %v2451_v38, %v7437_v44 }
  0x73   :  { %2654 = vmatmul.mubr.bf16.vlgmr.msra.gmra.mrb[32].mxu0 %v2341_v39  ;;  %v2324_v20 = vrot.slane %v2317_v2, %v7437_v44  ;;  %v2450_v28 = vcombine.high %v2441_v8, %v2448_v14  ;;  %v2449_v45 = vcombine.low %v2441_v8, %v2448_v14 }
  0x74   :  { %6114 = vmatprep.mubr.msk.bf16.mxu0 %vm1240_vm0, %v2360_v1 }
  0x75   :  { %v2452_v13 = vcombine.low %v7928_v31, %v2324_v20 }
  0x77   :  { %v2466_v36 = vrot.slane %v2452_v13, %v7437_v44 }
  0x79   :  { %v2468_v47 = vcombine.high %v2459_v27, %v2466_v36 }
  0x7b   :  { %2664 = vmatmul.mubr.bf16.gmra.mrb[36].mxu0 %v2359_v26 }
  0x7c   :  { %6115 = vmatprep.mubr.msk.bf16.mxu0 %vm1240_vm0, %v2378_v11 }
  0x83   :  { %2674 = vmatmul.mubr.bf16.gmra.mrb[40].mxu0 %v2377_v53 }
  0x84   :  { %6116 = vmatprep.mubr.msk.bf16.mxu0 %vm1240_vm0, %v2396_v57 }
  0x8b   :  { %2684 = vmatmul.mubr.bf16.gmra.mrb[44].mxu0 %v2395_v58 }
  0x8c   :  { %6117 = vmatprep.mubr.msk.bf16.mxu0 %vm1240_vm0, %v2414_v48 }
  0x93   :  { %2694 = vmatmul.mubr.bf16.gmra.mrb[48].mxu0 %v2413_v10 }
  0x94   :  { %6118 = vmatprep.mubr.msk.bf16.mxu0 %vm1240_vm0, %v2432_v22 }
  0x9b   :  { %2704 = vmatmul.mubr.bf16.gmra.mrb[52].mxu0 %v2431_v30 }
  0x9c   :  { %6119 = vmatprep.mubr.msk.bf16.mxu0 %vm1240_vm0, %v2450_v28 }
  0x9d   :  { %23 = vsyncpa [#allocation8], 0  ;;  %v2467_v12 = vcombine.low %v2459_v27, %v2466_v36  ;;  %v6992_v50 = vld [vmem:[%s8954_s3 + $0x40] sm:$0xff]   ;;  %v6994_v31 = vld [vmem:[%s8954_s3 + $0x48] sm:$0xff]   ;;  %vm7231_vm1 = vmmov 0  }
  0x9e   :  { %6487 = vmatprep.subr.bf16.mxu1 %v6992_v50  ;;  %v6993_v25 = vld [vmem:[%s8954_s3] sm:$0xff]   ;;  %v6995_v23 = vld [vmem:[%s8954_s3 + $0x8] sm:$0xff]   ;;  %v7000_v62 = vld [vmem:[%s8954_s3 + $0x50] sm:$0xff]  }
  0x9f   :  { %6488 = vmatpush3.bf16.msra.mxu1 %v6993_v25  ;;  %v6996_v33 = vld [vmem:[%s8954_s3 + $0x140] sm:$0xff]   ;;  %v6998_v39 = vld [vmem:[%s8954_s3 + $0x148] sm:$0xff]   ;;  %v7001_v4 = vld [vmem:[%s8954_s3 + $0x10] sm:$0xff]  }
  0xa0   :  { %6489 = vmatprep.subr.bf16.mxu1 %v6994_v31  ;;  %v6997_v34 = vld [vmem:[%s8954_s3 + $0x100] sm:$0xff]   ;;  %6567 = vmatprep.subr.bf16.mxu0 %v6996_v33  ;;  %v6999_v40 = vld [vmem:[%s8954_s3 + $0x108] sm:$0xff]   ;;  %v7002_v16 = vld [vmem:[%s8954_s3 + $0x150] sm:$0xff]  }
  0xa1   :  { %6568 = vmatpush3.bf16.msra.mxu0 %v6997_v34  ;;  %v7003_v9 = vld [vmem:[%s8954_s3 + $0x110] sm:$0xff]   ;;  %v7004_v15 = vld [vmem:[%s8954_s3 + $0x58] sm:$0xff]   ;;  %v7008_v52 = vld [vmem:[%s8954_s3 + $0x60] sm:$0xff]  }
  0xa2   :  { %6569 = vmatprep.subr.bf16.mxu0 %v6998_v39  ;;  %v7005_v24 = vld [vmem:[%s8954_s3 + $0x18] sm:$0xff]   ;;  %v7009_v60 = vld [vmem:[%s8954_s3 + $0x20] sm:$0xff]   ;;  %v7012_v1 = vld [vmem:[%s8954_s3 + $0x68] sm:$0xff]  }
  0xa3   :  { %2714 = vmatmul.mubr.bf16.gmra.mrb[56].mxu0 %v2449_v45  ;;  %6490 = vmatpush3.bf16.msra.mxu1 %v6995_v23  ;;  %v7006_v41 = vld [vmem:[%s8954_s3 + $0x158] sm:$0xff]   ;;  %v7010_v0 = vld [vmem:[%s8954_s3 + $0x160] sm:$0xff]   ;;  %v7013_v26 = vld [vmem:[%s8954_s3 + $0x28] sm:$0xff]  }
  0xa4   :  { %6120 = vmatprep.mubr.msk.bf16.mxu0 %vm1240_vm0, %v2468_v47  ;;  %6491 = vmatprep.subr.bf16.mxu1 %v7000_v62  ;;  %v7007_v6 = vld [vmem:[%s8954_s3 + $0x118] sm:$0xff]   ;;  %v7011_v43 = vld [vmem:[%s8954_s3 + $0x120] sm:$0xff]   ;;  %v7014_v32 = vld [vmem:[%s8954_s3 + $0x168] sm:$0xff]  }
  0xa5   :  { %6570 = vmatpush3.bf16.msra.mxu0 %v6999_v40  ;;  %v7015_v49 = vld [vmem:[%s8954_s3 + $0x128] sm:$0xff]   ;;  %v7016_v54 = vld [vmem:[%s8954_s3 + $0x70] sm:$0xff]   ;;  %v7020_v11 = vld [vmem:[%s8954_s3 + $0x78] sm:$0xff]  }
  0xa6   :  { %6571 = vmatprep.subr.bf16.mxu0 %v7002_v16  ;;  %v7017_v51 = vld [vmem:[%s8954_s3 + $0x30] sm:$0xff]   ;;  %v7021_v53 = vld [vmem:[%s8954_s3 + $0x38] sm:$0xff]   ;;  %v7024_v20 = vld [vmem:[%s8954_s3 + $0xc0] sm:$0xff]  }
  0xa7   :  { %6492 = vmatpush3.bf16.msra.mxu1 %v7001_v4  ;;  %v7018_v56 = vld [vmem:[%s8954_s3 + $0x170] sm:$0xff]   ;;  %v7022_v57 = vld [vmem:[%s8954_s3 + $0x178] sm:$0xff]  }
  0xa8   :  { %6493 = vmatprep.subr.bf16.mxu1 %v7004_v15  ;;  %v7019_v46 = vld [vmem:[%s8954_s3 + $0x130] sm:$0xff]   ;;  %v7023_v58 = vld [vmem:[%s8954_s3 + $0x138] sm:$0xff]  }
  0xa9   :  { %6572 = vmatpush3.bf16.msra.mxu0 %v7003_v9 }
  0xaa   :  { %6573 = vmatprep.subr.bf16.mxu0 %v7006_v41 }
  0xab   :  { %2724 = vmatmul.mubr.bf16.gmra.mrb[60].mxu0 %v2467_v12  ;;  %6494 = vmatpush3.bf16.msra.mxu1 %v7005_v24 }
  0xac   :  { %6495 = vmatprep.subr.bf16.mxu1 %v7008_v52 }
  0xad   :  { %6574 = vmatpush3.bf16.msra.mxu0 %v7007_v6 }
  0xae   :  { %6575 = vmatprep.subr.bf16.mxu0 %v7010_v0 }
  0xaf   :  { %6496 = vmatpush3.bf16.msra.mxu1 %v7009_v60 }
  0xb0   :  { %6497 = vmatprep.subr.bf16.mxu1 %v7012_v1 }
  0xb1   :  { %6576 = vmatpush3.bf16.msra.mxu0 %v7011_v43 }
  0xb2   :  { %6577 = vmatprep.subr.bf16.mxu0 %v7014_v32 }
  0xb3   :  { %6498 = vmatpush3.bf16.msra.mxu1 %v7013_v26 }
  0xb4   :  { %6499 = vmatprep.subr.bf16.mxu1 %v7016_v54 }
  0xb5   :  { %6578 = vmatpush3.bf16.msra.mxu0 %v7015_v49 }
  0xb6   :  { %6579 = vmatprep.subr.bf16.mxu0 %v7018_v56 }
  0xb7   :  { %6500 = vmatpush3.bf16.msra.mxu1 %v7017_v51 }
  0xb8   :  { %6501 = vmatprep.subr.bf16.mxu1 %v7020_v11 }
  0xb9   :  { %6580 = vmatpush3.bf16.msra.mxu0 %v7019_v46 }
  0xba   :  { %6581 = vmatprep.subr.bf16.mxu0 %v7022_v57 }
  0xbb   :  { %6502 = vmatpush3.bf16.msra.mxu1 %v7021_v53 }
  0xbc   :  { %6527 = vmatprep.subr.bf16.mxu1 %v7024_v20 }
  0xbd   :  { %6582 = vmatpush3.bf16.msra.mxu0 %v7023_v58 }
 0x105   :  { %v1299_v61 = vpop.f32.mrb[0].mxu0 }
 0x106   :  { %v1301_v17 = vpop.f32.mrb[1].mxu0  ;;  %v2085_v18 = vpop.f32.mrb[0].mxu1 }
 0x107   :  { %v1410_v37 = vcombine.low %v1299_v61, %v1301_v17  ;;  %v1411_v19 = vcombine.high %v1299_v61, %v1301_v17  ;;  %v1303_v48 = vpop.f32.mrb[2].mxu0  ;;  %v2087_v7 = vpop.f32.mrb[1].mxu1 }
 0x108   :  { %v1305_v63 = vpop.f32.mrb[3].mxu0  ;;  %v2196_v3 = vcombine.low %v2085_v18, %v2087_v7  ;;  %v2197_v5 = vcombine.high %v2085_v18, %v2087_v7  ;;  %v2089_v59 = vpop.f32.mrb[2].mxu1 }
 0x109   :  { %v1412_v10 = vcombine.low %v1303_v48, %v1305_v63  ;;  %v1413_v22 = vcombine.high %v1303_v48, %v1305_v63  ;;  %v2091_v21 = vpop.f32.mrb[3].mxu1 }
 0x10a   :  { %v8102_v29 = vadd.f32 %v2196_v3, %v1410_v37  ;;  %v8104_v2 = vadd.f32 %v2197_v5, %v1411_v19  ;;  %v2198_v8 = vcombine.low %v2089_v59, %v2091_v21  ;;  %v2199_v14 = vcombine.high %v2089_v59, %v2091_v21 }
 0x10c   :  { %v8109_v30 = vadd.f32 %v2198_v8, %v1412_v10  ;;  %v8111_v28 = vadd.f32 %v2199_v14, %v1413_v22 }
 0x10d   :  { %v1309_v38 = vpop.f32.mrb[4].mxu0 }
 0x10e   :  { %v1311_v13 = vpop.f32.mrb[5].mxu0  ;;  %v2095_v47 = vpop.f32.mrb[4].mxu1 }
 0x10f   :  { %v1414_v27 = vcombine.low %v1309_v38, %v1311_v13  ;;  %v1415_v36 = vcombine.high %v1309_v38, %v1311_v13  ;;  %v1313_v45 = vpop.f32.mrb[6].mxu0  ;;  %v2097_v50 = vpop.f32.mrb[5].mxu1 }
 0x110   :  { %v1315_v12 = vpop.f32.mrb[7].mxu0  ;;  %v2200_v23 = vcombine.low %v2095_v47, %v2097_v50  ;;  %v2201_v33 = vcombine.high %v2095_v47, %v2097_v50  ;;  %v2099_v34 = vpop.f32.mrb[6].mxu1 }
 0x111   :  { %v1416_v25 = vcombine.low %v1313_v45, %v1315_v12  ;;  %v1417_v31 = vcombine.high %v1313_v45, %v1315_v12  ;;  %v2101_v39 = vpop.f32.mrb[7].mxu1 }
 0x112   :  { %v8113_v40 = vadd.f32 %v2200_v23, %v1414_v27  ;;  %v8115_v62 = vadd.f32 %v2201_v33, %v1415_v36  ;;  %v2202_v4 = vcombine.low %v2099_v34, %v2101_v39  ;;  %v2203_v16 = vcombine.high %v2099_v34, %v2101_v39 }
 0x114   :  { %v8117_v15 = vadd.f32 %v2202_v4, %v1416_v25  ;;  %v8119_v24 = vadd.f32 %v2203_v16, %v1417_v31 }
 0x115   :  { %v1319_v9 = vpop.f32.mrb[8].mxu0 }
 0x116   :  { %v1321_v41 = vpop.f32.mrb[9].mxu0  ;;  %v2105_v26 = vpop.f32.mrb[8].mxu1 }
 0x117   :  { %v1418_v6 = vcombine.low %v1319_v9, %v1321_v41  ;;  %v1419_v52 = vcombine.high %v1319_v9, %v1321_v41  ;;  %v1323_v60 = vpop.f32.mrb[10].mxu0  ;;  %v2107_v32 = vpop.f32.mrb[9].mxu1 }
 0x118   :  { %v1325_v0 = vpop.f32.mrb[11].mxu0  ;;  %v2204_v49 = vcombine.low %v2105_v26, %v2107_v32  ;;  %v2205_v54 = vcombine.high %v2105_v26, %v2107_v32  ;;  %v2109_v51 = vpop.f32.mrb[10].mxu1 }
 0x119   :  { %v1420_v43 = vcombine.low %v1323_v60, %v1325_v0  ;;  %v1421_v1 = vcombine.high %v1323_v60, %v1325_v0  ;;  %v2111_v56 = vpop.f32.mrb[11].mxu1 }
 0x11a   :  { %v8121_v46 = vadd.f32 %v2204_v49, %v1418_v6  ;;  %v8123_v11 = vadd.f32 %v2205_v54, %v1419_v52  ;;  %v2206_v53 = vcombine.low %v2109_v51, %v2111_v56  ;;  %v2207_v57 = vcombine.high %v2109_v51, %v2111_v56 }
 0x11c   :  { %v8125_v17 = vadd.f32 %v2206_v53, %v1420_v43  ;;  %v8127_v18 = vadd.f32 %v2207_v57, %v1421_v1 }
 0x11d   :  { %v1329_v58 = vpop.f32.mrb[12].mxu0 }
 0x11e   :  { %v1331_v61 = vpop.f32.mrb[13].mxu0  ;;  %v2115_v5 = vpop.f32.mrb[12].mxu1 }
 0x11f   :  { %v1422_v37 = vcombine.low %v1329_v58, %v1331_v61  ;;  %v1423_v19 = vcombine.high %v1329_v58, %v1331_v61  ;;  %v1333_v48 = vpop.f32.mrb[14].mxu0  ;;  %v2117_v59 = vpop.f32.mrb[13].mxu1 }
 0x120   :  { %v1335_v7 = vpop.f32.mrb[15].mxu0  ;;  %v2208_v10 = vcombine.low %v2115_v5, %v2117_v59  ;;  %v2209_v22 = vcombine.high %v2115_v5, %v2117_v59  ;;  %v2119_v21 = vpop.f32.mrb[14].mxu1 }
 0x121   :  { %v1424_v63 = vcombine.low %v1333_v48, %v1335_v7  ;;  %v1425_v3 = vcombine.high %v1333_v48, %v1335_v7  ;;  %v2121_v8 = vpop.f32.mrb[15].mxu1 }
 0x122   :  { %v8129_v14 = vadd.f32 %v2208_v10, %v1422_v37  ;;  %v8131_v20 = vadd.f32 %v2209_v22, %v1423_v19  ;;  %v2210_v38 = vcombine.low %v2119_v21, %v2121_v8  ;;  %v2211_v13 = vcombine.high %v2119_v21, %v2121_v8 }
 0x124   :  { %v8133_v36 = vadd.f32 %v2210_v38, %v1424_v63  ;;  %v8135_v45 = vadd.f32 %v2211_v13, %v1425_v3 }
 0x125   :  { %v1339_v27 = vpop.f32.mrb[16].mxu0 }
 0x126   :  { %v1341_v47 = vpop.f32.mrb[17].mxu0 }
 0x127   :  { %v1426_v12 = vcombine.low %v1339_v27, %v1341_v47  ;;  %v1427_v50 = vcombine.high %v1339_v27, %v1341_v47  ;;  %v1343_v25 = vpop.f32.mrb[18].mxu0 }
 0x128   :  { %v1345_v31 = vpop.f32.mrb[19].mxu0  ;;  %v2125_v23 = vpop.f32.mrb[16].mxu1 }
 0x129   :  { %v1428_v33 = vcombine.low %v1343_v25, %v1345_v31  ;;  %v1429_v34 = vcombine.high %v1343_v25, %v1345_v31  ;;  %v2127_v39 = vpop.f32.mrb[17].mxu1 }
 0x12a   :  { %v2212_v4 = vcombine.low %v2125_v23, %v2127_v39  ;;  %v2213_v16 = vcombine.high %v2125_v23, %v2127_v39  ;;  %v2129_v9 = vpop.f32.mrb[18].mxu1 }
 0x12b   :  { %v2131_v41 = vpop.f32.mrb[19].mxu1 }
 0x12c   :  { %v8137_v6 = vadd.f32 %v2212_v4, %v1426_v12  ;;  %v8139_v52 = vadd.f32 %v2213_v16, %v1427_v50  ;;  %v2214_v60 = vcombine.low %v2129_v9, %v2131_v41  ;;  %v2215_v0 = vcombine.high %v2129_v9, %v2131_v41 }
 0x12d   :  { %v1349_v43 = vpop.f32.mrb[20].mxu0 }
 0x12e   :  { %v8141_v1 = vadd.f32 %v2214_v60, %v1428_v33  ;;  %v8143_v26 = vadd.f32 %v2215_v0, %v1429_v34  ;;  %v1351_v32 = vpop.f32.mrb[21].mxu0 }
 0x12f   :  { %v1430_v49 = vcombine.low %v1349_v43, %v1351_v32  ;;  %v1431_v54 = vcombine.high %v1349_v43, %v1351_v32  ;;  %v1353_v51 = vpop.f32.mrb[22].mxu0 }
 0x130   :  { %v1355_v56 = vpop.f32.mrb[23].mxu0  ;;  %v2135_v53 = vpop.f32.mrb[20].mxu1 }
 0x131   :  { %v1432_v57 = vcombine.low %v1353_v51, %v1355_v56  ;;  %v1433_v58 = vcombine.high %v1353_v51, %v1355_v56  ;;  %v2137_v61 = vpop.f32.mrb[21].mxu1 }
 0x132   :  { %v2216_v37 = vcombine.low %v2135_v53, %v2137_v61  ;;  %v2217_v19 = vcombine.high %v2135_v53, %v2137_v61  ;;  %v2139_v48 = vpop.f32.mrb[22].mxu1 }
 0x133   :  { %v2141_v7 = vpop.f32.mrb[23].mxu1 }
 0x134   :  { %v8145_v63 = vadd.f32 %v2216_v37, %v1430_v49  ;;  %v8147_v3 = vadd.f32 %v2217_v19, %v1431_v54  ;;  %v2218_v5 = vcombine.low %v2139_v48, %v2141_v7  ;;  %v2219_v59 = vcombine.high %v2139_v48, %v2141_v7 }
 0x135   :  { %v1359_v10 = vpop.f32.mrb[24].mxu0  ;;  %v2866_v49 = vsub.s32 0, %v7414_v35  ;;  %v2870_v54 = vsub.s32 1, %v7414_v35 }
 0x136   :  { %v8149_v22 = vadd.f32 %v2218_v5, %v1432_v57  ;;  %v8151_v21 = vadd.f32 %v2219_v59, %v1433_v58  ;;  %v1361_v8 = vpop.f32.mrb[25].mxu0  ;;  %v2862_v57 = vld [vmem:[%s8953_s2] sm:$0x3] }
 0x137   :  { %v1434_v38 = vcombine.low %v1359_v10, %v1361_v8  ;;  %v1435_v13 = vcombine.high %v1359_v10, %v1361_v8  ;;  %v1363_v27 = vpop.f32.mrb[26].mxu0  ;;  %v2867_v7 = vrot.slane %v2862_v57, %v2866_v49  ;;  %v2871_v5 = vrot.slane %v2862_v57, %v2870_v54 }
 0x138   :  { %v1365_v47 = vpop.f32.mrb[27].mxu0 }
 0x139   :  { %v2145_v12 = vpop.f32.mrb[24].mxu1  ;;  %v1436_v50 = vcombine.low %v1363_v27, %v1365_v47  ;;  %v1437_v25 = vcombine.high %v1363_v27, %v1365_v47 }
 0x13a   :  { %v2147_v31 = vpop.f32.mrb[25].mxu1 }
 0x13b   :  { %v2220_v23 = vcombine.low %v2145_v12, %v2147_v31  ;;  %v2221_v33 = vcombine.high %v2145_v12, %v2147_v31  ;;  %v2149_v34 = vpop.f32.mrb[26].mxu1 }
 0x13c   :  { %v2151_v39 = vpop.f32.mrb[27].mxu1 }
 0x13d   :  { %v8153_v4 = vadd.f32 %v2220_v23, %v1434_v38  ;;  %v8155_v16 = vadd.f32 %v2221_v33, %v1435_v13  ;;  %v2222_v9 = vcombine.low %v2149_v34, %v2151_v39  ;;  %v2223_v41 = vcombine.high %v2149_v34, %v2151_v39 }
 0x13e   :  { %v1369_v60 = vpop.f32.mrb[28].mxu0 }
 0x13f   :  { %v8157_v0 = vadd.f32 %v2222_v9, %v1436_v50  ;;  %v8159_v43 = vadd.f32 %v2223_v41, %v1437_v25  ;;  %v1371_v32 = vpop.f32.mrb[29].mxu0  ;;  %v8170_v25 = vcombine.low %v2867_v7, %v2871_v5 }
 0x140   :  { %v1438_v51 = vcombine.low %v1369_v60, %v1371_v32  ;;  %v1439_v56 = vcombine.high %v1369_v60, %v1371_v32  ;;  %v1373_v53 = vpop.f32.mrb[30].mxu0 }
 0x141   :  { %v1375_v58 = vpop.f32.mrb[31].mxu0 }
 0x142   :  { %v2155_v61 = vpop.f32.mrb[28].mxu1  ;;  %v1440_v37 = vcombine.low %v1373_v53, %v1375_v58  ;;  %v1441_v19 = vcombine.high %v1373_v53, %v1375_v58 }
 0x143   :  { %v2157_v48 = vpop.f32.mrb[29].mxu1 }
 0x144   :  { %v2224_v59 = vcombine.low %v2155_v61, %v2157_v48  ;;  %v2225_v10 = vcombine.high %v2155_v61, %v2157_v48  ;;  %v2159_v8 = vpop.f32.mrb[30].mxu1 }
 0x145   :  { %v2161_v38 = vpop.f32.mrb[31].mxu1 }
 0x146   :  { %v8166_v13 = vadd.f32 %v2224_v59, %v1438_v51  ;;  %v8168_v35 = vadd.f32 %v2225_v10, %v1439_v56  ;;  %v2226_v27 = vcombine.low %v2159_v8, %v2161_v38  ;;  %v2227_v47 = vcombine.high %v2159_v8, %v2161_v38  ;;  %v2655_v12 = vpop.f32.mrb[32].mxu0 }
 0x147   :  { %v2657_v50 = vpop.f32.mrb[33].mxu0 }
 0x148   :  { %v8172_v31 = vadd.f32 %v2226_v27, %v1440_v37  ;;  %v8174_v23 = vadd.f32 %v2227_v47, %v1441_v19  ;;  %v2766_v33 = vcombine.low %v2655_v12, %v2657_v50  ;;  %v2767_v34 = vcombine.high %v2655_v12, %v2657_v50  ;;  %v2659_v39 = vpop.f32.mrb[34].mxu0 }
 0x149   :  { %v2661_v9 = vpop.f32.mrb[35].mxu0 }
 0x14a   :  { %v2830_v41 = vadd.f32 %v2766_v33, %v8102_v29  ;;  %v2831_v60 = vadd.f32 %v2767_v34, %v8104_v2  ;;  %v2768_v32 = vcombine.low %v2659_v39, %v2661_v9  ;;  %v2769_v49 = vcombine.high %v2659_v39, %v2661_v9 }
 0x14c   :  { %v2874_v54 = vadd.f32 %v8170_v25, %v2830_v41  ;;  %v2875_v51 = vadd.f32 %v8170_v25, %v2831_v60  ;;  %v2832_v56 = vadd.f32 %v2768_v32, %v8109_v30  ;;  %v2833_v53 = vadd.f32 %v2769_v49, %v8111_v28 }
 0x14e   :  { %v2906_v57 = vmax.f32 %v2874_v54, 0.0  ;;  %v2907_v58 = vmax.f32 %v2875_v51, 0.0  ;;  %v2876_v61 = vadd.f32 %v8170_v25, %v2832_v56  ;;  %v2877_v37 = vadd.f32 %v8170_v25, %v2833_v53  ;;  %v2665_v19 = vpop.f32.mrb[36].mxu0 }
 0x14f   :  { %v2667_v29 = vpop.f32.mrb[37].mxu0 }
 0x150   :  { %v2970_v48 = vcombine.high %v2906_v57, %v2906_v57  ;;  %v2971_v2 = vcombine.high %v2907_v58, %v2907_v58  ;;  %v2908_v7 = vmax.f32 %v2876_v61, 0.0  ;;  %v2909_v5 = vmax.f32 %v2877_v37, 0.0  ;;  %v2669_v59 = vpop.f32.mrb[38].mxu0 }
 0x151   :  { %v2770_v10 = vcombine.low %v2665_v19, %v2667_v29  ;;  %v2771_v8 = vcombine.high %v2665_v19, %v2667_v29  ;;  %v2671_v38 = vpop.f32.mrb[39].mxu0 }
 0x152   :  { %v8184_v27 = vpack.c.bf16 %v2970_v48, %v2906_v57  ;;  %v6122_v30 = vpack.c.bf16 %v2971_v2, %v2907_v58  ;;  %v2972_v28 = vcombine.high %v2908_v7, %v2908_v7  ;;  %v2973_v47 = vcombine.high %v2909_v5, %v2909_v5 }
 0x153   :  { %v2834_v12 = vadd.f32 %v2770_v10, %v8113_v40  ;;  %v2835_v50 = vadd.f32 %v2771_v8, %v8115_v62  ;;  %v2772_v33 = vcombine.low %v2669_v59, %v2671_v38  ;;  %v2773_v34 = vcombine.high %v2669_v59, %v2671_v38 }
 0x154   :  { %6153 = vst.sshfl [vmem:[#allocation2] sm:$0x33 pattern:$0x76325410] %v8184_v27  ;;  %v8189_v39 = vpack.c.bf16 %v2972_v28, %v2908_v7  ;;  %v6124_v9 = vpack.c.bf16 %v2973_v47, %v2909_v5  ;;  %v3177_v41 = vrot.slane %v6122_v30, %v7437_v44  ;;  %v3169_v56 = vrot.slane %v8184_v27, %v7437_v44  ;;  %v7027_v27 = vld [vmem:[%s8954_s3 + $0x88] sm:$0xff]  }
 0x155   :  { %6154 = vst.sshfl [vmem:[#allocation2 + $0x4] sm:$0x33 pattern:$0x76325410] %v6122_v30  ;;  %v2878_v60 = vadd.f32 %v8170_v25, %v2834_v12  ;;  %v2879_v32 = vadd.f32 %v8170_v25, %v2835_v50  ;;  %v2836_v49 = vadd.f32 %v2772_v33, %v8117_v15  ;;  %v2837_v40 = vadd.f32 %v2773_v34, %v8119_v24 }
 0x156   :  { %6155 = vst.sshfl [vmem:[#allocation2 + $0x8] sm:$0x33 pattern:$0x76325410] %v8189_v39  ;;  %v2675_v62 = vpop.f32.mrb[40].mxu0  ;;  %v3193_v54 = vrot.slane %v6124_v9, %v7437_v44  ;;  %v3514_v51 = vcombine.low %v7461_v55, %v3177_v41  ;;  %v3185_v53 = vrot.slane %v8189_v39, %v7437_v44 }
 0x157   :  { %6156 = vst.sshfl [vmem:[#allocation2 + $0xc] sm:$0x33 pattern:$0x76325410] %v6124_v9  ;;  %v2910_v57 = vmax.f32 %v2878_v60, 0.0  ;;  %v2911_v58 = vmax.f32 %v2879_v32, 0.0  ;;  %v2880_v15 = vadd.f32 %v8170_v25, %v2836_v49  ;;  %v2881_v24 = vadd.f32 %v8170_v25, %v2837_v40 }
 0x158   :  { %v2677_v61 = vpop.f32.mrb[41].mxu0  ;;  %v8206_v48 = vrot.slane %v3514_v51, %v7437_v44  ;;  %v4126_v55 = vcombine.low %v3177_v41, %v3193_v54 }
 0x159   :  { %v2774_v37 = vcombine.low %v2675_v62, %v2677_v61  ;;  %v2775_v19 = vcombine.high %v2675_v62, %v2677_v61  ;;  %v2679_v29 = vpop.f32.mrb[42].mxu0  ;;  %v2974_v2 = vcombine.high %v2910_v57, %v2910_v57  ;;  %v2975_v7 = vcombine.high %v2911_v58, %v2911_v58 }
 0x15a   :  { %v2912_v5 = vmax.f32 %v2880_v15, 0.0  ;;  %v2913_v59 = vmax.f32 %v2881_v24, 0.0  ;;  %v2681_v10 = vpop.f32.mrb[43].mxu0  ;;  %v8221_v49 = vrot.slane %v4126_v55, %v7437_v44 }
 0x15b   :  { %v2838_v8 = vadd.f32 %v2774_v37, %v8121_v46  ;;  %v2839_v38 = vadd.f32 %v2775_v19, %v8123_v11  ;;  %v2776_v30 = vcombine.low %v2679_v29, %v2681_v10  ;;  %v2777_v28 = vcombine.high %v2679_v29, %v2681_v10 }
 0x15c   :  { %v8210_v47 = vpack.c.bf16 %v2974_v2, %v2910_v57  ;;  %v6126_v12 = vpack.c.bf16 %v2975_v7, %v2911_v58  ;;  %v2976_v50 = vcombine.high %v2912_v5, %v2912_v5  ;;  %v2977_v33 = vcombine.high %v2913_v59, %v2913_v59 }
 0x15d   :  { %v2882_v34 = vadd.f32 %v8170_v25, %v2838_v8  ;;  %v2883_v9 = vadd.f32 %v8170_v25, %v2839_v38  ;;  %v2840_v41 = vadd.f32 %v2776_v30, %v8125_v17  ;;  %v2841_v60 = vadd.f32 %v2777_v28, %v8127_v18 }
 0x15e   :  { %6157 = vst.sshfl [vmem:[#allocation2 + $0x10] sm:$0x33 pattern:$0x76325410] %v8210_v47  ;;  %v8217_v46 = vpack.c.bf16 %v2976_v50, %v2912_v5  ;;  %v6128_v11 = vpack.c.bf16 %v2977_v33, %v2913_v59  ;;  %v3209_v32 = vrot.slane %v6126_v12, %v7437_v44  ;;  %v2685_v17 = vpop.f32.mrb[44].mxu0  ;;  %v3201_v24 = vrot.slane %v8210_v47, %v7437_v44 }
 0x15f   :  { %6158 = vst.sshfl [vmem:[#allocation2 + $0x14] sm:$0x33 pattern:$0x76325410] %v6126_v12  ;;  %v2914_v40 = vmax.f32 %v2882_v34, 0.0  ;;  %v2915_v62 = vmax.f32 %v2883_v9, 0.0  ;;  %v2884_v51 = vadd.f32 %v8170_v25, %v2840_v41  ;;  %v2885_v57 = vadd.f32 %v8170_v25, %v2841_v60 }
 0x160   :  { %6159 = vst.sshfl [vmem:[#allocation2 + $0x18] sm:$0x33 pattern:$0x76325410] %v8217_v46  ;;  %v2687_v18 = vpop.f32.mrb[45].mxu0  ;;  %v3515_v58 = vcombine.low %v3193_v54, %v3209_v32  ;;  %v8227_v15 = vrot.slane %v6128_v11, %v7437_v44  ;;  %v3217_v61 = vrot.slane %v8217_v46, %v7437_v44 }
 0x161   :  { %6160 = vst.sshfl [vmem:[#allocation2 + $0x1c] sm:$0x33 pattern:$0x76325410] %v6128_v11  ;;  %v2978_v37 = vcombine.high %v2914_v40, %v2914_v40  ;;  %v2979_v19 = vcombine.high %v2915_v62, %v2915_v62  ;;  %v2916_v29 = vmax.f32 %v2884_v51, 0.0  ;;  %v2917_v55 = vmax.f32 %v2885_v57, 0.0 }
 0x162   :  { %v2689_v2 = vpop.f32.mrb[46].mxu0  ;;  %v2778_v7 = vcombine.low %v2685_v17, %v2687_v18  ;;  %v2779_v5 = vcombine.high %v2685_v17, %v2687_v18  ;;  %v3529_v10 = vrot.slane %v3515_v58, %v7437_v44  ;;  %v4127_v54 = vcombine.low %v3209_v32, %v8227_v15  ;;  %v7025_v32 = vld [vmem:[%s8954_s3 + $0x80] sm:$0xff]   ;;  %v7026_v51 = vld [vmem:[%s8954_s3 + $0xc8] sm:$0xff]  }
 0x163   :  { %v2691_v59 = vpop.f32.mrb[47].mxu0  ;;  %v8235_v8 = vpack.c.bf16 %v2978_v37, %v2914_v40  ;;  %v6130_v38 = vpack.c.bf16 %v2979_v19, %v2915_v62  ;;  %v2980_v30 = vcombine.high %v2916_v29, %v2916_v29  ;;  %v2981_v28 = vcombine.high %v2917_v55, %v2917_v55 }
 0x164   :  { %v2842_v12 = vadd.f32 %v2778_v7, %v8129_v14  ;;  %v2843_v50 = vadd.f32 %v2779_v5, %v8131_v20  ;;  %v2780_v33 = vcombine.low %v2689_v2, %v2691_v59  ;;  %v2781_v34 = vcombine.high %v2689_v2, %v2691_v59 }
 0x165   :  { %6161 = vst.sshfl [vmem:[#allocation2 + $0x20] sm:$0x33 pattern:$0x76325410] %v8235_v8  ;;  %v8240_v9 = vpack.c.bf16 %v2980_v30, %v2916_v29  ;;  %v6132_v41 = vpack.c.bf16 %v2981_v28, %v2917_v55  ;;  %v3530_v60 = vcombine.low %v8206_v48, %v3529_v10  ;;  %v3531_v11 = vcombine.high %v8206_v48, %v3529_v10 }
 0x166   :  { %6162 = vst.sshfl [vmem:[#allocation2 + $0x24] sm:$0x33 pattern:$0x76325410] %v6130_v38  ;;  %v2886_v14 = vadd.f32 %v8170_v25, %v2842_v12  ;;  %v2887_v20 = vadd.f32 %v8170_v25, %v2843_v50  ;;  %v2844_v40 = vadd.f32 %v2780_v33, %v8133_v36  ;;  %v2845_v62 = vadd.f32 %v2781_v34, %v8135_v45  ;;  %v2695_v48 = vpop.f32.mrb[48].mxu0 }
 0x167   :  { %6163 = vst.sshfl [vmem:[#allocation2 + $0x28] sm:$0x33 pattern:$0x76325410] %v8240_v9  ;;  %3722 = vmatprep.mubr.bf16.mxu1 %v3531_v11  ;;  %v4141_v57 = vrot.slane %v4127_v54, %v7437_v44  ;;  %v8257_v17 = vrot.slane %v6130_v38, %v7437_v44  ;;  %v8260_v18 = vrot.slane %v6132_v41, %v7437_v44  ;;  %v2697_v29 = vpop.f32.mrb[49].mxu0  ;;  %v7028_v38 = vld [vmem:[%s8954_s3 + $0xd0] sm:$0xff]  }
 0x168   :  { %6164 = vst.sshfl [vmem:[#allocation2 + $0x2c] sm:$0x33 pattern:$0x76325410] %v6132_v41  ;;  %v8268_v36 = vcombine.low %v3169_v56, %v3185_v53  ;;  %v2918_v45 = vmax.f32 %v2886_v14, 0.0  ;;  %v2919_v58 = vmax.f32 %v2887_v20, 0.0  ;;  %v2888_v37 = vadd.f32 %v8170_v25, %v2844_v40  ;;  %3723 = vmatmul.mubr.bf16.vlgmr.msra.gmra.mrb[32].mxu1 %v3530_v60 }
 0x169   :  { %v2889_v19 = vadd.f32 %v8170_v25, %v2845_v62  ;;  %v4142_v55 = vcombine.low %v8221_v49, %v4141_v57  ;;  %v4143_v2 = vcombine.high %v8221_v49, %v4141_v57  ;;  %v2782_v7 = vcombine.low %v2695_v48, %v2697_v29  ;;  %v2699_v39 = vpop.f32.mrb[50].mxu0  ;;  %6528 = vmatpush3.bf16.msra.mxu1 %v7025_v32 }
 0x16a   :  { %v2783_v5 = vcombine.high %v2695_v48, %v2697_v29  ;;  %v2982_v56 = vcombine.high %v2918_v45, %v2918_v45  ;;  %v2983_v53 = vcombine.high %v2919_v58, %v2919_v58  ;;  %v2920_v59 = vmax.f32 %v2888_v37, 0.0  ;;  %v2701_v54 = vpop.f32.mrb[51].mxu0  ;;  %6529 = vmatprep.subr.bf16.mxu1 %v7026_v51 }
 0x16b   :  { %v2921_v10 = vmax.f32 %v2889_v19, 0.0  ;;  %4334 = vmatprep.mubr.bf16.mxu0 %v4143_v2  ;;  %v2846_v49 = vadd.f32 %v2782_v7, %v8137_v6  ;;  %v2784_v28 = vcombine.low %v2699_v39, %v2701_v54  ;;  %v2785_v12 = vcombine.high %v2699_v39, %v2701_v54  ;;  %v7029_v6 = vld [vmem:[%s8954_s3 + $0x90] sm:$0xff]  }
 0x16c   :  { %v2847_v30 = vadd.f32 %v2783_v5, %v8139_v52  ;;  %v8282_v50 = vpack.c.bf16 %v2982_v56, %v2918_v45  ;;  %v6134_v33 = vpack.c.bf16 %v2983_v53, %v2919_v58  ;;  %v2984_v34 = vcombine.high %v2920_v59, %v2920_v59  ;;  %4335 = vmatmul.mubr.bf16.vlgmr.msra.gmra.mrb[64].mxu0 %v4142_v55 }
 0x16d   :  { %v2985_v41 = vcombine.high %v2921_v10, %v2921_v10  ;;  %v2890_v60 = vadd.f32 %v8170_v25, %v2846_v49  ;;  %v2848_v32 = vadd.f32 %v2784_v28, %v8141_v1  ;;  %v2849_v14 = vadd.f32 %v2785_v12, %v8143_v26  ;;  %6530 = vmatpush3.bf16.msra.mxu1 %v7027_v27  ;;  %v7030_v1 = vld [vmem:[%s8954_s3 + $0xd8] sm:$0xff]  }
 0x16e   :  { %v2891_v11 = vadd.f32 %v8170_v25, %v2847_v30  ;;  %6165 = vst.sshfl [vmem:[#allocation2 + $0x30] sm:$0x33 pattern:$0x76325410] %v8282_v50  ;;  %v8292_v52 = vpack.c.bf16 %v2984_v34, %v2920_v59  ;;  %v3273_v40 = vrot.slane %v6134_v33, %v7437_v44  ;;  %v3532_v62 = vcombine.low %v8227_v15, %v8257_v17  ;;  %v2705_v45 = vpop.f32.mrb[52].mxu0  ;;  %v7031_v27 = vld [vmem:[%s8954_s3 + $0x98] sm:$0xff]  }
 0x16f   :  { %6166 = vst.sshfl [vmem:[#allocation2 + $0x34] sm:$0x33 pattern:$0x76325410] %v6134_v33  ;;  %v6136_v20 = vpack.c.bf16 %v2985_v41, %v2921_v10  ;;  %6531 = vmatprep.subr.bf16.mxu1 %v7028_v38  ;;  %v2922_v26 = vmax.f32 %v2890_v60, 0.0  ;;  %v2892_v48 = vadd.f32 %v8170_v25, %v2848_v32  ;;  %v2893_v57 = vadd.f32 %v8170_v25, %v2849_v14  ;;  %v2707_v58 = vpop.f32.mrb[53].mxu0 }
 0x170   :  { %v2923_v51 = vmax.f32 %v2891_v11, 0.0  ;;  %6167 = vst.sshfl [vmem:[#allocation2 + $0x38] sm:$0x33 pattern:$0x76325410] %v8292_v52  ;;  %v3533_v37 = vcombine.low %v8260_v18, %v3273_v40  ;;  %v3540_v15 = vrot.slane %v3532_v62, %v7437_v44  ;;  %v4144_v29 = vcombine.low %v8257_v17, %v8260_v18  ;;  %v2709_v39 = vpop.f32.mrb[54].mxu0 }
 0x171   :  { %6168 = vst.sshfl [vmem:[#allocation2 + $0x3c] sm:$0x33 pattern:$0x76325410] %v6136_v20  ;;  %v8306_v19 = vrot.slane %v6136_v20, %v7437_v44  ;;  %v2986_v55 = vcombine.high %v2922_v26, %v2922_v26  ;;  %v2924_v7 = vmax.f32 %v2892_v48, 0.0  ;;  %v2925_v5 = vmax.f32 %v2893_v57, 0.0  ;;  %6532 = vmatpush3.bf16.msra.mxu1 %v7029_v6 }
 0x172   :  { %v2987_v2 = vcombine.high %v2923_v51, %v2923_v51  ;;  %v2786_v56 = vcombine.low %v2705_v45, %v2707_v58  ;;  %v2787_v53 = vcombine.high %v2705_v45, %v2707_v58  ;;  %v2711_v59 = vpop.f32.mrb[55].mxu0  ;;  %v3547_v10 = vrot.slane %v3533_v37, %v7437_v44  ;;  %6533 = vmatprep.subr.bf16.mxu1 %v7030_v1  ;;  %v7032_v17 = vld [vmem:[%s8954_s3 + $0xe0] sm:$0xff]  }
 0x173   :  { %v4145_v54 = vcombine.low %v3273_v40, %v8306_v19  ;;  %v8318_v18 = vpack.c.bf16 %v2986_v55, %v2922_v26  ;;  %v2988_v49 = vcombine.high %v2924_v7, %v2924_v7  ;;  %v2989_v30 = vcombine.high %v2925_v5, %v2925_v5  ;;  %v7033_v14 = vld [vmem:[%s8954_s3 + $0xa0] sm:$0xff]   ;;  %v7034_v40 = vld [vmem:[%s8954_s3 + $0xe8] sm:$0xff]  }
 0x174   :  { %v6138_v38 = vpack.c.bf16 %v2987_v2, %v2923_v51  ;;  %v2850_v28 = vadd.f32 %v2786_v56, %v8145_v63  ;;  %v2851_v12 = vadd.f32 %v2787_v53, %v8147_v3  ;;  %v2788_v33 = vcombine.low %v2709_v39, %v2711_v59 }
 0x175   :  { %v2789_v34 = vcombine.high %v2709_v39, %v2711_v59  ;;  %6169 = vst.sshfl [vmem:[#allocation2 + $0x40] sm:$0x33 pattern:$0x76325410] %v8318_v18  ;;  %v8323_v41 = vpack.c.bf16 %v2988_v49, %v2924_v7  ;;  %v6140_v60 = vpack.c.bf16 %v2989_v30, %v2925_v5  ;;  %v3549_v11 = vcombine.high %v3540_v15, %v3547_v10  ;;  %v7035_v7 = vld [vmem:[%s8954_s3 + $0xa8] sm:$0xff]   ;;  %v7036_v59 = vld [vmem:[%s8954_s3 + $0xf0] sm:$0xff]  }
 0x176   :  { %6170 = vst.sshfl [vmem:[#allocation2 + $0x44] sm:$0x33 pattern:$0x76325410] %v6138_v38  ;;  %v3548_v32 = vcombine.low %v3540_v15, %v3547_v10  ;;  %6534 = vmatpush3.bf16.msra.mxu1 %v7031_v27  ;;  %v2894_v6 = vadd.f32 %v8170_v25, %v2850_v28  ;;  %v2895_v63 = vadd.f32 %v8170_v25, %v2851_v12  ;;  %v2715_v62 = vpop.f32.mrb[56].mxu0 }
 0x177   :  { %v2852_v3 = vadd.f32 %v2788_v33, %v8149_v22  ;;  %v2853_v20 = vadd.f32 %v2789_v34, %v8151_v21  ;;  %6535 = vmatprep.subr.bf16.mxu1 %v7032_v17  ;;  %6171 = vst.sshfl [vmem:[#allocation2 + $0x48] sm:$0x33 pattern:$0x76325410] %v8323_v41  ;;  %3730 = vmatprep.mubr.bf16.mxu1 %v3549_v11  ;;  %v2717_v58 = vpop.f32.mrb[57].mxu0 }
 0x178   :  { %6172 = vst.sshfl [vmem:[#allocation2 + $0x4c] sm:$0x33 pattern:$0x76325410] %v6140_v60  ;;  %v4152_v1 = vrot.slane %v4144_v29, %v7437_v44  ;;  %v4159_v26 = vrot.slane %v4145_v54, %v7437_v44  ;;  %v8339_v51 = vrot.slane %v6138_v38, %v7437_v44  ;;  %v8342_v22 = vrot.slane %v6140_v60, %v7437_v44  ;;  %v2719_v2 = vpop.f32.mrb[58].mxu0 }
 0x179   :  { %v2926_v21 = vmax.f32 %v2894_v6, 0.0  ;;  %v2927_v48 = vmax.f32 %v2895_v63, 0.0  ;;  %v2896_v57 = vadd.f32 %v8170_v25, %v2852_v3  ;;  %v2897_v45 = vadd.f32 %v8170_v25, %v2853_v20  ;;  %3731 = vmatmul.mubr.bf16.gmra.mrb[36].mxu1 %v3548_v32  ;;  %v2721_v53 = vpop.f32.mrb[59].mxu0 }
 0x17a   :  { %v4161_v37 = vcombine.high %v4152_v1, %v4159_v26  ;;  %v2790_v15 = vcombine.low %v2715_v62, %v2717_v58  ;;  %v2791_v55 = vcombine.high %v2715_v62, %v2717_v58  ;;  %v4160_v29 = vcombine.low %v4152_v1, %v4159_v26  ;;  %6536 = vmatpush3.bf16.msra.mxu1 %v7033_v14 }
 0x17b   :  { %v2990_v5 = vcombine.high %v2926_v21, %v2926_v21  ;;  %v2991_v39 = vcombine.high %v2927_v48, %v2927_v48  ;;  %v2928_v27 = vmax.f32 %v2896_v57, 0.0  ;;  %v2929_v56 = vmax.f32 %v2897_v45, 0.0  ;;  %6537 = vmatprep.subr.bf16.mxu1 %v7034_v40 }
 0x17c   :  { %4342 = vmatprep.mubr.bf16.mxu0 %v4161_v37  ;;  %v2854_v10 = vadd.f32 %v2790_v15, %v8153_v4  ;;  %v2855_v54 = vadd.f32 %v2791_v55, %v8155_v16  ;;  %v2792_v17 = vcombine.low %v2719_v2, %v2721_v53  ;;  %v2793_v38 = vcombine.high %v2719_v2, %v2721_v53  ;;  %v7037_v4 = vld [vmem:[%s8954_s3 + $0xb0] sm:$0xff]   ;;  %v7039_v15 = vld [vmem:[%s8954_s3 + $0xb8] sm:$0xff]  }
 0x17d   :  { %v8354_v49 = vpack.c.bf16 %v2990_v5, %v2926_v21  ;;  %v6142_v30 = vpack.c.bf16 %v2991_v39, %v2927_v48  ;;  %v2992_v28 = vcombine.high %v2928_v27, %v2928_v27  ;;  %v2993_v12 = vcombine.high %v2929_v56, %v2929_v56  ;;  %4343 = vmatmul.mubr.bf16.gmra.mrb[68].mxu0 %v4160_v29 }
 0x17e   :  { %v2898_v33 = vadd.f32 %v8170_v25, %v2854_v10  ;;  %v2899_v34 = vadd.f32 %v8170_v25, %v2855_v54  ;;  %v2856_v60 = vadd.f32 %v2792_v17, %v8157_v0  ;;  %v2857_v11 = vadd.f32 %v2793_v38, %v8159_v43  ;;  %6538 = vmatpush3.bf16.msra.mxu1 %v7035_v7  ;;  %v7038_v0 = vld [vmem:[%s8954_s3 + $0xf8] sm:$0xff]   ;;  %v2725_v40 = vpop.f32.mrb[60].mxu0  ;;  %s7232_s3 = smov [#allocation4]  }
 0x17f   :  { %6173 = vst.sshfl [vmem:[#allocation2 + $0x50] sm:$0x33 pattern:$0x76325410] %v8354_v49  ;;  %v8364_v16 = vpack.c.bf16 %v2992_v28, %v2928_v27  ;;  %v6144_v32 = vpack.c.bf16 %v2993_v12, %v2929_v56  ;;  %v3337_v14 = vrot.slane %v6142_v30, %v7437_v44  ;;  %v3550_v6 = vcombine.low %v8306_v19, %v8339_v51  ;;  %v2727_v62 = vpop.f32.mrb[61].mxu0 }
 0x180   :  { %6174 = vst.sshfl [vmem:[#allocation2 + $0x54] sm:$0x33 pattern:$0x76325410] %v6142_v30  ;;  %6539 = vmatprep.subr.bf16.mxu1 %v7036_v59  ;;  %v2930_v43 = vmax.f32 %v2898_v33, 0.0  ;;  %v2931_v63 = vmax.f32 %v2899_v34, 0.0  ;;  %v2900_v3 = vadd.f32 %v8170_v25, %v2856_v60  ;;  %v2901_v20 = vadd.f32 %v8170_v25, %v2857_v11 }
 0x181   :  { %6175 = vst.sshfl [vmem:[#allocation2 + $0x58] sm:$0x33 pattern:$0x76325410] %v8364_v16  ;;  %v3551_v1 = vcombine.low %v8342_v22, %v3337_v14  ;;  %v3558_v19 = vrot.slane %v3550_v6, %v7437_v44  ;;  %v3353_v26 = vrot.slane %v6144_v32, %v7437_v44  ;;  %v4162_v21 = vcombine.low %v8339_v51, %v8342_v22  ;;  %v2729_v37 = vpop.f32.mrb[62].mxu0 }
 0x182   :  { %6176 = vst.sshfl [vmem:[#allocation2 + $0x5c] sm:$0x33 pattern:$0x76325410] %v6144_v32  ;;  %v2994_v48 = vcombine.high %v2930_v43, %v2930_v43  ;;  %v2995_v57 = vcombine.high %v2931_v63, %v2931_v63  ;;  %v2932_v45 = vmax.f32 %v2900_v3, 0.0  ;;  %v2933_v58 = vmax.f32 %v2901_v20, 0.0  ;;  %6540 = vmatpush3.bf16.msra.mxu1 %v7037_v4 }
 0x183   :  { %v2794_v55 = vcombine.low %v2725_v40, %v2727_v62  ;;  %v2795_v29 = vcombine.high %v2725_v40, %v2727_v62  ;;  %v2731_v2 = vpop.f32.mrb[63].mxu0  ;;  %v3565_v7 = vrot.slane %v3551_v1, %v7437_v44  ;;  %v4163_v5 = vcombine.low %v3337_v14, %v3353_v26  ;;  %6541 = vmatprep.subr.bf16.mxu1 %v7038_v0 }
 0x184   :  { %v8384_v39 = vpack.c.bf16 %v2994_v48, %v2930_v43  ;;  %v6146_v51 = vpack.c.bf16 %v2995_v57, %v2931_v63  ;;  %v2996_v22 = vcombine.high %v2932_v45, %v2932_v45  ;;  %v2997_v27 = vcombine.high %v2933_v58, %v2933_v58 }
 0x185   :  { %v2858_v56 = vadd.f32 %v2794_v55, %v8166_v13  ;;  %v2859_v53 = vadd.f32 %v2795_v29, %v8168_v35  ;;  %v2796_v59 = vcombine.low %v2729_v37, %v2731_v2  ;;  %v2797_v10 = vcombine.high %v2729_v37, %v2731_v2 }
 0x186   :  { %6177 = vst.sshfl [vmem:[#allocation2 + $0x60] sm:$0x33 pattern:$0x76325410] %v8384_v39  ;;  %v8389_v54 = vpack.c.bf16 %v2996_v22, %v2932_v45  ;;  %v6148_v17 = vpack.c.bf16 %v2997_v27, %v2933_v58  ;;  %v3567_v38 = vcombine.high %v3558_v19, %v3565_v7  ;;  %v3566_v30 = vcombine.low %v3558_v19, %v3565_v7 }
 0x187   :  { %6178 = vst.sshfl [vmem:[#allocation2 + $0x64] sm:$0x33 pattern:$0x76325410] %v6146_v51  ;;  %6542 = vmatpush3.bf16.msra.mxu1 %v7039_v15  ;;  %v2902_v28 = vadd.f32 %v8170_v25, %v2858_v56  ;;  %v2903_v12 = vadd.f32 %v8170_v25, %v2859_v53  ;;  %v2860_v33 = vadd.f32 %v2796_v59, %v8172_v31 }
 0x188   :  { %v2861_v13 = vadd.f32 %v2797_v10, %v8174_v23  ;;  %6179 = vst.sshfl [vmem:[#allocation2 + $0x68] sm:$0x33 pattern:$0x76325410] %v8389_v54  ;;  %3738 = vmatprep.mubr.bf16.mxu1 %v3567_v38  ;;  %v4170_v35 = vrot.slane %v4162_v21, %v7437_v44  ;;  %v4177_v34 = vrot.slane %v4163_v5, %v7437_v44 }
 0x189   :  { %6180 = vst.sshfl [vmem:[#allocation2 + $0x6c] sm:$0x33 pattern:$0x76325410] %v6148_v17  ;;  %v3369_v60 = vrot.slane %v6146_v51, %v7437_v44  ;;  %v3385_v11 = vrot.slane %v6148_v17, %v7437_v44  ;;  %v2934_v4 = vmax.f32 %v2902_v28, 0.0  ;;  %v2935_v32 = vmax.f32 %v2903_v12, 0.0  ;;  %3739 = vmatmul.mubr.bf16.gmra.mrb[40].mxu1 %v3566_v30 }
 0x18a   :  { %v2904_v14 = vadd.f32 %v8170_v25, %v2860_v33  ;;  %v2905_v31 = vadd.f32 %v8170_v25, %v2861_v13  ;;  %v4179_v23 = vcombine.high %v4170_v35, %v4177_v34  ;;  %v4178_v6 = vcombine.low %v4170_v35, %v4177_v34 }
 0x18b   :  { %v3568_v0 = vcombine.low %v3353_v26, %v3369_v60  ;;  %v3813_v43 = vcombine.low %v3201_v24, %v3217_v61  ;;  %v2998_v63 = vcombine.high %v2934_v4, %v2934_v4  ;;  %v2999_v3 = vcombine.high %v2935_v32, %v2935_v32 }
 0x18c   :  { %v2936_v20 = vmax.f32 %v2904_v14, 0.0  ;;  %v2937_v40 = vmax.f32 %v2905_v31, 0.0  ;;  %4350 = vmatprep.mubr.bf16.mxu0 %v4179_v23  ;;  %v3820_v25 = vrot.slane %v8268_v36, %v7437_v44  ;;  %v4180_v19 = vcombine.low %v3369_v60, %v3385_v11  ;;  %v7040_v31 = vld [vmem:[%s8956_s5] sm:$0xff]  }
 0x18d   :  { %v3576_v62 = vrot.slane %v3568_v0, %v7437_v44  ;;  %v3827_v1 = vrot.slane %v3813_v43, %v7437_v44  ;;  %v6149_v26 = vpack.c.bf16 %v2998_v63, %v2934_v4  ;;  %v6150_v21 = vpack.c.bf16 %v2999_v3, %v2935_v32  ;;  %4351 = vmatmul.mubr.bf16.gmra.mrb[72].mxu0 %v4178_v6  ;;  %v7041_v23 = vld [vmem:[%s8956_s5 + $0x40] sm:$0xff]   ;;  %v7042_v6 = vld [vmem:[%s8956_s5 + $0x8] sm:$0xff]   ;;  %v7044_v43 = vld [vmem:[%s8956_s5 + $0x10] sm:$0xff]  }
 0x18e   :  { %v3000_v46 = vcombine.high %v2936_v20, %v2936_v20  ;;  %v3001_v48 = vcombine.high %v2937_v40, %v2937_v40  ;;  %v4188_v61 = vrot.slane %v4180_v19, %v7437_v44  ;;  %v3233_v57 = vrot.slane %v8235_v8, %v7437_v44  ;;  %v7043_v0 = vld [vmem:[%s8956_s5 + $0x48] sm:$0xff]   ;;  %6691 = vmatprep.subr.bf16.mxu1 %v7040_v31  ;;  %v7045_v63 = vld [vmem:[%s8956_s5 + $0x50] sm:$0xff]   ;;  %v7046_v3 = vld [vmem:[%s8956_s5 + $0x18] sm:$0xff]  }
 0x18f   :  { %v3828_v47 = vcombine.low %v3820_v25, %v3827_v1  ;;  %v3829_v24 = vcombine.high %v3820_v25, %v3827_v1  ;;  %6181 = vst.sshfl [vmem:[#allocation2 + $0x70] sm:$0x33 pattern:$0x76325410] %v6149_v26  ;;  %v3401_v36 = vrot.slane %v6150_v21, %v7437_v44  ;;  %v3249_v37 = vrot.slane %v8240_v9, %v7437_v44  ;;  %v7050_v25 = vld [vmem:[%s8956_s5 + $0x28] sm:$0xff]   ;;  %v7052_v19 = vld [vmem:[%s8956_s5 + $0x30] sm:$0xff]  }
 0x190   :  { %6182 = vst.sshfl [vmem:[#allocation2 + $0x74] sm:$0x33 pattern:$0x76325410] %v6150_v21  ;;  %v6151_v45 = vpack.c.bf16 %v3000_v46, %v2936_v20  ;;  %v6152_v58 = vpack.c.bf16 %v3001_v48, %v2937_v40  ;;  %v3265_v15 = vrot.slane %v8282_v50, %v7437_v44  ;;  %v3281_v55 = vrot.slane %v8292_v52, %v7437_v44  ;;  %v7047_v20 = vld [vmem:[%s8956_s5 + $0x58] sm:$0xff]   ;;  %v7048_v40 = vld [vmem:[%s8956_s5 + $0x20] sm:$0xff]  }
 0x191   :  { %v3297_v29 = vrot.slane %v8318_v18, %v7437_v44  ;;  %v3313_v8 = vrot.slane %v8323_v41, %v7437_v44  ;;  %v3569_v2 = vcombine.low %v3385_v11, %v3401_v36  ;;  %v3830_v5 = vcombine.low %v3233_v57, %v3249_v37  ;;  %6711 = vmatprep.subr.bf16.mxu0 %v7041_v23  ;;  %v7051_v1 = vld [vmem:[%s8956_s5 + $0x68] sm:$0xff]   ;;  %v7054_v21 = vld [vmem:[%s8956_s5 + $0x38] sm:$0xff]   ;;  %v8496_v48 = vld [vmem:[%s8956_s5 + $0x80] sm:$0xff]  }
 0x192   :  { %6183 = vst.sshfl [vmem:[#allocation2 + $0x78] sm:$0x33 pattern:$0x76325410] %v6151_v45  ;;  %v3417_v7 = vrot.slane %v6152_v58, %v7437_v44  ;;  %v3329_v9 = vrot.slane %v8354_v49, %v7437_v44  ;;  %v3831_v51 = vcombine.low %v3265_v15, %v3281_v55  ;;  %v3345_v50 = vrot.slane %v8364_v16, %v7437_v44  ;;  %v7055_v46 = vld [vmem:[%s8956_s5 + $0x78] sm:$0xff]  }
 0x193   :  { %6184 = vst.sshfl [vmem:[#allocation2 + $0x7c] sm:$0x33 pattern:$0x76325410] %v6152_v58  ;;  %v3848_v52 = vcombine.low %v3297_v29, %v3313_v8  ;;  %v3361_v18 = vrot.slane %v8384_v39, %v7437_v44  ;;  %v3583_v22 = vrot.slane %v3569_v2, %v7437_v44  ;;  %v3838_v27 = vrot.slane %v3830_v5, %v7437_v44 }
 0x194   :  { %v4181_v41 = vcombine.low %v3401_v36, %v3417_v7  ;;  %v3377_v56 = vrot.slane %v8389_v54, %v7437_v44  ;;  %v3845_v53 = vrot.slane %v3831_v51, %v7437_v44  ;;  %v3849_v59 = vcombine.low %v3329_v9, %v3345_v50  ;;  %6712 = vmatpush3.bf16.msra.mxu0 %v7041_v23 }
 0x195   :  { %v3856_v49 = vrot.slane %v3848_v52, %v7437_v44  ;;  %v3393_v10 = vrot.slane %v6149_v26, %v7437_v44  ;;  %v3585_v16 = vcombine.high %v3576_v62, %v3583_v22  ;;  %v3584_v17 = vcombine.low %v3576_v62, %v3583_v22  ;;  %6713 = vmatprep.subr.bf16.mxu0 %v7043_v0  ;;  %v7049_v62 = vld [vmem:[%s8956_s5 + $0x60] sm:$0xff]   ;;  %v7053_v26 = vld [vmem:[%s8956_s5 + $0x70] sm:$0xff]  }
 0x196   :  { %v4195_v38 = vrot.slane %v4181_v41, %v7437_v44  ;;  %v3409_v39 = vrot.slane %v6151_v45, %v7437_v44  ;;  %v3847_v30 = vcombine.high %v3838_v27, %v3845_v53  ;;  %v3846_v28 = vcombine.low %v3838_v27, %v3845_v53 }
 0x197   :  { %v3863_v12 = vrot.slane %v3849_v59, %v7437_v44  ;;  %v3866_v33 = vcombine.low %v3361_v18, %v3377_v56  ;;  %3746 = vmatprep.mubr.bf16.mxu1 %v3585_v16 }
 0x198   :  { %v4197_v54 = vcombine.high %v4188_v61, %v4195_v38  ;;  %v4196_v13 = vcombine.low %v4188_v61, %v4195_v38  ;;  %v3867_v35 = vcombine.low %v3393_v10, %v3409_v39  ;;  %3747 = vmatmul.mubr.bf16.gmra.mrb[44].mxu1 %v3584_v17  ;;  %6714 = vmatpush3.bf16.msra.mxu0 %v7043_v0 }
 0x199   :  { %v3865_v34 = vcombine.high %v3856_v49, %v3863_v12  ;;  %v3864_v60 = vcombine.low %v3856_v49, %v3863_v12  ;;  %4020 = vmatprep.mubr.bf16.mxu1 %v3829_v24  ;;  %v3874_v11 = vrot.slane %v3866_v33, %v7437_v44  ;;  %6715 = vmatprep.subr.bf16.mxu0 %v7045_v63 }
 0x19a   :  { %4358 = vmatprep.mubr.bf16.mxu0 %v4197_v54  ;;  %v3881_v4 = vrot.slane %v3867_v35, %v7437_v44 }
 0x19b   :  { %4359 = vmatmul.mubr.bf16.gmra.mrb[76].mxu0 %v4196_v13 }
 0x19c   :  { %v3883_v32 = vcombine.high %v3874_v11, %v3881_v4  ;;  %v3882_v14 = vcombine.low %v3874_v11, %v3881_v4  ;;  %6716 = vmatpush3.bf16.msra.mxu0 %v7045_v63 }
 0x19d   :  { %6717 = vmatprep.subr.bf16.mxu0 %v7047_v20 }
 0x1a0   :  { %4021 = vmatmul.mubr.bf16.vlgmr.msra.gmra.mrb[48].mxu1 %v3828_v47  ;;  %6718 = vmatpush3.bf16.msra.mxu0 %v7047_v20 }
 0x1a1   :  { %4028 = vmatprep.mubr.bf16.mxu1 %v3847_v30  ;;  %6692 = vmatpush3.bf16.msra.mxu1 %v7040_v31 }
 0x1a2   :  { %6693 = vmatprep.subr.bf16.mxu1 %v7042_v6  ;;  %6719 = vmatprep.subr.bf16.mxu0 %v7049_v62 }
 0x1a4   :  { %6720 = vmatpush3.bf16.msra.mxu0 %v7049_v62 }
 0x1a5   :  { %6694 = vmatpush3.bf16.msra.mxu1 %v7042_v6  ;;  %6721 = vmatprep.subr.bf16.mxu0 %v7051_v1 }
 0x1a6   :  { %6695 = vmatprep.subr.bf16.mxu1 %v7044_v43 }
 0x1a8   :  { %4029 = vmatmul.mubr.bf16.gmra.mrb[52].mxu1 %v3846_v28  ;;  %6722 = vmatpush3.bf16.msra.mxu0 %v7051_v1 }
 0x1a9   :  { %4036 = vmatprep.mubr.bf16.mxu1 %v3865_v34  ;;  %6696 = vmatpush3.bf16.msra.mxu1 %v7044_v43 }
 0x1aa   :  { %6697 = vmatprep.subr.bf16.mxu1 %v7046_v3  ;;  %6723 = vmatprep.subr.bf16.mxu0 %v7053_v26 }
 0x1ac   :  { %6724 = vmatpush3.bf16.msra.mxu0 %v7053_v26 }
 0x1ad   :  { %6698 = vmatpush3.bf16.msra.mxu1 %v7046_v3  ;;  %6725 = vmatprep.subr.bf16.mxu0 %v7055_v46 }
 0x1ae   :  { %6699 = vmatprep.subr.bf16.mxu1 %v7048_v40 }
 0x1b0   :  { %4037 = vmatmul.mubr.bf16.gmra.mrb[56].mxu1 %v3864_v60  ;;  %6726 = vmatpush3.bf16.msra.mxu0 %v7055_v46 }
 0x1b1   :  { %4044 = vmatprep.mubr.bf16.mxu1 %v3883_v32  ;;  %6700 = vmatpush3.bf16.msra.mxu1 %v7048_v40 }
 0x1b2   :  { %6701 = vmatprep.subr.bf16.mxu1 %v7050_v25 }
 0x1b5   :  { %6702 = vmatpush3.bf16.msra.mxu1 %v7050_v25 }
 0x1b6   :  { %6703 = vmatprep.subr.bf16.mxu1 %v7052_v19 }
 0x1b8   :  { %4045 = vmatmul.mubr.bf16.gmra.mrb[60].mxu1 %v3882_v14 }
 0x1b9   :  { %6704 = vmatpush3.bf16.msra.mxu1 %v7052_v19 }
 0x1ba   :  { %6705 = vmatprep.subr.bf16.mxu1 %v7054_v21 }
 0x1bd   :  { %6706 = vmatpush3.bf16.msra.mxu1 %v7054_v21  ;;  %v8532_v21 = vld [vmem:[%s8955_s4] ss:$0 sm:$0xff] }
 0x1be   :  { %6731 = vmatprep.subr.bf16.mxu1 %v8496_v48 }
 0x23b   :  { %v6503_v47 = vpop.f32.mrb[32].mxu1 }
 0x23c   :  { %v6504_v24 = vpop.f32.mrb[33].mxu1 }
 0x23d   :  { %v6505_v61 = vadd.f32 %v6504_v24, %v6503_v47  ;;  %v6506_v57 = vpop.f32.mrb[34].mxu1 }
 0x23e   :  { %v6507_v45 = vpop.f32.mrb[35].mxu1 }
 0x23f   :  { %v6583_v58 = vpop.f32.mrb[64].mxu0  ;;  %v8499_v36 = vadd.f32 %v6507_v45, %v6506_v57  ;;  %v3763_v40 = vcombine.high %v6505_v61, %v6505_v61 }
 0x240   :  { %v6584_v37 = vpop.f32.mrb[65].mxu0 }
 0x241   :  { %v6585_v15 = vadd.f32 %v6584_v37, %v6583_v58  ;;  %v6586_v55 = vpop.f32.mrb[66].mxu0  ;;  %v3764_v19 = vcombine.high %v8499_v36, %v8499_v36 }
 0x242   :  { %v6587_v29 = vpop.f32.mrb[67].mxu0 }
 0x243   :  { %v8501_v8 = vadd.f32 %v6587_v29, %v6586_v55  ;;  %v4375_v26 = vcombine.high %v6585_v15, %v6585_v15 }
 0x245   :  { %v4376_v45 = vcombine.high %v8501_v8, %v8501_v8 }
 0x24c   :  { %v6509_v2 = vpop.f32.mrb[36].mxu1 }
 0x24d   :  { %v6510_v7 = vpop.f32.mrb[37].mxu1 }
 0x24e   :  { %v8503_v5 = vadd.f32 %v6510_v7, %v6509_v2  ;;  %v6512_v9 = vpop.f32.mrb[38].mxu1 }
 0x24f   :  { %v6513_v51 = vpop.f32.mrb[39].mxu1 }
 0x250   :  { %v6589_v50 = vpop.f32.mrb[68].mxu0  ;;  %v8505_v52 = vadd.f32 %v6513_v51, %v6512_v9 }
 0x251   :  { %v6590_v18 = vpop.f32.mrb[69].mxu0 }
 0x252   :  { %v8507_v22 = vadd.f32 %v6590_v18, %v6589_v50  ;;  %v6592_v41 = vpop.f32.mrb[70].mxu0  ;;  %v3766_v7 = vcombine.high %v8505_v52, %v8505_v52 }
 0x253   :  { %v6593_v27 = vpop.f32.mrb[71].mxu0 }
 0x254   :  { %v8509_v56 = vadd.f32 %v6593_v27, %v6592_v41 }
 0x25c   :  { %v6515_v53 = vpop.f32.mrb[40].mxu1 }
 0x25d   :  { %v6516_v59 = vpop.f32.mrb[41].mxu1 }
 0x25e   :  { %v8511_v49 = vadd.f32 %v6516_v59, %v6515_v53  ;;  %v6518_v10 = vpop.f32.mrb[42].mxu1 }
 0x25f   :  { %v6519_v16 = vpop.f32.mrb[43].mxu1 }
 0x260   :  { %v6595_v17 = vpop.f32.mrb[72].mxu0  ;;  %v8513_v38 = vadd.f32 %v6519_v16, %v6518_v10  ;;  %v3767_v9 = vcombine.high %v8511_v49, %v8511_v49 }
 0x261   :  { %v6596_v39 = vpop.f32.mrb[73].mxu0 }
 0x262   :  { %v8515_v30 = vadd.f32 %v6596_v39, %v6595_v17  ;;  %v6598_v28 = vpop.f32.mrb[74].mxu0  ;;  %v3768_v53 = vcombine.high %v8513_v38, %v8513_v38 }
 0x263   :  { %v6599_v12 = vpop.f32.mrb[75].mxu0 }
 0x264   :  { %v8517_v33 = vadd.f32 %v6599_v12, %v6598_v28  ;;  %v4379_v59 = vcombine.high %v8515_v30, %v8515_v30 }
 0x266   :  { %v4380_v10 = vcombine.high %v8517_v33, %v8517_v33 }
 0x26b   :  { %v6521_v54 = vpop.f32.mrb[44].mxu1 }
 0x26c   :  { %v6522_v13 = vpop.f32.mrb[45].mxu1 }
 0x26d   :  { %v8519_v35 = vadd.f32 %v6522_v13, %v6521_v54  ;;  %v6524_v34 = vpop.f32.mrb[46].mxu1 }
 0x26e   :  { %v6601_v60 = vpop.f32.mrb[76].mxu0  ;;  %v6525_v11 = vpop.f32.mrb[47].mxu1 }
 0x26f   :  { %v6602_v4 = vpop.f32.mrb[77].mxu0  ;;  %v8521_v32 = vadd.f32 %v6525_v11, %v6524_v34  ;;  %v3769_v13 = vcombine.high %v8519_v35, %v8519_v35 }
 0x270   :  { %v8523_v14 = vadd.f32 %v6602_v4, %v6601_v60  ;;  %v6604_v31 = vpop.f32.mrb[78].mxu0 }
 0x271   :  { %v6605_v23 = vpop.f32.mrb[79].mxu0 }
 0x272   :  { %v8525_v6 = vadd.f32 %v6605_v23, %v6604_v31 }
 0x273   :  { %v6543_v0 = vpop.f32.mrb[48].mxu1 }
 0x274   :  { %v6544_v43 = vpop.f32.mrb[49].mxu1 }
 0x275   :  { %v6545_v63 = vadd.f32 %v6544_v43, %v6543_v0  ;;  %v6546_v3 = vpop.f32.mrb[50].mxu1 }
 0x276   :  { %v6547_v20 = vpop.f32.mrb[51].mxu1 }
 0x277   :  { %v4061_v62 = vcombine.high %v6545_v63, %v6545_v63  ;;  %v4077_v25 = vadd.f32 %v6545_v63, %v6505_v61  ;;  %v6548_v1 = vadd.f32 %v6547_v20, %v6546_v3  ;;  %v3765_v61 = vcombine.high %v8503_v5, %v8503_v5 }
 0x279   :  { %v4078_v46 = vadd.f32 %v4061_v62, %v3763_v40  ;;  %v4391_v47 = vadd.f32 %v6585_v15, %v4077_v25  ;;  %v4062_v24 = vcombine.high %v6548_v1, %v6548_v1  ;;  %v4079_v57 = vadd.f32 %v6548_v1, %v8499_v36 }
 0x27a   :  { %v4377_v15 = vcombine.high %v8507_v22, %v8507_v22  ;;  %v4378_v36 = vcombine.high %v8509_v56, %v8509_v56  ;;  %v3770_v40 = vcombine.high %v8521_v32, %v8521_v32 }
 0x27b   :  { %v4392_v58 = vadd.f32 %v4375_v26, %v4078_v46  ;;  %v4414_v37 = vadd.f32 %v8532_v21, %v4391_v47  ;;  %v4080_v55 = vadd.f32 %v4062_v24, %v3764_v19  ;;  %v4393_v29 = vadd.f32 %v8501_v8, %v4079_v57  ;;  %v6549_v2 = vpop.f32.mrb[52].mxu1 }
 0x27c   :  { %v6550_v51 = vpop.f32.mrb[53].mxu1 }
 0x27d   :  { %v4415_v50 = vadd.f32 %v8532_v21, %v4392_v58  ;;  %v4430_v18 = vmax.f32 %v4414_v37, 0.0  ;;  %v4394_v41 = vadd.f32 %v4376_v45, %v4080_v55  ;;  %v4416_v8 = vadd.f32 %v8532_v21, %v4393_v29  ;;  %v6552_v27 = vpop.f32.mrb[54].mxu1 }
 0x27e   :  { %v6551_v16 = vadd.f32 %v6550_v51, %v6549_v2  ;;  %v6553_v17 = vpop.f32.mrb[55].mxu1 }
 0x27f   :  { %v4431_v39 = vmax.f32 %v4415_v50, 0.0  ;;  %v4446_v28 = vpack.c.bf16 %v4430_v18, %v4430_v18  ;;  %v4417_v12 = vadd.f32 %v8532_v21, %v4394_v41  ;;  %v4432_v54 = vmax.f32 %v4416_v8, 0.0 }
 0x280   :  { %v4063_v34 = vcombine.high %v6551_v16, %v6551_v16  ;;  %v4081_v60 = vadd.f32 %v6551_v16, %v8503_v5  ;;  %v6554_v11 = vadd.f32 %v6553_v17, %v6552_v27 }
 0x281   :  { %4462 = vst [vmem:[#allocation4] sm:$0x3] %v4446_v28  ;;  %v4433_v4 = vmax.f32 %v4417_v12, 0.0  ;;  %v4448_v31 = vpack.c.bf16 %v4432_v54, %v4432_v54  ;;  %v4447_v23 = vpack.c.bf16 %v4431_v39, %v4431_v39  ;;  %v6325_v0 = vpack.c.bf16 %v4432_v54, %v4430_v18 }
 0x282   :  { %v4082_v43 = vadd.f32 %v4063_v34, %v3765_v61  ;;  %v4395_v63 = vadd.f32 %v8507_v22, %v4081_v60  ;;  %v4064_v3 = vcombine.high %v6554_v11, %v6554_v11  ;;  %v4083_v20 = vadd.f32 %v6554_v11, %v8505_v52 }
 0x283   :  { %v4449_v62 = vpack.c.bf16 %v4433_v4, %v4433_v4  ;;  %4464 = vst [vmem:[#allocation4 + $0x4] sm:$0x3] %v4448_v31  ;;  %v6555_v25 = vpop.f32.mrb[56].mxu1  ;;  %4463 = vst [vmem:[#allocation4 + $0x2] sm:$0x3] %v4447_v23  ;;  %v4501_v5 = vcombine.low %v7229_v42, %v4447_v23  ;;  %v6353_v1 = vpack.c.bf16 %v4433_v4, %v4431_v39 }
 0x284   :  { %v4396_v19 = vadd.f32 %v4377_v15, %v4082_v43  ;;  %v4418_v26 = vadd.f32 %v8532_v21, %v4395_v63  ;;  %v4084_v46 = vadd.f32 %v4064_v3, %v3766_v7  ;;  %v4397_v47 = vadd.f32 %v8509_v56, %v4083_v20  ;;  %v6556_v22 = vpop.f32.mrb[57].mxu1 }
 0x285   :  { %v4381_v52 = vcombine.high %v8523_v14, %v8523_v14  ;;  %4465 = vst [vmem:[#allocation4 + $0x6] sm:$0x3] %v4449_v62  ;;  %v6557_v24 = vadd.f32 %v6556_v22, %v6555_v25  ;;  %v6558_v57 = vpop.f32.mrb[58].mxu1  ;;  %v4509_v45 = vrot.slane %v4501_v5, %v7437_v44  ;;  %v8572_v61 = vrot.slane %v6325_v0, %v7437_v44 }
 0x286   :  { %v4419_v58 = vadd.f32 %v8532_v21, %v4396_v19  ;;  %v4434_v37 = vmax.f32 %v4418_v26, 0.0  ;;  %v4398_v55 = vadd.f32 %v4378_v36, %v4084_v46  ;;  %v4420_v29 = vadd.f32 %v8532_v21, %v4397_v47  ;;  %v6559_v2 = vpop.f32.mrb[59].mxu1 }
 0x287   :  { %v4065_v56 = vcombine.high %v6557_v24, %v6557_v24  ;;  %v4085_v7 = vadd.f32 %v6557_v24, %v8511_v49  ;;  %v6560_v15 = vadd.f32 %v6559_v2, %v6558_v57  ;;  %v8578_v51 = vrot.slane %v6353_v1, %v7437_v44 }
 0x288   :  { %v4435_v50 = vmax.f32 %v4419_v58, 0.0  ;;  %v4450_v18 = vpack.c.bf16 %v4434_v37, %v4434_v37  ;;  %v4421_v41 = vadd.f32 %v8532_v21, %v4398_v55  ;;  %v4436_v8 = vmax.f32 %v4420_v29, 0.0 }
 0x289   :  { %v4086_v27 = vadd.f32 %v4065_v56, %v3767_v9  ;;  %v4399_v16 = vadd.f32 %v8515_v30, %v4085_v7  ;;  %v4066_v17 = vcombine.high %v6560_v15, %v6560_v15  ;;  %v4087_v36 = vadd.f32 %v6560_v15, %v8513_v38 }
 0x28a   :  { %v4451_v39 = vpack.c.bf16 %v4435_v50, %v4435_v50  ;;  %4466 = vst [vmem:[#allocation4 + $0x8] sm:$0x3] %v4450_v18  ;;  %v8583_v28 = vmax.f32 %v4421_v41, 0.0  ;;  %v4452_v49 = vpack.c.bf16 %v4436_v8, %v4436_v8  ;;  %v6298_v12 = vpack.c.bf16 %v4435_v50, %v4433_v4 }
 0x28b   :  { %v4400_v54 = vadd.f32 %v4379_v59, %v4086_v27  ;;  %v4422_v34 = vadd.f32 %v8532_v21, %v4399_v16  ;;  %v4088_v60 = vadd.f32 %v4066_v17, %v3768_v53  ;;  %v4401_v9 = vadd.f32 %v8517_v33, %v4087_v36  ;;  %v6561_v11 = vpop.f32.mrb[60].mxu1 }
 0x28c   :  { %4467 = vst [vmem:[#allocation4 + $0xa] sm:$0x3] %v4451_v39  ;;  %v4453_v30 = vpack.c.bf16 %v8583_v28, %v8583_v28  ;;  %4468 = vst [vmem:[#allocation4 + $0xc] sm:$0x3] %v4452_v49  ;;  %v6562_v31 = vpop.f32.mrb[61].mxu1  ;;  %v4516_v23 = vrot.slane %v6298_v12, %v7437_v44  ;;  %v6326_v0 = vpack.c.bf16 %v4436_v8, %v4434_v37 }
 0x28d   :  { %v6354_v59 = vpack.c.bf16 %v8583_v28, %v4435_v50  ;;  %v4423_v4 = vadd.f32 %v8532_v21, %v4400_v54  ;;  %v4438_v43 = vmax.f32 %v4422_v34, 0.0  ;;  %v4402_v38 = vadd.f32 %v4380_v10, %v4088_v60  ;;  %v6564_v63 = vpop.f32.mrb[62].mxu1 }
 0x28e   :  { %v4424_v53 = vadd.f32 %v8532_v21, %v4401_v9  ;;  %4469 = vst [vmem:[#allocation4 + $0xe] sm:$0x3] %v4453_v30  ;;  %v6563_v3 = vadd.f32 %v6562_v31, %v6561_v11  ;;  %v6565_v20 = vpop.f32.mrb[63].mxu1  ;;  %v4517_v62 = vcombine.low %v4509_v45, %v4516_v23  ;;  %v4686_v25 = vrot.slane %v6326_v0, %v7437_v44  ;;  %v7057_v11 = vld [vmem:[%s8956_s5 + $0x88] sm:$0xff]  }
 0x28f   :  { %v8601_v5 = vrot.slane %v6354_v59, %v7437_v44  ;;  %v4439_v1 = vmax.f32 %v4423_v4, 0.0  ;;  %v4454_v19 = vpack.c.bf16 %v4438_v43, %v4438_v43  ;;  %v4425_v26 = vadd.f32 %v8532_v21, %v4402_v38  ;;  %v7058_v59 = vld [vmem:[%s8956_s5 + $0x90] sm:$0xff]   ;;  %v7059_v4 = vld [vmem:[%s8956_s5 + $0x98] sm:$0xff]  }
 0x290   :  { %v4440_v46 = vmax.f32 %v4424_v53, 0.0  ;;  %v4067_v47 = vcombine.high %v6563_v3, %v6563_v3  ;;  %v4089_v33 = vadd.f32 %v6563_v3, %v8519_v35  ;;  %v6566_v10 = vadd.f32 %v6565_v20, %v6564_v63  ;;  %6707 = vmatprep.mubr.bf16.mxu1 %v4517_v62  ;;  %v7062_v38 = vld [vmem:[%s8956_s5 + $0xb0] sm:$0xff]   ;;  %v7063_v53 = vld [vmem:[%s8956_s5 + $0xb8] sm:$0xff]   ;;  %v7064_v63 = vld [vmem:[%s8958_s7 + $0x40] sm:$0xff]  }
 0x291   :  { %v4687_v22 = vcombine.low %v8572_v61, %v4686_v25  ;;  %v4455_v24 = vpack.c.bf16 %v4439_v1, %v4439_v1  ;;  %4470 = vst [vmem:[#allocation4 + $0x10] sm:$0x3] %v4454_v19  ;;  %v6299_v57 = vpack.c.bf16 %v4439_v1, %v8583_v28  ;;  %v4441_v45 = vmax.f32 %v4425_v26, 0.0  ;;  %v7065_v3 = vld [vmem:[%s8958_s7] sm:$0xff]   ;;  %v7066_v62 = vld [vmem:[%s8958_s7 + $0x48] sm:$0xff]   ;;  %v7070_v19 = vld [vmem:[%s8958_s7 + $0x58] sm:$0xff]  }
 0x292   :  { %v4456_v58 = vpack.c.bf16 %v4440_v46, %v4440_v46  ;;  %v6327_v37 = vpack.c.bf16 %v4440_v46, %v4438_v43  ;;  %v4090_v55 = vadd.f32 %v4067_v47, %v3769_v13  ;;  %v4403_v29 = vadd.f32 %v8523_v14, %v4089_v33  ;;  %v7060_v43 = vld [vmem:[%s8956_s5 + $0xa0] sm:$0xff]   ;;  %v7067_v25 = vld [vmem:[%s8958_s7 + $0x8] sm:$0xff]   ;;  %v7071_v26 = vld [vmem:[%s8958_s7 + $0x18] sm:$0xff]  }
 0x293   :  { %v4068_v2 = vcombine.high %v6566_v10, %v6566_v10  ;;  %6727 = vmatprep.mubr.bf16.mxu0 %v4687_v22  ;;  %4471 = vst [vmem:[#allocation4 + $0x12] sm:$0x3] %v4455_v24  ;;  %v4457_v56 = vpack.c.bf16 %v4441_v45, %v4441_v45  ;;  %v4091_v61 = vadd.f32 %v6566_v10, %v8521_v32  ;;  %v7230_v20 = vmov 0.0   ;;  %v7072_v46 = vld [vmem:[%s8958_s7 + $0x60] sm:$0xff]   ;;  %v7074_v33 = vld [vmem:[%s8958_s7 + $0x68] sm:$0xff]   ;;  %v7076_v22 = vld [vmem:[%s8958_s7 + $0x70] sm:$0xff]  }
 0x294   :  { %4472 = vst [vmem:[#allocation4 + $0x14] sm:$0x3] %v4456_v58  ;;  %v4858_v7 = vcombine.low %v8578_v51, %v8601_v5  ;;  %v4382_v15 = vcombine.high %v8525_v6, %v8525_v6  ;;  %v4404_v35 = vadd.f32 %v4381_v52, %v4090_v55  ;;  %v4426_v13 = vadd.f32 %v8532_v21, %v4403_v29  ;;  %v7068_v5 = vld [vmem:[%s8958_s7 + $0x50] sm:$0xff]   ;;  %v7073_v47 = vld [vmem:[%s8958_s7 + $0x20] sm:$0xff]   ;;  %v7075_v10 = vld [vmem:[%s8958_s7 + $0x28] sm:$0xff]  }
 0x295   :  { %v4092_v50 = vadd.f32 %v4068_v2, %v3770_v40  ;;  %4473 = vst [vmem:[#allocation4 + $0x16] sm:$0x3] %v4457_v56  ;;  %v4405_v18 = vadd.f32 %v8525_v6, %v4091_v61  ;;  %v6355_v41 = vpack.c.bf16 %v4441_v45, %v4439_v1  ;;  %v4526_v54 = vrot.slane %v6299_v57, %v7437_v44  ;;  %v7069_v1 = vld [vmem:[%s8958_s7 + $0x10] sm:$0xff]   ;;  %v7078_v57 = vld [vmem:[%s8958_s7 + $0x78] sm:$0xff]  }
 0x296   :  { %v4427_v8 = vadd.f32 %v8532_v21, %v4404_v35  ;;  %v4442_v51 = vmax.f32 %v4426_v13, 0.0  ;;  %v4696_v60 = vrot.slane %v6327_v37, %v7437_v44  ;;  %6751 = vmatprep.subr.bf16.mxu0 %v7230_v20  ;;  %v7077_v24 = vld [vmem:[%s8958_s7 + $0x30] sm:$0xff]  }
 0x297   :  { %v4406_v27 = vadd.f32 %v4382_v15, %v4092_v50  ;;  %v4428_v16 = vadd.f32 %v8532_v21, %v4405_v18  ;;  %v4867_v30 = vrot.slane %v6355_v41, %v7437_v44 }
 0x298   :  { %v4443_v17 = vmax.f32 %v4427_v8, 0.0  ;;  %v4458_v36 = vpack.c.bf16 %v4442_v51, %v4442_v51 }
 0x299   :  { %v4429_v14 = vadd.f32 %v8532_v21, %v4406_v27  ;;  %v4444_v52 = vmax.f32 %v4428_v16, 0.0 }
 0x29a   :  { %v4459_v39 = vpack.c.bf16 %v4443_v17, %v4443_v17  ;;  %4474 = vst [vmem:[#allocation4 + $0x18] sm:$0x3] %v4458_v36  ;;  %v6300_v28 = vpack.c.bf16 %v4443_v17, %v4441_v45  ;;  %v7079_v45 = vld [vmem:[%s8958_s7 + $0x38] sm:$0xff]  }
 0x29b   :  { %v4445_v32 = vmax.f32 %v4429_v14, 0.0  ;;  %v4460_v40 = vpack.c.bf16 %v4444_v52, %v4444_v52  ;;  %v6328_v49 = vpack.c.bf16 %v4444_v52, %v4442_v51 }
 0x29c   :  { %4475 = vst [vmem:[#allocation4 + $0x1a] sm:$0x3] %v4459_v39  ;;  %v4533_v34 = vrot.slane %v6300_v28, %v7437_v44 }
 0x29d   :  { %v4461_v6 = vpack.c.bf16 %v4445_v32, %v4445_v32  ;;  %v6356_v12 = vpack.c.bf16 %v4445_v32, %v4443_v17  ;;  %4476 = vst [vmem:[#allocation4 + $0x1c] sm:$0x3] %v4460_v40  ;;  %v4703_v9 = vrot.slane %v6328_v49, %v7437_v44  ;;  %v6365_v40 = vld [vmem:[%s8957_s6] ss:$0 sm:$0xff] }
 0x29e   :  { %v4534_v21 = vcombine.low %v4526_v54, %v4533_v34 }
 0x29f   :  { %4477 = vst [vmem:[#allocation4 + $0x1e] sm:$0x3] %v4461_v6  ;;  %v4874_v31 = vrot.slane %v6356_v12, %v7437_v44  ;;  %v4704_v23 = vcombine.low %v4696_v60, %v4703_v9 }
 0x2a0   :  { %6708 = vmatmul.mubr.bf16.vlgmr.msra.gmra.mrb[64].mxu1 %v4534_v21 }
 0x2a1   :  { %v4875_v0 = vcombine.low %v4867_v30, %v4874_v31  ;;  %6728 = vmatmul.mubr.bf16.vlgmr.msra.gmra.mrb[80].mxu0 %v4704_v23  ;;  %6732 = vmatpush3.bf16.msra.mxu1 %v8496_v48  ;;  %v7061_v48 = vld [vmem:[%s8956_s5 + $0xa8] sm:$0xff]  }
 0x2a2   :  { %6747 = vmatprep.mubr.bf16.mxu1 %v4858_v7  ;;  %6733 = vmatprep.subr.bf16.mxu1 %v7057_v11 }
 0x2a3   :  { %6752 = vmatpush3.bf16.msra.mxu0 %v7065_v3  ;;  %6767 = vmatprep.mubr.msk.bf16.mxu0 %vm7231_vm1, %v7230_v20 }
 0x2a4   :  { %6753 = vmatprep.subr.bf16.mxu0 %v7230_v20 }
 0x2a5   :  { %6734 = vmatpush3.bf16.msra.mxu1 %v7057_v11 }
 0x2a6   :  { %6735 = vmatprep.subr.bf16.mxu1 %v7058_v59 }
 0x2a7   :  { %6754 = vmatpush3.bf16.msra.mxu0 %v7067_v25 }
 0x2a8   :  { %6755 = vmatprep.subr.bf16.mxu0 %v7230_v20 }
 0x2a9   :  { %6736 = vmatpush3.bf16.msra.mxu1 %v7058_v59 }
 0x2aa   :  { %6737 = vmatprep.subr.bf16.mxu1 %v7059_v4 }
 0x2ab   :  { %6756 = vmatpush3.bf16.msra.mxu0 %v7069_v1 }
 0x2ac   :  { %6757 = vmatprep.subr.bf16.mxu0 %v7230_v20 }
 0x2ad   :  { %6738 = vmatpush3.bf16.msra.mxu1 %v7059_v4 }
 0x2ae   :  { %6739 = vmatprep.subr.bf16.mxu1 %v7060_v43 }
 0x2af   :  { %6758 = vmatpush3.bf16.msra.mxu0 %v7071_v26 }
 0x2b0   :  { %6759 = vmatprep.subr.bf16.mxu0 %v7230_v20 }
 0x2b1   :  { %6740 = vmatpush3.bf16.msra.mxu1 %v7060_v43 }
 0x2b2   :  { %6741 = vmatprep.subr.bf16.mxu1 %v7061_v48 }
 0x2b3   :  { %6760 = vmatpush3.bf16.msra.mxu0 %v7073_v47 }
 0x2b4   :  { %6761 = vmatprep.subr.bf16.mxu0 %v7230_v20 }
 0x2b5   :  { %6742 = vmatpush3.bf16.msra.mxu1 %v7061_v48 }
 0x2b6   :  { %6743 = vmatprep.subr.bf16.mxu1 %v7062_v38 }
 0x2b7   :  { %6762 = vmatpush3.bf16.msra.mxu0 %v7075_v10 }
 0x2b8   :  { %6763 = vmatprep.subr.bf16.mxu0 %v7230_v20 }
 0x2b9   :  { %6744 = vmatpush3.bf16.msra.mxu1 %v7062_v38 }
 0x2ba   :  { %6745 = vmatprep.subr.bf16.mxu1 %v7063_v53 }
 0x2bb   :  { %6764 = vmatpush3.bf16.msra.mxu0 %v7077_v24 }
 0x2bc   :  { %6765 = vmatprep.subr.bf16.mxu0 %v7230_v20 }
 0x2bd   :  { %6746 = vmatpush3.bf16.msra.mxu1 %v7063_v53 }
 0x2be   :  { %6771 = vmatprep.subr.bf16.mxu1 %v7230_v20 }
 0x2bf   :  { %6766 = vmatpush3.bf16.msra.mxu0 %v7079_v45 }
 0x2c0   :  { %6748 = vmatmul.mubr.bf16.vlgmr.msra.gmra.mrb[68].mxu1 %v4875_v0  ;;  %6791 = vmatprep.subr.bf16.mxu0 %v7230_v20 }
 0x2c1   :  { %6772 = vmatpush3.bf16.msra.mxu1 %v7064_v63  ;;  %6787 = vmatprep.mubr.msk.bf16.mxu1 %vm7231_vm1, %v7230_v20 }
 0x2c2   :  { %6773 = vmatprep.subr.bf16.mxu1 %v7230_v20 }
 0x2c5   :  { %6774 = vmatpush3.bf16.msra.mxu1 %v7066_v62 }
 0x2c6   :  { %6775 = vmatprep.subr.bf16.mxu1 %v7230_v20 }
 0x2c9   :  { %6776 = vmatpush3.bf16.msra.mxu1 %v7068_v5 }
 0x2ca   :  { %6777 = vmatprep.subr.bf16.mxu1 %v7230_v20 }
 0x2cd   :  { %6778 = vmatpush3.bf16.msra.mxu1 %v7070_v19 }
 0x2ce   :  { %6779 = vmatprep.subr.bf16.mxu1 %v7230_v20 }
 0x2d1   :  { %6780 = vmatpush3.bf16.msra.mxu1 %v7072_v46 }
 0x2d2   :  { %6781 = vmatprep.subr.bf16.mxu1 %v7230_v20 }
 0x2d5   :  { %6782 = vmatpush3.bf16.msra.mxu1 %v7074_v33 }
 0x2d6   :  { %6783 = vmatprep.subr.bf16.mxu1 %v7230_v20 }
 0x2d9   :  { %6784 = vmatpush3.bf16.msra.mxu1 %v7076_v22 }
 0x2da   :  { %6785 = vmatprep.subr.bf16.mxu1 %v7230_v20 }
 0x2dd   :  { %6786 = vmatpush3.bf16.msra.mxu1 %v7078_v57 }
 0x2de   :  { %6811 = vmatprep.subr.bf16.mxu1 %v7230_v20 }
 0x373   :  { %v6709_v58 = vpop.f32.mrb[64].mxu1 }
 0x374   :  { %v4640_v37 = vcombine.high %v6709_v58, %v6709_v58  ;;  %v6729_v55 = vpop.f32.mrb[80].mxu0  ;;  %v4619_v29 = vpop.f32.mrb[65].mxu1 }
 0x375   :  { %v4810_v2 = vcombine.high %v6729_v55, %v6729_v55  ;;  %v4820_v56 = vadd.f32 %v6729_v55, %v6709_v58  ;;  %v4638_v61 = vcombine.high %v4619_v29, %v4619_v29  ;;  %v4789_v7 = vpop.f32.mrb[81].mxu0  ;;  %v6710_v15 = vpop.f32.mrb[66].mxu1 }
 0x376   :  { %v4808_v35 = vcombine.high %v4789_v7, %v4789_v7  ;;  %v4816_v13 = vadd.f32 %v4789_v7, %v4619_v29  ;;  %v4641_v50 = vcombine.high %v6710_v15, %v6710_v15  ;;  %v6730_v18 = vpop.f32.mrb[82].mxu0  ;;  %v4622_v41 = vpop.f32.mrb[67].mxu1 }
 0x377   :  { %v4821_v8 = vadd.f32 %v4810_v2, %v4640_v37  ;;  %v4811_v51 = vcombine.high %v6730_v18, %v6730_v18  ;;  %v4822_v27 = vadd.f32 %v6730_v18, %v6710_v15  ;;  %v4639_v16 = vcombine.high %v4622_v41, %v4622_v41  ;;  %v4792_v17 = vpop.f32.mrb[83].mxu0 }
 0x378   :  { %v4817_v36 = vadd.f32 %v4808_v35, %v4638_v61  ;;  %v4809_v14 = vcombine.high %v4792_v17, %v4792_v17  ;;  %v4818_v52 = vadd.f32 %v4792_v17, %v4622_v41 }
 0x379   :  { %v4823_v39 = vadd.f32 %v4811_v51, %v4641_v50 }
 0x37a   :  { %v4819_v28 = vadd.f32 %v4809_v14, %v4639_v16  ;;  %v7081_v14 = vld [vmem:[%s8958_s7 + $0x88] sm:$0xff]  }
 0x393   :  { %v6749_v32 = vpop.f32.mrb[68].mxu1 }
 0x394   :  { %v4981_v49 = vcombine.high %v6749_v32, %v6749_v32  ;;  %v4991_v6 = vadd.f32 %v6749_v32, %v4820_v56  ;;  %v4960_v12 = vpop.f32.mrb[69].mxu1  ;;  %v7085_v32 = vld [vmem:[%s8958_s7 + $0xa8] sm:$0xff]  }
 0x395   :  { %v4979_v54 = vcombine.high %v4960_v12, %v4960_v12  ;;  %v4987_v34 = vadd.f32 %v4960_v12, %v4816_v13  ;;  %v6750_v60 = vpop.f32.mrb[70].mxu1  ;;  %v7089_v12 = vld [vmem:[%s8960_s9] sm:$0xff]  }
 0x396   :  { %v4992_v9 = vadd.f32 %v4981_v49, %v4821_v8  ;;  %v5006_v21 = vadd.f32 %v6365_v40, %v4991_v6  ;;  %v4982_v11 = vcombine.high %v6750_v60, %v6750_v60  ;;  %v4993_v30 = vadd.f32 %v6750_v60, %v4822_v27  ;;  %v4963_v31 = vpop.f32.mrb[71].mxu1  ;;  %v7080_v27 = vld [vmem:[%s8958_s7 + $0x80] sm:$0xff]   ;;  %v7087_v49 = vld [vmem:[%s8958_s7 + $0xb8] sm:$0xff]   ;;  %v7092_v60 = vld [vmem:[%s8960_s9 + $0x50] sm:$0xff]  }
 0x397   :  { %v4988_v23 = vadd.f32 %v4979_v54, %v4817_v36  ;;  %v5002_v0 = vadd.f32 %v6365_v40, %v4987_v34  ;;  %v4980_v59 = vcombine.high %v4963_v31, %v4963_v31  ;;  %v4989_v4 = vadd.f32 %v4963_v31, %v4818_v52  ;;  %v7082_v52 = vld [vmem:[%s8958_s7 + $0x90] sm:$0xff]   ;;  %v7088_v6 = vld [vmem:[%s8960_s9 + $0x40] sm:$0xff]   ;;  %v7090_v54 = vld [vmem:[%s8960_s9 + $0x48] sm:$0xff]  }
 0x398   :  { %v5007_v43 = vadd.f32 %v6365_v40, %v4992_v9  ;;  %v5014_v48 = vmax.f32 %v5006_v21, 0.0  ;;  %v4994_v38 = vadd.f32 %v4982_v11, %v4823_v39  ;;  %v5008_v53 = vadd.f32 %v6365_v40, %v4993_v30  ;;  %v7083_v39 = vld [vmem:[%s8958_s7 + $0x98] sm:$0xff]   ;;  %v7091_v34 = vld [vmem:[%s8960_s9 + $0x8] sm:$0xff]   ;;  %v7093_v9 = vld [vmem:[%s8960_s9 + $0x10] sm:$0xff]  }
 0x399   :  { %v5003_v63 = vadd.f32 %v6365_v40, %v4988_v23  ;;  %v5010_v3 = vmax.f32 %v5002_v0, 0.0  ;;  %v4990_v62 = vadd.f32 %v4980_v59, %v4819_v28  ;;  %v5004_v25 = vadd.f32 %v6365_v40, %v4989_v4  ;;  %v7084_v28 = vld [vmem:[%s8958_s7 + $0xa0] sm:$0xff]   ;;  %v7094_v21 = vld [vmem:[%s8960_s9 + $0x58] sm:$0xff]   ;;  %v7098_v23 = vld [vmem:[%s8960_s9 + $0x68] sm:$0xff]  }
 0x39a   :  { %v5015_v5 = vmax.f32 %v5007_v43, 0.0  ;;  %v5022_v1 = vpack.c.bf16 %v5014_v48, %v5014_v48  ;;  %v5009_v19 = vadd.f32 %v6365_v40, %v4994_v38  ;;  %v5016_v26 = vmax.f32 %v5008_v53, 0.0  ;;  %v7095_v11 = vld [vmem:[%s8960_s9 + $0x18] sm:$0xff]   ;;  %v7096_v30 = vld [vmem:[%s8960_s9 + $0x60] sm:$0xff]   ;;  %v7099_v0 = vld [vmem:[%s8960_s9 + $0x28] sm:$0xff]  }
 0x39b   :  { %v5011_v46 = vmax.f32 %v5003_v63, 0.0  ;;  %v5018_v47 = vpack.c.bf16 %v5010_v3, %v5010_v3  ;;  %v5005_v33 = vadd.f32 %v6365_v40, %v4990_v62  ;;  %v5012_v10 = vmax.f32 %v5004_v25, 0.0  ;;  %v7086_v40 = vld [vmem:[%s8958_s7 + $0xb0] sm:$0xff]   ;;  %v7097_v31 = vld [vmem:[%s8960_s9 + $0x20] sm:$0xff]   ;;  %v7102_v43 = vld [vmem:[%s8960_s9 + $0x78] sm:$0xff]   ;;  %s5852_s7 = sshll.u32 %s7232_s3, 4  ;;  %s5853_s7 = int_to_ptr.vmem [resolvable:$true] %s5852_s7 }
 0x39c   :  { %v5023_v22 = vpack.c.bf16 %v5015_v5, %v5015_v5  ;;  %5030 = vst [vmem:[#allocation6 + $0x8] sm:$0x3] %v5022_v1  ;;  %v5017_v24 = vmax.f32 %v5009_v19, 0.0  ;;  %v5024_v57 = vpack.c.bf16 %v5016_v26, %v5016_v26  ;;  %v6392_v45 = vpack.c.bf16 %v5016_v26, %v5014_v48  ;;  %v7100_v59 = vld [vmem:[%s8960_s9 + $0x70] sm:$0xff]   ;;  %v7103_v48 = vld [vmem:[%s8960_s9 + $0x38] sm:$0xff]   ;;  %s7112_s28 = scalar_lea.vmem %s5853_s7, 512  ;;  %p7117_p1 = scmp.lt.s32.totalorder %s5853_s7, %s5853_s7 }
 0x39d   :  { %v5019_v58 = vpack.c.bf16 %v5011_v46, %v5011_v46  ;;  %5026 = vst [vmem:[#allocation6] sm:$0x3] %v5018_v47  ;;  %v5013_v37 = vmax.f32 %v5005_v33, 0.0  ;;  %v5020_v55 = vpack.c.bf16 %v5012_v10, %v5012_v10  ;;  %v6391_v29 = vpack.c.bf16 %v5012_v10, %v5010_v3  ;;  %v7101_v4 = vld [vmem:[%s8960_s9 + $0x30] sm:$0xff]   ;;  %p7113_p0 = scmp.ne.s32.totalorder %s5853_s7, %s7112_s28  ;;  %p7118_p2 = scmp.lt.s32.totalorder %s7112_s28, %s7112_s28 }
 0x39e   :  { %5031 = vst [vmem:[#allocation6 + $0xa] sm:$0x3] %v5023_v22  ;;  %v5025_v2 = vpack.c.bf16 %v5017_v24, %v5017_v24  ;;  %5032 = vst [vmem:[#allocation6 + $0xc] sm:$0x3] %v5024_v57  ;;  %v5202_v56 = vrot.slane %v6392_v45, %v7437_v44  ;;  %v6418_v61 = vpack.c.bf16 %v5017_v24, %v5015_v5  ;;  %v6427_v45 = vld [vmem:[%s8959_s8] ss:$0 sm:$0xff] }
 0x39f   :  { %5027 = vst [vmem:[#allocation6 + $0x2] sm:$0x3] %v5019_v58  ;;  %v5053_v7 = vcombine.low %v7229_v42, %v5019_v58  ;;  %v5021_v15 = vpack.c.bf16 %v5013_v37, %v5013_v37  ;;  %5028 = vst [vmem:[#allocation6 + $0x4] sm:$0x3] %v5020_v55  ;;  %v6366_v35 = vpack.c.bf16 %v5015_v5, %v5013_v37  ;;  %p7119_p3 = por %p7118_p2, %p7117_p1 }
 0x3a0   :  { %v5195_v13 = vrot.slane %v6391_v29, %v7437_v44  ;;  %5033 = vst [vmem:[#allocation6 + $0xe] sm:$0x3] %v5025_v2  ;;  %v6417_v50 = vpack.c.bf16 %v5013_v37, %v5011_v46  ;;  %v5337_v18 = vrot.slane %v6418_v61, %v7437_v44 }
 0x3a1   :  { %5029 = vst [vmem:[#allocation6 + $0x6] sm:$0x3] %v5021_v15  ;;  %v5061_v8 = vrot.slane %v5053_v7, %v7437_v44  ;;  %v5068_v51 = vrot.slane %v6366_v35, %v7437_v44  ;;  %p7120_p4 = pnand %p7119_p3, %p7113_p0 }
 0x3a2   :  { %v5203_v41 = vcombine.low %v5195_v13, %v5202_v56  ;;  %v5330_v16 = vrot.slane %v6417_v50, %v7437_v44 }
 0x3a3   :  { %v5069_v17 = vcombine.low %v5061_v8, %v5068_v51 }
 0x3a4   :  { %6788 = vmatmul.mubr.bf16.vlgmr.msra.gmra.mrb[72].mxu1 %v5203_v41  ;;  %v5338_v36 = vcombine.low %v5330_v16, %v5337_v18 }
 0x3a5   :  { %6827 = vmatprep.mubr.msk.bf16.mxu1 %vm7231_vm1, %v7230_v20  ;;  %6768 = vmatmul.mubr.bf16.vlgmr.msra.gmra.mrb[84].mxu0 %v5069_v17 }
 0x3a6   :  { %6792 = vmatpush3.bf16.msra.mxu0 %v7080_v27  ;;  %6807 = vmatprep.mubr.msk.bf16.mxu0 %vm7231_vm1, %v7230_v20 }
 0x3a7   :  { %6793 = vmatprep.subr.bf16.mxu0 %v7230_v20  ;;  %6812 = vmatpush3.bf16.msra.mxu1 %v7089_v12  ;;  %v7107_v12 = vld [vmem:[%s8960_s9 + $0x98] sm:$0xff]  }
 0x3a8   :  { %6813 = vmatprep.subr.bf16.mxu1 %v7230_v20 }
 0x3aa   :  { %6794 = vmatpush3.bf16.msra.mxu0 %v7081_v14 }
 0x3ab   :  { %6795 = vmatprep.subr.bf16.mxu0 %v7230_v20  ;;  %6814 = vmatpush3.bf16.msra.mxu1 %v7091_v34  ;;  %v7109_v34 = vld [vmem:[%s8960_s9 + $0xa8] sm:$0xff]  }
 0x3ac   :  { %6815 = vmatprep.subr.bf16.mxu1 %v7230_v20 }
 0x3ae   :  { %6796 = vmatpush3.bf16.msra.mxu0 %v7082_v52 }
 0x3af   :  { %6797 = vmatprep.subr.bf16.mxu0 %v7230_v20  ;;  %6816 = vmatpush3.bf16.msra.mxu1 %v7093_v9  ;;  %v7111_v9 = vld [vmem:[%s8960_s9 + $0xb8] sm:$0xff]  }
 0x3b0   :  { %6817 = vmatprep.subr.bf16.mxu1 %v7230_v20 }
 0x3b2   :  { %6798 = vmatpush3.bf16.msra.mxu0 %v7083_v39 }
 0x3b3   :  { %6799 = vmatprep.subr.bf16.mxu0 %v7230_v20  ;;  %6818 = vmatpush3.bf16.msra.mxu1 %v7095_v11 }
 0x3b4   :  { %6819 = vmatprep.subr.bf16.mxu1 %v7230_v20 }
 0x3b6   :  { %6800 = vmatpush3.bf16.msra.mxu0 %v7084_v28 }
 0x3b7   :  { %6801 = vmatprep.subr.bf16.mxu0 %v7230_v20  ;;  %6820 = vmatpush3.bf16.msra.mxu1 %v7097_v31 }
 0x3b8   :  { %6821 = vmatprep.subr.bf16.mxu1 %v7230_v20 }
 0x3ba   :  { %6802 = vmatpush3.bf16.msra.mxu0 %v7085_v32 }
 0x3bb   :  { %6803 = vmatprep.subr.bf16.mxu0 %v7230_v20  ;;  %6822 = vmatpush3.bf16.msra.mxu1 %v7099_v0 }
 0x3bc   :  { %6823 = vmatprep.subr.bf16.mxu1 %v7230_v20 }
 0x3be   :  { %6804 = vmatpush3.bf16.msra.mxu0 %v7086_v40  ;;  %v7104_v40 = vld [vmem:[%s8960_s9 + $0x80] sm:$0xff]  }
 0x3bf   :  { %6805 = vmatprep.subr.bf16.mxu0 %v7230_v20  ;;  %6824 = vmatpush3.bf16.msra.mxu1 %v7101_v4 }
 0x3c0   :  { %6825 = vmatprep.subr.bf16.mxu1 %v7230_v20 }
 0x3c2   :  { %6806 = vmatpush3.bf16.msra.mxu0 %v7087_v49 }
 0x3c3   :  { %6831 = vmatprep.subr.bf16.mxu0 %v7230_v20  ;;  %6826 = vmatpush3.bf16.msra.mxu1 %v7103_v48 }
 0x3c4   :  { %6851 = vmatprep.subr.bf16.mxu1 %v7230_v20 }
 0x3c5   :  { %6808 = vmatmul.mubr.bf16.vlgmr.msra.gmra.mrb[88].mxu0 %v5338_v36 }
 0x3c6   :  { %6847 = vmatprep.mubr.msk.bf16.mxu0 %vm7231_vm1, %v7230_v20  ;;  %6832 = vmatpush3.bf16.msra.mxu0 %v7088_v6  ;;  %v7105_v6 = vld [vmem:[%s8960_s9 + $0x88] sm:$0xff]  }
 0x3c7   :  { %6833 = vmatprep.subr.bf16.mxu0 %v7230_v20 }
 0x3ca   :  { %6834 = vmatpush3.bf16.msra.mxu0 %v7090_v54  ;;  %v7108_v54 = vld [vmem:[%s8960_s9 + $0xa0] sm:$0xff]  }
 0x3cb   :  { %6835 = vmatprep.subr.bf16.mxu0 %v7230_v20 }
 0x3ce   :  { %6836 = vmatpush3.bf16.msra.mxu0 %v7092_v60  ;;  %v7110_v60 = vld [vmem:[%s8960_s9 + $0xb0] sm:$0xff]  }
 0x3cf   :  { %6837 = vmatprep.subr.bf16.mxu0 %v7230_v20 }
 0x3d2   :  { %6838 = vmatpush3.bf16.msra.mxu0 %v7094_v21 }
 0x3d3   :  { %6839 = vmatprep.subr.bf16.mxu0 %v7230_v20 }
 0x3d6   :  { %6840 = vmatpush3.bf16.msra.mxu0 %v7096_v30 }
 0x3d7   :  { %6841 = vmatprep.subr.bf16.mxu0 %v7230_v20 }
 0x3da   :  { %6842 = vmatpush3.bf16.msra.mxu0 %v7098_v23 }
 0x3db   :  { %6843 = vmatprep.subr.bf16.mxu0 %v7230_v20 }
 0x3de   :  { %6844 = vmatpush3.bf16.msra.mxu0 %v7100_v59 }
 0x3df   :  { %6845 = vmatprep.subr.bf16.mxu0 %v7230_v20 }
 0x3e2   :  { %6846 = vmatpush3.bf16.msra.mxu0 %v7102_v43 }
 0x477   :  { %v5287_v38 = vpop.f32.mrb[72].mxu1 }
 0x478   :  { %v6789_v53 = vpop.f32.mrb[73].mxu1  ;;  %v5153_v63 = vpop.f32.mrb[84].mxu0  ;;  %v5296_v62 = vcombine.high %v5287_v38, %v5287_v38 }
 0x479   :  { %v5290_v3 = vpop.f32.mrb[74].mxu1  ;;  %v5162_v25 = vcombine.high %v5153_v63, %v5153_v63  ;;  %v5300_v5 = vadd.f32 %v5287_v38, %v5153_v63  ;;  %v6769_v1 = vpop.f32.mrb[85].mxu0 }
 0x47a   :  { %v6790_v19 = vpop.f32.mrb[75].mxu1  ;;  %v5156_v26 = vpop.f32.mrb[86].mxu0  ;;  %v5297_v47 = vcombine.high %v5290_v3, %v5290_v3 }
 0x47b   :  { %v5301_v46 = vadd.f32 %v5296_v62, %v5162_v25  ;;  %v5163_v33 = vcombine.high %v5156_v26, %v5156_v26  ;;  %v5302_v10 = vadd.f32 %v5290_v3, %v5156_v26  ;;  %v6770_v22 = vpop.f32.mrb[87].mxu0 }
 0x47d   :  { %v5303_v24 = vadd.f32 %v5297_v47, %v5163_v33 }
 0x498   :  { %v5422_v57 = vpop.f32.mrb[88].mxu0 }
 0x499   :  { %v5431_v58 = vcombine.high %v5422_v57, %v5422_v57  ;;  %v5435_v37 = vadd.f32 %v5422_v57, %v5300_v5  ;;  %v6809_v55 = vpop.f32.mrb[89].mxu0 }
 0x49a   :  { %v5425_v29 = vpop.f32.mrb[90].mxu0 }
 0x49b   :  { %v5436_v2 = vadd.f32 %v5431_v58, %v5301_v46  ;;  %v5446_v56 = vadd.f32 %v6427_v45, %v5435_v37  ;;  %v5432_v61 = vcombine.high %v5425_v29, %v5425_v29  ;;  %v5437_v7 = vadd.f32 %v5425_v29, %v5302_v10  ;;  %v6810_v15 = vpop.f32.mrb[91].mxu0 }
 0x49d   :  { %v5447_v35 = vadd.f32 %v6427_v45, %v5436_v2  ;;  %v5450_v13 = vmax.f32 %v5446_v56, 0.0  ;;  %v5438_v50 = vadd.f32 %v5432_v61, %v5303_v24  ;;  %v5448_v18 = vadd.f32 %v6427_v45, %v5437_v7 }
 0x49f   :  { %v5451_v41 = vmax.f32 %v5447_v35, 0.0  ;;  %v5454_v8 = vpack.c.bf16 %v5450_v13, %v5450_v13  ;;  %v5449_v51 = vadd.f32 %v6427_v45, %v5438_v50  ;;  %v5452_v27 = vmax.f32 %v5448_v18, 0.0 }
 0x4a1   :  { %v5455_v16 = vpack.c.bf16 %v5451_v41, %v5451_v41  ;;  %5458 = vst [vmem:[#allocation7] sm:$0x3] %v5454_v8  ;;  %v5453_v17 = vmax.f32 %v5449_v51, 0.0  ;;  %v5456_v36 = vpack.c.bf16 %v5452_v27, %v5452_v27  ;;  %v6452_v14 = vpack.c.bf16 %v5452_v27, %v5450_v13 }
 0x4a3   :  { %5459 = vst [vmem:[#allocation7 + $0x2] sm:$0x3] %v5455_v16  ;;  %v5457_v52 = vpack.c.bf16 %v5453_v17, %v5453_v17  ;;  %5460 = vst [vmem:[#allocation7 + $0x4] sm:$0x3] %v5456_v36  ;;  %v6477_v39 = vpack.c.bf16 %v5453_v17, %v5451_v41  ;;  %v5605_v28 = vrot.slane %v6452_v14, %v7437_v44 }
 0x4a4   :  { %v5479_v32 = vcombine.low %v7229_v42, %v5455_v16  ;;  %v7106_v42 = vld [vmem:[%s8960_s9 + $0x90] sm:$0xff]  }
 0x4a5   :  { %5461 = vst [vmem:[#allocation7 + $0x6] sm:$0x3] %v5457_v52  ;;  %6848 = vmatmul.mubr.bf16.vlgmr.msra.gmra.mrb[92].mxu0 %v5605_v28  ;;  %v5725_v21 = vrot.slane %v6477_v39, %v7437_v44 }
 0x4a6   :  { %v5486_v49 = vrot.slane %v5479_v32, %v7437_v44 }
 0x4a8   :  { %6828 = vmatmul.mubr.bf16.vlgmr.msra.gmra.mrb[76].mxu1 %v5486_v49 }
 0x4a9   :  { %6852 = vmatpush3.bf16.msra.mxu1 %v7104_v40  ;;  %6867 = vmatprep.mubr.msk.bf16.mxu1 %vm7231_vm1, %v7230_v20 }
 0x4aa   :  { %6853 = vmatprep.subr.bf16.mxu1 %v7230_v20 }
 0x4ad   :  { %6854 = vmatpush3.bf16.msra.mxu1 %v7105_v6 }
 0x4ae   :  { %6855 = vmatprep.subr.bf16.mxu1 %v7230_v20 }
 0x4b1   :  { %6856 = vmatpush3.bf16.msra.mxu1 %v7106_v42 }
 0x4b2   :  { %6857 = vmatprep.subr.bf16.mxu1 %v7230_v20 }
 0x4b5   :  { %6858 = vmatpush3.bf16.msra.mxu1 %v7107_v12 }
 0x4b6   :  { %6859 = vmatprep.subr.bf16.mxu1 %v7230_v20 }
 0x4b9   :  { %6860 = vmatpush3.bf16.msra.mxu1 %v7108_v54 }
 0x4ba   :  { %6861 = vmatprep.subr.bf16.mxu1 %v7230_v20 }
 0x4bd   :  { %6862 = vmatpush3.bf16.msra.mxu1 %v7109_v34 }
 0x4be   :  { %6863 = vmatprep.subr.bf16.mxu1 %v7230_v20 }
 0x4c1   :  { %6864 = vmatpush3.bf16.msra.mxu1 %v7110_v60 }
 0x4c2   :  { %6865 = vmatprep.subr.bf16.mxu1 %v7230_v20 }
 0x4c5   :  { %6866 = vmatpush3.bf16.msra.mxu1 %v7111_v9 }
 0x4c8   :  { %6868 = vmatmul.mubr.bf16.vlgmr.msra.gmra.mrb[80].mxu1 %v5725_v21 }
 0x4c9   :  { %7123 = shalt.err (!%p7120_p4)
}
 0x4ca   :  { %s7124_s9 = scalar_lea.hbm %s8963_s12, 512 }
 0x4cb   :  { %p7125_p5 = scmp.ne.s32.totalorder %s8963_s12, %s7124_s9  ;;  %p7128_p6 = scmp.lt.u32.totalorder %s7124_s9, %s8963_s12 }
 0x4cd   :  { %p7130_p7 = pnand %p7128_p6, %p7125_p5 }
 0x4cf   :  { %7133 = shalt.err (!%p7130_p7)
}
 0x4d0   :  { %s7233_s18 = smov 32   ;;  %s7234_s2 = smov 2  }
 0x4d1   :  { %5858 = dma.vmem_to_hbm [thread:$0]  %s5853_s7, 512, %s8963_s12, [#allocation5], %s7233_s18, %s7233_s18, %s7234_s2  }
 0x4d2   :  { %s7235_s20 = smov [#allocation7]   ;;  %s7236_s22 = smov [#allocation2]  }
 0x4d3   :  { %s5876_s21 = sshll.u32 %s7235_s20, 4  ;;  %s5840_s23 = sshll.u32 %s7236_s22, 4  ;;  %s5877_s21 = int_to_ptr.vmem [resolvable:$true] %s5876_s21  ;;  %s5841_s23 = int_to_ptr.vmem [resolvable:$true] %s5840_s23 }
 0x4d4   :  { %s7134_s24 = scalar_lea.vmem %s5877_s21, 128  ;;  %p7139_p9 = scmp.lt.s32.totalorder %s5877_s21, %s5877_s21 }
 0x4d5   :  { %p7135_p8 = scmp.ne.s32.totalorder %s5877_s21, %s7134_s24  ;;  %p7140_p10 = scmp.lt.s32.totalorder %s7134_s24, %s7134_s24 }
 0x4d7   :  { %p7141_p11 = por %p7140_p10, %p7139_p9 }
 0x4d9   :  { %p7142_p12 = pnand %p7141_p11, %p7135_p8 }
 0x4db   :  { %7145 = shalt.err (!%p7142_p12)
}
 0x4dc   :  { %s7146_s25 = scalar_lea.hbm %s8965_s14, 128 }
 0x4dd   :  { %p7147_p13 = scmp.ne.s32.totalorder %s8965_s14, %s7146_s25  ;;  %p7150_p0 = scmp.lt.u32.totalorder %s7146_s25, %s8965_s14 }
 0x4df   :  { %p7152_p1 = pnand %p7150_p0, %p7147_p13 }
 0x4e1   :  { %7155 = shalt.err (!%p7152_p1)
}
 0x4e2   :  { %5882 = dma.vmem_to_hbm [thread:$0]  %s5877_s21, 128, %s8965_s14, [#allocation8], %s7233_s18, %s7233_s18, %s7234_s2  }
 0x4e3   :  { %s7156_s28 = scalar_lea.vmem %s5841_s23, 2048  ;;  %p7161_p3 = scmp.lt.s32.totalorder %s5841_s23, %s5841_s23 }
 0x4e4   :  { %p7157_p2 = scmp.ne.s32.totalorder %s5841_s23, %s7156_s28  ;;  %p7162_p4 = scmp.lt.s32.totalorder %s7156_s28, %s7156_s28 }
 0x4e6   :  { %p7163_p5 = por %p7162_p4, %p7161_p3 }
 0x4e8   :  { %p7164_p6 = pnand %p7163_p5, %p7157_p2 }
 0x4ea   :  { %7167 = shalt.err (!%p7164_p6)
}
 0x4eb   :  { %s7168_s9 = scalar_lea.hbm %s8962_s11, 2048 }
 0x4ec   :  { %p7169_p7 = scmp.ne.s32.totalorder %s8962_s11, %s7168_s9  ;;  %p7172_p8 = scmp.lt.u32.totalorder %s7168_s9, %s8962_s11 }
 0x4ee   :  { %p7174_p9 = pnand %p7172_p8, %p7169_p7 }
 0x4f0   :  { %7177 = shalt.err (!%p7174_p9)
}
 0x4f1   :  { %s7237_s14 = smov 64   ;;  %s7238_s0 = smov 4  }
 0x4f2   :  { %5846 = dma.vmem_to_hbm [thread:$0]  %s5841_s23, 2048, %s8962_s11, [#allocation3], %s7237_s14, %s7237_s14, %s7238_s0  }
 0x4f3   :  { %s7239_s21 = smov [#allocation6]  }
 0x4f4   :  { %s5864_s22 = sshll.u32 %s7239_s21, 4  ;;  %s5865_s22 = int_to_ptr.vmem [resolvable:$true] %s5864_s22 }
 0x4f5   :  { %s7178_s24 = scalar_lea.vmem %s5865_s22, 256  ;;  %p7183_p11 = scmp.lt.s32.totalorder %s5865_s22, %s5865_s22 }
 0x4f6   :  { %p7179_p10 = scmp.ne.s32.totalorder %s5865_s22, %s7178_s24  ;;  %p7184_p12 = scmp.lt.s32.totalorder %s7178_s24, %s7178_s24 }
 0x4f8   :  { %p7185_p13 = por %p7184_p12, %p7183_p11 }
 0x4fa   :  { %p7186_p0 = pnand %p7185_p13, %p7179_p10 }
 0x4fc   :  { %7189 = shalt.err (!%p7186_p0)
}
 0x4fd   :  { %s7190_s25 = scalar_lea.hbm %s8964_s13, 256 }
 0x4fe   :  { %p7191_p1 = scmp.ne.s32.totalorder %s8964_s13, %s7190_s25  ;;  %p7194_p2 = scmp.lt.u32.totalorder %s7190_s25, %s8964_s13 }
 0x500   :  { %p7196_p3 = pnand %p7194_p2, %p7191_p1 }
 0x502   :  { %7199 = shalt.err (!%p7196_p3)
}
 0x503   :  { %5870 = dma.vmem_to_hbm [thread:$0]  %s5865_s22, 256, %s8964_s13, [#allocation5], %s7233_s18, %s7233_s18, %s7234_s2  }
 0x504   :  { %v6486_v63 = vld [vmem:[%s8961_s10] ss:$0 sm:$0xff]  ;;  %s7240_s13 = smov [#allocation9]  }
 0x505   :  { %s5888_s28 = sshll.u32 %s7240_s13, 4  ;;  %s5889_s28 = int_to_ptr.vmem [resolvable:$true] %s5888_s28 }
 0x506   :  { %s7200_s29 = scalar_lea.vmem %s5889_s28, 64  ;;  %p7205_p5 = scmp.lt.s32.totalorder %s5889_s28, %s5889_s28 }
 0x507   :  { %p7201_p4 = scmp.ne.s32.totalorder %s5889_s28, %s7200_s29  ;;  %p7206_p6 = scmp.lt.s32.totalorder %s7200_s29, %s7200_s29 }
 0x509   :  { %p7207_p7 = por %p7206_p6, %p7205_p5 }
 0x50b   :  { %p7208_p8 = pnand %p7207_p7, %p7201_p4 }
 0x578   :  { %v5689_v44 = vpop.f32.mrb[92].mxu0 }
 0x579   :  { %v6849_v20 = vpop.f32.mrb[93].mxu0  ;;  %v5696_v31 = vcombine.high %v5689_v44, %v5689_v44 }
 0x57a   :  { %v5692_v30 = vpop.f32.mrb[94].mxu0 }
 0x57b   :  { %v5570_v11 = vpop.f32.mrb[76].mxu1  ;;  %v6850_v4 = vpop.f32.mrb[95].mxu0 }
 0x57c   :  { %v5577_v23 = vcombine.high %v5570_v11, %v5570_v11  ;;  %v5698_v0 = vadd.f32 %v5689_v44, %v5570_v11  ;;  %v6829_v59 = vpop.f32.mrb[77].mxu1 }
 0x57d   :  { %v5573_v43 = vpop.f32.mrb[78].mxu1 }
 0x57e   :  { %v5699_v48 = vadd.f32 %v5696_v31, %v5577_v23  ;;  %v6830_v38 = vpop.f32.mrb[79].mxu1 }
 0x59b   :  { %v5809_v53 = vpop.f32.mrb[80].mxu1 }
 0x59c   :  { %v5816_v3 = vcombine.high %v5809_v53, %v5809_v53  ;;  %v5818_v62 = vadd.f32 %v5809_v53, %v5698_v0  ;;  %v6869_v25 = vpop.f32.mrb[81].mxu1 }
 0x59d   :  { %v5812_v5 = vpop.f32.mrb[82].mxu1 }
 0x59e   :  { %v5819_v1 = vadd.f32 %v5816_v3, %v5699_v48  ;;  %v5827_v19 = vadd.f32 %v6486_v63, %v5818_v62  ;;  %v6870_v26 = vpop.f32.mrb[83].mxu1 }
 0x5a0   :  { %v5828_v46 = vadd.f32 %v6486_v63, %v5819_v1  ;;  %v5829_v47 = vmax.f32 %v5827_v19, 0.0 }
 0x5a2   :  { %v5830_v33 = vmax.f32 %v5828_v46, 0.0  ;;  %v5831_v10 = vpack.c.bf16 %v5829_v47, %v5829_v47 }
 0x5a4   :  { %v5832_v22 = vpack.c.bf16 %v5830_v33, %v5830_v33  ;;  %5833 = vst [vmem:[#allocation9] sm:$0x3] %v5831_v10 }
 0x5a6   :  { %5834 = vst [vmem:[#allocation9 + $0x2] sm:$0x3] %v5832_v22 }
 0x5a7   :  { %7211 = shalt.err (!%p7208_p8)
}
 0x5a8   :  { %s7212_s9 = scalar_lea.hbm %s8966_s15, 64 }
 0x5a9   :  { %p7213_p9 = scmp.ne.s32.totalorder %s8966_s15, %s7212_s9  ;;  %p7216_p10 = scmp.lt.u32.totalorder %s7212_s9, %s8966_s15 }
 0x5ab   :  { %p7218_p11 = pnand %p7216_p10, %p7213_p9 }
 0x5ad   :  { %7221 = shalt.err (!%p7218_p11)
}
 0x5ae   :  { %5894 = dma.vmem_to_hbm [thread:$0]  %s5889_s28, 64, %s8966_s15, [#allocation8], %s7233_s18, %s7233_s18, %s7234_s2  }
 0x5af   :  { %7222 = dma.done.wait [#allocation3], 2048  }
 0x5b0   :  { %7223 = vsyncadd [#allocation3], 4294965248 }
 0x5b1   :  { %7224 = dma.done.wait [#allocation5], 768  }
 0x5b2   :  { %7225 = vsyncadd [#allocation5], 4294966528 }
 0x5b3   :  { %7226 = dma.done.wait [#allocation8], 192  }
 0x5b4   :  { %7227 = vsyncadd [#allocation8], 4294967104 }
 0x5b5   :  { %5910 = vsyncpa [#allocation3], 1 }
 0x5b6   :  { %5911 = vsyncpa [#allocation5], 1 }
 0x5b7   :  { %5912 = vsyncpa [#allocation8], 1 }

</bundles_post_ra>
